<compile_context>
chip_gen: v6e
topology: v6e:2x2x1
jax: 0.10.0
libtpu: 0.0.40
codegen_flags: <defaults>
</compile_context>

<pallas_src>
import functools

import jax
import jax.numpy as jnp
import numpy as np
from jax.experimental import pallas as pl
from jax.experimental.pallas import tpu as pltpu


LN_EPS = 1e-5


def _layer_norm(x, w, b):
    # matches torch LayerNorm in float32 (Whisper's LayerNorm casts to float)
    mu = jnp.mean(x, axis=-1, keepdims=True)
    var = jnp.mean(jnp.square(x - mu), axis=-1, keepdims=True)
    return (x - mu) * jax.lax.rsqrt(var + LN_EPS) * w + b


def _gelu(x, exact):
    if exact:
        # torch nn.GELU() default: exact erf formulation (f32 parity path)
        return 0.5 * x * (1.0 + jax.scipy.special.erf(x * (2.0 ** -0.5)))
    # tanh approximation, evaluated in x.dtype (bf16 on the production path)
    c = 0.7978845608028654  # sqrt(2/pi)
    return 0.5 * x * (1.0 + jnp.tanh(c * (x + 0.044715 * (x * x * x))))


def _residual_attention_block_kernel(
    # inputs
    x_ref,
    ln1_w_ref, ln1_b_ref,
    wq_ref, bq_ref, wk_ref, wv_ref, bv_ref, wo_ref, bo_ref,
    ln2_w_ref, ln2_b_ref,
    w1_ref, b1_ref, w2_ref, b2_ref,
    # output
    o_ref,
    # scratch
    k_s, v_s, xattn_s, xn2_s, acc_s,
    *, n_head, s_real,
):
    fi = pl.program_id(1)          # MLP hidden-dim chunk (outer)
    qi = pl.program_id(2)          # query tile            (inner)
    n_f = pl.num_programs(1)

    S = x_ref.shape[1]             # padded sequence length
    D = x_ref.shape[2]
    tq = o_ref.shape[1]
    hd = D // n_head
    cd = wq_ref.dtype                                   # MXU operand dtype
    fast = jnp.dtype(cd) != jnp.dtype(jnp.float32)      # bf16 production path

    q_start = pl.multiple_of(qi * tq, tq)

    # ---- once per batch element: K / V for the full (padded) sequence ----
    @pl.when(jnp.logical_and(fi == 0, qi == 0))
    def _():
        xn = _layer_norm(x_ref[0], ln1_w_ref[...], ln1_b_ref[...]).astype(cd)
        # hd**-0.25 is folded into wk on the host; key projection has no bias.
        k = jnp.dot(xn, wk_ref[...], preferred_element_type=jnp.float32)
        v = jnp.dot(xn, wv_ref[...], preferred_element_type=jnp.float32) + bv_ref[...]
        # head-split layout (S, H, hd): relayout once per batch, not per q-tile
        k_s[...] = k.astype(cd).reshape(S, n_head, hd)
        v_s[...] = v.astype(cd).reshape(S, n_head, hd)

    # ---- first f pass: self-attention + first residual + mlp_ln per q-tile ----
    @pl.when(fi == 0)
    def _():
        x_tile = x_ref[0, pl.ds(q_start, tq), :]                        # (tq, D) f32
        xn_q = _layer_norm(x_tile, ln1_w_ref[...], ln1_b_ref[...]).astype(cd)
        # hd**-0.25 folded into wq/bq on the host
        q = jnp.dot(xn_q, wq_ref[...], preferred_element_type=jnp.float32) + bq_ref[...]
        q3 = q.astype(cd).reshape(tq, n_head, hd)

        # all heads at once: (H, tq, S)
        s = jnp.einsum("qhd,khd->hqk", q3, k_s[...],
                       preferred_element_type=jnp.float32)
        if s_real < S:                         # mask padded keys (static branch)
            key_idx = jax.lax.broadcasted_iota(jnp.int32, s.shape, 2)
            s = jnp.where(key_idx < s_real, s, -1e30)
        s = s - jnp.max(s, axis=-1, keepdims=True)
        if fast:                               # bf16 exp on the EUP (v6e/v7x)
            e = jnp.exp(s.astype(cd))
            denom = jnp.sum(e.astype(jnp.float32), axis=-1, keepdims=True)
        else:
            e = jnp.exp(s)
            denom = jnp.sum(e, axis=-1, keepdims=True)
        inv = pl.reciprocal(denom, approx=fast)
        w_att = (e * inv).astype(cd)

        ctx = jnp.einsum("hqk,khd->qhd", w_att, v_s[...],
                         preferred_element_type=jnp.float32)            # (tq, H, hd)
        ctx = ctx.reshape(tq, D).astype(cd)
        attn = jnp.dot(ctx, wo_ref[...], preferred_element_type=jnp.float32) + bo_ref[...]

        x_attn = x_tile + attn                                          # (tq, D) f32
        xattn_s[pl.ds(q_start, tq), :] = x_attn
        xn2_s[pl.ds(q_start, tq), :] = _layer_norm(
            x_attn, ln2_w_ref[...], ln2_b_ref[...]).astype(cd)
        acc_s[pl.ds(q_start, tq), :] = jnp.zeros((tq, D), jnp.float32)

    # ---- every step: one hidden-dim chunk of the MLP for this q-tile ----
    h = jnp.dot(xn2_s[pl.ds(q_start, tq), :], w1_ref[...],
                preferred_element_type=jnp.float32) + b1_ref[...]
    if fast:
        h = _gelu(h.astype(cd), exact=False)   # bf16 tanh GELU (VPU/EUP)
    else:
        h = _gelu(h, exact=True).astype(cd)    # exact erf, f32 parity path
    acc_s[pl.ds(q_start, tq), :] += jnp.dot(h, w2_ref[...],
                                            preferred_element_type=jnp.float32)

    # ---- last f pass: second residual + write output tile ----
    @pl.when(fi == n_f - 1)
    def _():
        o_ref[0] = (xattn_s[pl.ds(q_start, tq), :]
                    + acc_s[pl.ds(q_start, tq), :]
                    + b2_ref[...]).astype(o_ref.dtype)


def _round_up(x, m):
    return ((x + m - 1) // m) * m


def _pick_tile(total, candidates):
    for t in candidates:
        if total % t == 0:
            return t
    return total


def residual_attention_block(x, params, n_head, *, tq=None, tf=None,
                             compute_dtype=jnp.bfloat16):
    """x: (B, S, D) float32. params: dict of weights (see init_params).

    compute_dtype: MXU operand dtype (bf16 default; f32 for parity testing).
    """
    B, S, D = x.shape
    assert D % n_head == 0
    hd = D // n_head
    n_mlp = params["w1"].shape[0]
    cd = jnp.dtype(compute_dtype)
    f32 = jnp.float32

    # ---- generation-aware defaults (VMEM budget, tile sizes) ----
    try:
        vmem_cap = int(getattr(pltpu.get_tpu_info(), "vmem_capacity_bytes",
                               128 * 1024 * 1024))
    except Exception:
        vmem_cap = 128 * 1024 * 1024
    small_vmem = vmem_cap <= 64 * 1024 * 1024           # v7x-class per-core VMEM
    vmem_limit = min(int(vmem_cap * 0.85), 112 * 1024 * 1024)

    if tq is None:
        tq = 128 if small_vmem else 256
    tq = max(8, min(_round_up(int(tq), 8), _round_up(S, 8)))
    S_pad = _round_up(S, tq)
    if tf is None:
        cands = (256, 128, 64) if small_vmem else (512, 384, 256, 128, 64)
        tf = _pick_tile(n_mlp, cands)
    assert n_mlp % tf == 0
    n_f = n_mlp // tf
    n_q = S_pad // tq

    x_pad = x if S_pad == S else jnp.pad(x, ((0, 0), (0, S_pad - S), (0, 0)))

    # Host-side weight prep: Linear weights transposed to [in, out]; the
    # hd**-0.25 scale is folded into the q/k projections (and bq).
    scale = float(hd) ** -0.25
    ln1_w = params["attn_ln_w"].astype(f32)
    ln1_b = params["attn_ln_b"].astype(f32)
    wq_t = (params["wq"].T * scale).astype(cd)
    bq = (params["bq"] * scale).astype(f32)
    wk_t = (params["wk"].T * scale).astype(cd)          # key has no bias
    wv_t = params["wv"].T.astype(cd)
    bv = params["bv"].astype(f32)
    wo_t = params["wo"].T.astype(cd)
    bo = params["bo"].astype(f32)
    ln2_w = params["mlp_ln_w"].astype(f32)
    ln2_b = params["mlp_ln_b"].astype(f32)
    w1_t = params["w1"].T.astype(cd)                    # (D, n_mlp)
    b1 = params["b1"].astype(f32)                       # (1, n_mlp)
    w2_t = params["w2"].T.astype(cd)                    # (n_mlp, D)
    b2 = params["b2"].astype(f32)

    args = (x_pad, ln1_w, ln1_b, wq_t, bq, wk_t, wv_t, bv, wo_t, bo,
            ln2_w, ln2_b, w1_t, b1, w2_t, b2)

    kernel = functools.partial(_residual_attention_block_kernel,
                               n_head=n_head, s_real=S)

    # advisory cost estimate (projections + attention + MLP)
    cd_bytes = jnp.dtype(cd).itemsize
    flops = int(B * (8 * S_pad * D * D + 4 * S_pad * S_pad * D
                     + 4 * S_pad * D * n_mlp))
    transcendentals = int(B * (n_head * S_pad * S_pad + S_pad * n_mlp))
    bytes_accessed = int(2 * B * S_pad * D * 4
                         + 4 * D * D * cd_bytes
                         + B * 2 * D * n_mlp * cd_bytes
                         + (7 * D + n_mlp) * 4)

    def _build(optimized):
        # single-buffer blocks whose index never changes inside a batch
        const_mode = dict(pipeline_mode=pl.Buffered(1)) if optimized else {}

        def const_spec(p):
            nd = p.ndim
            return pl.BlockSpec(p.shape, lambda b, f, q, _nd=nd: (0,) * _nd,
                                **const_mode)

        in_specs = [
            # x: full (padded) sequence of the current batch element
            pl.BlockSpec((1, S_pad, D), lambda b, f, q: (b, 0, 0), **const_mode),
            const_spec(ln1_w), const_spec(ln1_b),
            const_spec(wq_t), const_spec(bq),
            const_spec(wk_t), const_spec(wv_t), const_spec(bv),
            const_spec(wo_t), const_spec(bo),
            const_spec(ln2_w), const_spec(ln2_b),
            pl.BlockSpec((D, tf), lambda b, f, q: (0, f)),   # w1 chunk (streamed)
            pl.BlockSpec((1, tf), lambda b, f, q: (0, f)),   # b1 chunk
            pl.BlockSpec((tf, D), lambda b, f, q: (f, 0)),   # w2 chunk (streamed)
            const_spec(b2),
        ]
        if optimized:
            # Materialize output tiles only on the last f pass; earlier passes
            # alias block (b, 0, 0), which is overwritten before its single
            # writeback -> no redundant HBM output traffic from f revisits.
            out_spec = pl.BlockSpec(
                (1, tq, D),
                lambda b, f, q: (b, jnp.where(f == n_f - 1, q, 0), 0))
        else:
            out_spec = pl.BlockSpec((1, tq, D), lambda b, f, q: (b, q, 0))

        return pl.pallas_call(
            kernel,
            out_shape=jax.ShapeDtypeStruct((B, S_pad, D), x.dtype),
            grid_spec=pltpu.PrefetchScalarGridSpec(
                num_scalar_prefetch=0,
                grid=(B, n_f, n_q),
                in_specs=in_specs,
                out_specs=out_spec,
                scratch_shapes=[
                    pltpu.VMEM((S_pad, n_head, hd), cd),    # K, head-split
                    pltpu.VMEM((S_pad, n_head, hd), cd),    # V, head-split
                    pltpu.VMEM((S_pad, D), jnp.float32),    # x + attn (residual)
                    pltpu.VMEM((S_pad, D), cd),             # mlp_ln(x + attn)
                    pltpu.VMEM((S_pad, D), jnp.float32),    # MLP accumulator
                ],
            ),
            compiler_params=pltpu.CompilerParams(
                dimension_semantics=("parallel", "arbitrary", "arbitrary"),
                vmem_limit_bytes=vmem_limit,
            ),
            cost_estimate=pl.CostEstimate(
                flops=flops, transcendentals=transcendentals,
                bytes_accessed=bytes_accessed),
        )

    try:
        out = _build(optimized=True)(*args)
    except Exception:
        # Fallback for Pallas builds without pipeline_mode / conditional
        # output index maps (correct, just more VMEM + writeback traffic).
        out = _build(optimized=False)(*args)

    return out if S_pad == S else out[:, :S, :]


def reference_block(x, params, n_head):
    """Pure-JAX reference mirroring the PyTorch forward exactly (f32)."""
    B, S, D = x.shape
    hd = D // n_head
    scale = float(hd) ** -0.25

    def ln(t, w, b):
        mu = jnp.mean(t, axis=-1, keepdims=True)
        var = jnp.mean(jnp.square(t - mu), axis=-1, keepdims=True)
        return (t - mu) / jnp.sqrt(var + LN_EPS) * w + b

    xn = ln(x, params["attn_ln_w"], params["attn_ln_b"])
    q = xn @ params["wq"].T + params["bq"]
    k = xn @ params["wk"].T
    v = xn @ params["wv"].T + params["bv"]
    qh = q.reshape(B, S, n_head, hd).transpose(0, 2, 1, 3) * scale
    kh = k.reshape(B, S, n_head, hd).transpose(0, 2, 3, 1) * scale
    vh = v.reshape(B, S, n_head, hd).transpose(0, 2, 1, 3)
    qk = qh @ kh
    w = jax.nn.softmax(qk, axis=-1)
    wv = (w @ vh).transpose(0, 2, 1, 3).reshape(B, S, D)
    x = x + (wv @ params["wo"].T + params["bo"])

    xn2 = ln(x, params["mlp_ln_w"], params["mlp_ln_b"])
    h1 = _gelu(xn2 @ params["w1"].T + params["b1"], exact=True)
    return x + (h1 @ params["w2"].T + params["b2"])


def init_params(key, n_state):
    n_mlp = 4 * n_state
    ks = jax.random.split(key, 16)
    nrm = lambda k, shape, s=0.02: (s * jax.random.normal(k, shape)).astype(jnp.float32)
    return {
        # LayerNorm params (kept as (1, D) rows for lane-friendly broadcast)
        "attn_ln_w": 1.0 + nrm(ks[0], (1, n_state), 0.01),
        "attn_ln_b": nrm(ks[1], (1, n_state), 0.01),
        "mlp_ln_w": 1.0 + nrm(ks[2], (1, n_state), 0.01),
        "mlp_ln_b": nrm(ks[3], (1, n_state), 0.01),
        # attention projections, torch Linear layout [out, in]
        "wq": nrm(ks[4], (n_state, n_state)),
        "bq": nrm(ks[5], (1, n_state)),
        "wk": nrm(ks[6], (n_state, n_state)),        # key has no bias
        "wv": nrm(ks[7], (n_state, n_state)),
        "bv": nrm(ks[8], (1, n_state)),
        "wo": nrm(ks[9], (n_state, n_state)),
        "bo": nrm(ks[10], (1, n_state)),
        # MLP
        "w1": nrm(ks[11], (n_mlp, n_state)),
        "b1": nrm(ks[12], (1, n_mlp)),
        "w2": nrm(ks[13], (n_state, n_mlp)),
        "b2": nrm(ks[14], (1, n_state)),
    }


if __name__ == "__main__":
    # batch=2, seq=16, n_state=64, n_head=4 (head_dim=16), n_mlp=256
    # tq=8 -> 2 query tiles; tf=128 -> 2 MLP hidden chunks (exercises both axes)
    B, S, D, H = 2, 16, 64, 4

    key = jax.random.PRNGKey(0)
    k_x, k_p = jax.random.split(key)
    x = jax.random.normal(k_x, (B, S, D), dtype=jnp.float32)
    params = init_params(k_p, D)

    ref = reference_block(x, params, n_head=H)

    # f32 operand parity path (tight check)
    out_f32 = residual_attention_block(x, params, n_head=H, tq=8, tf=128,
                                       compute_dtype=jnp.float32)
    out_f32 = jax.block_until_ready(out_f32)
    np.testing.assert_allclose(np.asarray(out_f32), np.asarray(ref),
                               rtol=1e-4, atol=1e-4)

    # default production path: bf16 MXU operands, f32 accumulation (loose check)
    out_bf16 = residual_attention_block(x, params, n_head=H, tq=8, tf=128)
    out_bf16 = jax.block_until_ready(out_bf16)
    np.testing.assert_allclose(np.asarray(out_bf16), np.asarray(ref),
                               rtol=5e-2, atol=5e-2)

    # unaligned sequence length: pads S to a multiple of tq, masks padded keys
    S2 = 13
    x2 = jax.random.normal(jax.random.PRNGKey(1), (B, S2, D), dtype=jnp.float32)
    ref2 = reference_block(x2, params, n_head=H)
    out2 = residual_attention_block(x2, params, n_head=H, tq=8, tf=128,
                                    compute_dtype=jnp.float32)
    out2 = jax.block_until_ready(out2)
    np.testing.assert_allclose(np.asarray(out2), np.asarray(ref2),
                               rtol=1e-4, atol=1e-4)

    # automatic (generation-aware) tile selection path
    out_def = residual_attention_block(x, params, n_head=H)
    out_def = jax.block_until_ready(out_def)
    np.testing.assert_allclose(np.asarray(out_def), np.asarray(ref),
                               rtol=5e-2, atol=5e-2)

    print("KERNEL_OK")
</pallas_src>

<mosaic_0001>
module attributes {stable_mosaic.version = 11 : i64} {
  func.func @_residual_attention_block_kernel(%arg0: i32, %arg1: i32, %arg2: i32, %arg3: memref<1x16x64xf32, #tpu.memory_space<vmem>>, %arg4: memref<1x64xf32, #tpu.memory_space<vmem>>, %arg5: memref<1x64xf32, #tpu.memory_space<vmem>>, %arg6: memref<64x64xf32, #tpu.memory_space<vmem>>, %arg7: memref<1x64xf32, #tpu.memory_space<vmem>>, %arg8: memref<64x64xf32, #tpu.memory_space<vmem>>, %arg9: memref<64x64xf32, #tpu.memory_space<vmem>>, %arg10: memref<1x64xf32, #tpu.memory_space<vmem>>, %arg11: memref<64x64xf32, #tpu.memory_space<vmem>>, %arg12: memref<1x64xf32, #tpu.memory_space<vmem>>, %arg13: memref<1x64xf32, #tpu.memory_space<vmem>>, %arg14: memref<1x64xf32, #tpu.memory_space<vmem>>, %arg15: memref<64x128xf32, #tpu.memory_space<vmem>>, %arg16: memref<1x128xf32, #tpu.memory_space<vmem>>, %arg17: memref<128x64xf32, #tpu.memory_space<vmem>>, %arg18: memref<1x64xf32, #tpu.memory_space<vmem>>, %arg19: memref<1x8x64xf32, #tpu.memory_space<vmem>>, %arg20: memref<16x4x16xf32, #tpu.memory_space<vmem>>, %arg21: memref<16x4x16xf32, #tpu.memory_space<vmem>>, %arg22: memref<16x64xf32, #tpu.memory_space<vmem>>, %arg23: memref<16x64xf32, #tpu.memory_space<vmem>>, %arg24: memref<16x64xf32, #tpu.memory_space<vmem>>) attributes {dimension_semantics = [#tpu.dimension_semantics<parallel>, #tpu.dimension_semantics<arbitrary>, #tpu.dimension_semantics<arbitrary>], iteration_bounds = array<i64: 2, 2, 2>, scalar_prefetch = 0 : i64, scratch_operands = 5 : i64, tpu.core_type = #tpu.core_type<tc>, window_params = [{pipeline_mode = #tpu.pipeline_mode<synchronous>, transform_indices = @transform_0, window_bounds = array<i64: 1, 16, 64>}, {pipeline_mode = #tpu.pipeline_mode<synchronous>, transform_indices = @transform_1, window_bounds = array<i64: 1, 64>}, {pipeline_mode = #tpu.pipeline_mode<synchronous>, transform_indices = @transform_2, window_bounds = array<i64: 1, 64>}, {pipeline_mode = #tpu.pipeline_mode<synchronous>, transform_indices = @transform_3, window_bounds = array<i64: 64, 64>}, {pipeline_mode = #tpu.pipeline_mode<synchronous>, transform_indices = @transform_4, window_bounds = array<i64: 1, 64>}, {pipeline_mode = #tpu.pipeline_mode<synchronous>, transform_indices = @transform_5, window_bounds = array<i64: 64, 64>}, {pipeline_mode = #tpu.pipeline_mode<synchronous>, transform_indices = @transform_6, window_bounds = array<i64: 64, 64>}, {pipeline_mode = #tpu.pipeline_mode<synchronous>, transform_indices = @transform_7, window_bounds = array<i64: 1, 64>}, {pipeline_mode = #tpu.pipeline_mode<synchronous>, transform_indices = @transform_8, window_bounds = array<i64: 64, 64>}, {pipeline_mode = #tpu.pipeline_mode<synchronous>, transform_indices = @transform_9, window_bounds = array<i64: 1, 64>}, {pipeline_mode = #tpu.pipeline_mode<synchronous>, transform_indices = @transform_10, window_bounds = array<i64: 1, 64>}, {pipeline_mode = #tpu.pipeline_mode<synchronous>, transform_indices = @transform_11, window_bounds = array<i64: 1, 64>}, {transform_indices = @transform_12, window_bounds = array<i64: 64, 128>}, {transform_indices = @transform_13, window_bounds = array<i64: 1, 128>}, {transform_indices = @transform_14, window_bounds = array<i64: 128, 64>}, {pipeline_mode = #tpu.pipeline_mode<synchronous>, transform_indices = @transform_15, window_bounds = array<i64: 1, 64>}, {transform_indices = @transform_16, window_bounds = array<i64: 1, 8, 64>}]} {
    %c8_i32 = arith.constant 8 : i32
    %0 = arith.muli %arg2, %c8_i32 : i32
    %1 = tpu.assume_multiple %0, 8 : i32
    %c0_i32 = arith.constant 0 : i32
    %2 = arith.cmpi eq, %arg1, %c0_i32 : i32
    %c0_i32_0 = arith.constant 0 : i32
    %3 = arith.cmpi eq, %arg2, %c0_i32_0 : i32
    %4 = arith.andi %2, %3 : i1
    %5 = arith.extui %4 : i1 to i32
    %c0_i32_1 = arith.constant 0 : i32
    %6 = arith.cmpi ne, %5, %c0_i32_1 : i32
    scf.if %6 {
      %c0_17 = arith.constant 0 : index
      %c0_18 = arith.constant 0 : index
      %c0_19 = arith.constant 0 : index
      %35 = vector.load %arg3[%c0_17, %c0_18, %c0_19] : memref<1x16x64xf32, #tpu.memory_space<vmem>>, vector<1x16x64xf32>
      %36 = vector.shape_cast %35 : vector<1x16x64xf32> to vector<16x64xf32>
      %c0_20 = arith.constant 0 : index
      %c0_21 = arith.constant 0 : index
      %37 = vector.load %arg4[%c0_20, %c0_21] : memref<1x64xf32, #tpu.memory_space<vmem>>, vector<1x64xf32>
      %c0_22 = arith.constant 0 : index
      %c0_23 = arith.constant 0 : index
      %38 = vector.load %arg5[%c0_22, %c0_23] : memref<1x64xf32, #tpu.memory_space<vmem>>, vector<1x64xf32>
      %cst_24 = arith.constant dense<0.000000e+00> : vector<16xf32>
      %39 = vector.multi_reduction <add>, %36, %cst_24 [1] : vector<16x64xf32> to vector<16xf32>
      %40 = vector.shape_cast %39 : vector<16xf32> to vector<16x1xf32>
      %cst_25 = arith.constant 6.400000e+01 : f32
      %41 = vector.broadcast %cst_25 : f32 to vector<16x1xf32>
      %42 = arith.divf %40, %41 : vector<16x1xf32>
      %43 = vector.broadcast %42 : vector<16x1xf32> to vector<16x64xf32>
      %44 = arith.subf %36, %43 : vector<16x64xf32>
      %45 = arith.mulf %44, %44 : vector<16x64xf32>
      %cst_26 = arith.constant dense<0.000000e+00> : vector<16xf32>
      %46 = vector.multi_reduction <add>, %45, %cst_26 [1] : vector<16x64xf32> to vector<16xf32>
      %47 = vector.shape_cast %46 : vector<16xf32> to vector<16x1xf32>
      %cst_27 = arith.constant 6.400000e+01 : f32
      %48 = vector.broadcast %cst_27 : f32 to vector<16x1xf32>
      %49 = arith.divf %47, %48 : vector<16x1xf32>
      %50 = vector.broadcast %42 : vector<16x1xf32> to vector<16x64xf32>
      %51 = arith.subf %36, %50 : vector<16x64xf32>
      %cst_28 = arith.constant 9.99999974E-6 : f32
      %52 = vector.broadcast %cst_28 : f32 to vector<16x1xf32>
      %53 = arith.addf %49, %52 : vector<16x1xf32>
      %54 = math.rsqrt %53 : vector<16x1xf32>
      %55 = vector.broadcast %54 : vector<16x1xf32> to vector<16x64xf32>
      %56 = arith.mulf %51, %55 : vector<16x64xf32>
      %57 = vector.broadcast %37 : vector<1x64xf32> to vector<16x64xf32>
      %58 = arith.mulf %56, %57 : vector<16x64xf32>
      %59 = vector.broadcast %38 : vector<1x64xf32> to vector<16x64xf32>
      %60 = arith.addf %58, %59 : vector<16x64xf32>
      %c0_29 = arith.constant 0 : index
      %c0_30 = arith.constant 0 : index
      %61 = vector.load %arg8[%c0_29, %c0_30] : memref<64x64xf32, #tpu.memory_space<vmem>>, vector<64x64xf32>
      %cst_31 = arith.constant dense<0.000000e+00> : vector<16x64xf32>
      %62 = tpu.matmul %60, %61, %cst_31 {dimension_numbers = #tpu.dot_dimension_numbers<[1], [0], [0], [1], [0, 0, 1, 1], [], []>} : vector<16x64xf32>, vector<64x64xf32>, vector<16x64xf32> -> vector<16x64xf32>
      %c0_32 = arith.constant 0 : index
      %c0_33 = arith.constant 0 : index
      %63 = vector.load %arg9[%c0_32, %c0_33] : memref<64x64xf32, #tpu.memory_space<vmem>>, vector<64x64xf32>
      %cst_34 = arith.constant dense<0.000000e+00> : vector<16x64xf32>
      %64 = tpu.matmul %60, %63, %cst_34 {dimension_numbers = #tpu.dot_dimension_numbers<[1], [0], [0], [1], [0, 0, 1, 1], [], []>} : vector<16x64xf32>, vector<64x64xf32>, vector<16x64xf32> -> vector<16x64xf32>
      %c0_35 = arith.constant 0 : index
      %c0_36 = arith.constant 0 : index
      %65 = vector.load %arg10[%c0_35, %c0_36] : memref<1x64xf32, #tpu.memory_space<vmem>>, vector<1x64xf32>
      %66 = vector.broadcast %65 : vector<1x64xf32> to vector<16x64xf32>
      %67 = arith.addf %64, %66 : vector<16x64xf32>
      %68 = vector.shape_cast %62 : vector<16x64xf32> to vector<16x4x16xf32>
      %c0_37 = arith.constant 0 : index
      %c0_38 = arith.constant 0 : index
      %c0_39 = arith.constant 0 : index
      %69 = vector.load %arg20[%c0_37, %c0_38, %c0_39] : memref<16x4x16xf32, #tpu.memory_space<vmem>>, vector<16x4x16xf32>
      tpu.vector_store %arg20[%c0_37, %c0_38, %c0_39], %68 {strides = array<i32>} : memref<16x4x16xf32, #tpu.memory_space<vmem>>, vector<16x4x16xf32>,
      %70 = vector.shape_cast %67 : vector<16x64xf32> to vector<16x4x16xf32>
      %c0_40 = arith.constant 0 : index
      %c0_41 = arith.constant 0 : index
      %c0_42 = arith.constant 0 : index
      %71 = vector.load %arg21[%c0_40, %c0_41, %c0_42] : memref<16x4x16xf32, #tpu.memory_space<vmem>>, vector<16x4x16xf32>
      tpu.vector_store %arg21[%c0_40, %c0_41, %c0_42], %70 {strides = array<i32>} : memref<16x4x16xf32, #tpu.memory_space<vmem>>, vector<16x4x16xf32>,
    } else {
    }
    %c0_i32_2 = arith.constant 0 : i32
    %7 = arith.cmpi eq, %arg1, %c0_i32_2 : i32
    %8 = arith.extui %7 : i1 to i32
    %c0_i32_3 = arith.constant 0 : i32
    %9 = arith.cmpi ne, %8, %c0_i32_3 : i32
    scf.if %9 {
      %c0_17 = arith.constant 0 : index
      %35 = arith.index_cast %1 : i32 to index
      %c0_18 = arith.constant 0 : index
      %36 = vector.load %arg3[%c0_17, %35, %c0_18] : memref<1x16x64xf32, #tpu.memory_space<vmem>>, vector<1x8x64xf32>
      %37 = vector.shape_cast %36 : vector<1x8x64xf32> to vector<8x64xf32>
      %c0_19 = arith.constant 0 : index
      %c0_20 = arith.constant 0 : index
      %38 = vector.load %arg4[%c0_19, %c0_20] : memref<1x64xf32, #tpu.memory_space<vmem>>, vector<1x64xf32>
      %c0_21 = arith.constant 0 : index
      %c0_22 = arith.constant 0 : index
      %39 = vector.load %arg5[%c0_21, %c0_22] : memref<1x64xf32, #tpu.memory_space<vmem>>, vector<1x64xf32>
      %cst_23 = arith.constant dense<0.000000e+00> : vector<8xf32>
      %40 = vector.multi_reduction <add>, %37, %cst_23 [1] : vector<8x64xf32> to vector<8xf32>
      %41 = vector.shape_cast %40 : vector<8xf32> to vector<8x1xf32>
      %cst_24 = arith.constant 6.400000e+01 : f32
      %42 = vector.broadcast %cst_24 : f32 to vector<8x1xf32>
      %43 = arith.divf %41, %42 : vector<8x1xf32>
      %44 = vector.broadcast %43 : vector<8x1xf32> to vector<8x64xf32>
      %45 = arith.subf %37, %44 : vector<8x64xf32>
      %46 = arith.mulf %45, %45 : vector<8x64xf32>
      %cst_25 = arith.constant dense<0.000000e+00> : vector<8xf32>
      %47 = vector.multi_reduction <add>, %46, %cst_25 [1] : vector<8x64xf32> to vector<8xf32>
      %48 = vector.shape_cast %47 : vector<8xf32> to vector<8x1xf32>
      %cst_26 = arith.constant 6.400000e+01 : f32
      %49 = vector.broadcast %cst_26 : f32 to vector<8x1xf32>
      %50 = arith.divf %48, %49 : vector<8x1xf32>
      %51 = vector.broadcast %43 : vector<8x1xf32> to vector<8x64xf32>
      %52 = arith.subf %37, %51 : vector<8x64xf32>
      %cst_27 = arith.constant 9.99999974E-6 : f32
      %53 = vector.broadcast %cst_27 : f32 to vector<8x1xf32>
      %54 = arith.addf %50, %53 : vector<8x1xf32>
      %55 = math.rsqrt %54 : vector<8x1xf32>
      %56 = vector.broadcast %55 : vector<8x1xf32> to vector<8x64xf32>
      %57 = arith.mulf %52, %56 : vector<8x64xf32>
      %58 = vector.broadcast %38 : vector<1x64xf32> to vector<8x64xf32>
      %59 = arith.mulf %57, %58 : vector<8x64xf32>
      %60 = vector.broadcast %39 : vector<1x64xf32> to vector<8x64xf32>
      %61 = arith.addf %59, %60 : vector<8x64xf32>
      %c0_28 = arith.constant 0 : index
      %c0_29 = arith.constant 0 : index
      %62 = vector.load %arg6[%c0_28, %c0_29] : memref<64x64xf32, #tpu.memory_space<vmem>>, vector<64x64xf32>
      %cst_30 = arith.constant dense<0.000000e+00> : vector<8x64xf32>
      %63 = tpu.matmul %61, %62, %cst_30 {dimension_numbers = #tpu.dot_dimension_numbers<[1], [0], [0], [1], [0, 0, 1, 1], [], []>} : vector<8x64xf32>, vector<64x64xf32>, vector<8x64xf32> -> vector<8x64xf32>
      %c0_31 = arith.constant 0 : index
      %c0_32 = arith.constant 0 : index
      %64 = vector.load %arg7[%c0_31, %c0_32] : memref<1x64xf32, #tpu.memory_space<vmem>>, vector<1x64xf32>
      %65 = vector.broadcast %64 : vector<1x64xf32> to vector<8x64xf32>
      %66 = arith.addf %63, %65 : vector<8x64xf32>
      %67 = vector.shape_cast %66 : vector<8x64xf32> to vector<8x4x16xf32>
      %c0_33 = arith.constant 0 : index
      %c0_34 = arith.constant 0 : index
      %c0_35 = arith.constant 0 : index
      %68 = vector.load %arg20[%c0_33, %c0_34, %c0_35] : memref<16x4x16xf32, #tpu.memory_space<vmem>>, vector<16x4x16xf32>
      "tpu.trace_start"() <{level = 10 : i32, message = "qhd,khd->hqk"}> : () -> ()
      %cst_36 = arith.constant dense<0.000000e+00> : vector<4x8x16xf32>
      %69 = tpu.matmul %67, %68, %cst_36 {dimension_numbers = #tpu.dot_dimension_numbers<[2], [2], [0], [0], [0, 1, 0, 0, 1, 0], [1], [1]>} : vector<8x4x16xf32>, vector<16x4x16xf32>, vector<4x8x16xf32> -> vector<4x8x16xf32>
      "tpu.trace_stop"() : () -> ()
      %cst_37 = arith.constant dense<0xFF800000> : vector<4x8xf32>
      %70 = vector.multi_reduction <maximumf>, %69, %cst_37 [2] : vector<4x8x16xf32> to vector<4x8xf32>
      %71 = vector.shape_cast %70 : vector<4x8xf32> to vector<4x8x1xf32>
      %72 = vector.broadcast %71 : vector<4x8x1xf32> to vector<4x8x16xf32>
      %73 = arith.subf %69, %72 : vector<4x8x16xf32>
      %74 = math.exp %73 : vector<4x8x16xf32>
      %cst_38 = arith.constant dense<0.000000e+00> : vector<4x8xf32>
      %75 = vector.multi_reduction <add>, %74, %cst_38 [2] : vector<4x8x16xf32> to vector<4x8xf32>
      %76 = vector.shape_cast %75 : vector<4x8xf32> to vector<4x8x1xf32>
      %77 = tpu.reciprocal %76 : vector<4x8x1xf32> -> vector<4x8x1xf32>
      %78 = vector.broadcast %77 : vector<4x8x1xf32> to vector<4x8x16xf32>
      %79 = arith.mulf %74, %78 : vector<4x8x16xf32>
      %c0_39 = arith.constant 0 : index
      %c0_40 = arith.constant 0 : index
      %c0_41 = arith.constant 0 : index
      %80 = vector.load %arg21[%c0_39, %c0_40, %c0_41] : memref<16x4x16xf32, #tpu.memory_space<vmem>>, vector<16x4x16xf32>
      "tpu.trace_start"() <{level = 10 : i32, message = "hqk,khd->qhd"}> : () -> ()
      %cst_42 = arith.constant dense<0.000000e+00> : vector<4x16x8xf32>
      %81 = tpu.matmul %80, %79, %cst_42 {dimension_numbers = #tpu.dot_dimension_numbers<[0], [2], [2], [1], [0, 1, 0, 2, 1, 1], [1], [0]>} : vector<16x4x16xf32>, vector<4x8x16xf32>, vector<4x16x8xf32> -> vector<4x16x8xf32>
      %82 = tpu.transpose %81, [2, 0, 1] : vector<4x16x8xf32> -> vector<8x4x16xf32>
      "tpu.trace_stop"() : () -> ()
      %83 = vector.shape_cast %82 : vector<8x4x16xf32> to vector<8x64xf32>
      %c0_43 = arith.constant 0 : index
      %c0_44 = arith.constant 0 : index
      %84 = vector.load %arg11[%c0_43, %c0_44] : memref<64x64xf32, #tpu.memory_space<vmem>>, vector<64x64xf32>
      %cst_45 = arith.constant dense<0.000000e+00> : vector<8x64xf32>
      %85 = tpu.matmul %83, %84, %cst_45 {dimension_numbers = #tpu.dot_dimension_numbers<[1], [0], [0], [1], [0, 0, 1, 1], [], []>} : vector<8x64xf32>, vector<64x64xf32>, vector<8x64xf32> -> vector<8x64xf32>
      %c0_46 = arith.constant 0 : index
      %c0_47 = arith.constant 0 : index
      %86 = vector.load %arg12[%c0_46, %c0_47] : memref<1x64xf32, #tpu.memory_space<vmem>>, vector<1x64xf32>
      %87 = vector.broadcast %86 : vector<1x64xf32> to vector<8x64xf32>
      %88 = arith.addf %85, %87 : vector<8x64xf32>
      %89 = arith.addf %37, %88 : vector<8x64xf32>
      %90 = arith.index_cast %1 : i32 to index
      %c0_48 = arith.constant 0 : index
      %91 = vector.load %arg22[%90, %c0_48] : memref<16x64xf32, #tpu.memory_space<vmem>>, vector<8x64xf32>
      tpu.vector_store %arg22[%90, %c0_48], %89 {strides = array<i32>} : memref<16x64xf32, #tpu.memory_space<vmem>>, vector<8x64xf32>,
      %c0_49 = arith.constant 0 : index
      %c0_50 = arith.constant 0 : index
      %92 = vector.load %arg13[%c0_49, %c0_50] : memref<1x64xf32, #tpu.memory_space<vmem>>, vector<1x64xf32>
      %c0_51 = arith.constant 0 : index
      %c0_52 = arith.constant 0 : index
      %93 = vector.load %arg14[%c0_51, %c0_52] : memref<1x64xf32, #tpu.memory_space<vmem>>, vector<1x64xf32>
      %cst_53 = arith.constant dense<0.000000e+00> : vector<8xf32>
      %94 = vector.multi_reduction <add>, %89, %cst_53 [1] : vector<8x64xf32> to vector<8xf32>
      %95 = vector.shape_cast %94 : vector<8xf32> to vector<8x1xf32>
      %cst_54 = arith.constant 6.400000e+01 : f32
      %96 = vector.broadcast %cst_54 : f32 to vector<8x1xf32>
      %97 = arith.divf %95, %96 : vector<8x1xf32>
      %98 = vector.broadcast %97 : vector<8x1xf32> to vector<8x64xf32>
      %99 = arith.subf %89, %98 : vector<8x64xf32>
      %100 = arith.mulf %99, %99 : vector<8x64xf32>
      %cst_55 = arith.constant dense<0.000000e+00> : vector<8xf32>
      %101 = vector.multi_reduction <add>, %100, %cst_55 [1] : vector<8x64xf32> to vector<8xf32>
      %102 = vector.shape_cast %101 : vector<8xf32> to vector<8x1xf32>
      %cst_56 = arith.constant 6.400000e+01 : f32
      %103 = vector.broadcast %cst_56 : f32 to vector<8x1xf32>
      %104 = arith.divf %102, %103 : vector<8x1xf32>
      %105 = vector.broadcast %97 : vector<8x1xf32> to vector<8x64xf32>
      %106 = arith.subf %89, %105 : vector<8x64xf32>
      %cst_57 = arith.constant 9.99999974E-6 : f32
      %107 = vector.broadcast %cst_57 : f32 to vector<8x1xf32>
      %108 = arith.addf %104, %107 : vector<8x1xf32>
      %109 = math.rsqrt %108 : vector<8x1xf32>
      %110 = vector.broadcast %109 : vector<8x1xf32> to vector<8x64xf32>
      %111 = arith.mulf %106, %110 : vector<8x64xf32>
      %112 = vector.broadcast %92 : vector<1x64xf32> to vector<8x64xf32>
      %113 = arith.mulf %111, %112 : vector<8x64xf32>
      %114 = vector.broadcast %93 : vector<1x64xf32> to vector<8x64xf32>
      %115 = arith.addf %113, %114 : vector<8x64xf32>
      %116 = arith.index_cast %1 : i32 to index
      %c0_58 = arith.constant 0 : index
      %117 = vector.load %arg23[%116, %c0_58] : memref<16x64xf32, #tpu.memory_space<vmem>>, vector<8x64xf32>
      tpu.vector_store %arg23[%116, %c0_58], %115 {strides = array<i32>} : memref<16x64xf32, #tpu.memory_space<vmem>>, vector<8x64xf32>,
      %cst_59 = arith.constant 0.000000e+00 : f32
      %118 = vector.broadcast %cst_59 : f32 to vector<8x64xf32>
      %119 = arith.index_cast %1 : i32 to index
      %c0_60 = arith.constant 0 : index
      %120 = vector.load %arg24[%119, %c0_60] : memref<16x64xf32, #tpu.memory_space<vmem>>, vector<8x64xf32>
      tpu.vector_store %arg24[%119, %c0_60], %118 {strides = array<i32>} : memref<16x64xf32, #tpu.memory_space<vmem>>, vector<8x64xf32>,
    } else {
    }
    %10 = arith.index_cast %1 : i32 to index
    %c0 = arith.constant 0 : index
    %11 = vector.load %arg23[%10, %c0] : memref<16x64xf32, #tpu.memory_space<vmem>>, vector<8x64xf32>
    %c0_4 = arith.constant 0 : index
    %c0_5 = arith.constant 0 : index
    %12 = vector.load %arg15[%c0_4, %c0_5] : memref<64x128xf32, #tpu.memory_space<vmem>>, vector<64x128xf32>
    %cst = arith.constant dense<0.000000e+00> : vector<8x128xf32>
    %13 = tpu.matmul %11, %12, %cst {dimension_numbers = #tpu.dot_dimension_numbers<[1], [0], [0], [1], [0, 0, 1, 1], [], []>} : vector<8x64xf32>, vector<64x128xf32>, vector<8x128xf32> -> vector<8x128xf32>
    %c0_6 = arith.constant 0 : index
    %c0_7 = arith.constant 0 : index
    %14 = vector.load %arg16[%c0_6, %c0_7] : memref<1x128xf32, #tpu.memory_space<vmem>>, vector<1x128xf32>
    %15 = vector.broadcast %14 : vector<1x128xf32> to vector<8x128xf32>
    %16 = arith.addf %13, %15 : vector<8x128xf32>
    %cst_8 = arith.constant 5.000000e-01 : f32
    %17 = vector.broadcast %cst_8 : f32 to vector<8x128xf32>
    %18 = arith.mulf %17, %16 : vector<8x128xf32>
    %cst_9 = arith.constant 0.707106769 : f32
    %19 = vector.broadcast %cst_9 : f32 to vector<8x128xf32>
    %20 = arith.mulf %16, %19 : vector<8x128xf32>
    %21 = math.erf %20 : vector<8x128xf32>
    %cst_10 = arith.constant 1.000000e+00 : f32
    %22 = vector.broadcast %cst_10 : f32 to vector<8x128xf32>
    %23 = arith.addf %22, %21 : vector<8x128xf32>
    %24 = arith.mulf %18, %23 : vector<8x128xf32>
    %25 = arith.index_cast %1 : i32 to index
    %c0_11 = arith.constant 0 : index
    %26 = vector.load %arg24[%25, %c0_11] : memref<16x64xf32, #tpu.memory_space<vmem>>, vector<8x64xf32>
    %c0_12 = arith.constant 0 : index
    %c0_13 = arith.constant 0 : index
    %27 = vector.load %arg17[%c0_12, %c0_13] : memref<128x64xf32, #tpu.memory_space<vmem>>, vector<128x64xf32>
    %cst_14 = arith.constant dense<0.000000e+00> : vector<8x64xf32>
    %28 = tpu.matmul %24, %27, %cst_14 {dimension_numbers = #tpu.dot_dimension_numbers<[1], [0], [0], [1], [0, 0, 1, 1], [], []>} : vector<8x128xf32>, vector<128x64xf32>, vector<8x64xf32> -> vector<8x64xf32>
    %29 = arith.addf %26, %28 : vector<8x64xf32>
    %30 = arith.index_cast %1 : i32 to index
    %c0_15 = arith.constant 0 : index
    %31 = vector.load %arg24[%30, %c0_15] : memref<16x64xf32, #tpu.memory_space<vmem>>, vector<8x64xf32>
    tpu.vector_store %arg24[%30, %c0_15], %29 {strides = array<i32>} : memref<16x64xf32, #tpu.memory_space<vmem>>, vector<8x64xf32>,
    %c1_i32 = arith.constant 1 : i32
    %32 = arith.cmpi eq, %arg1, %c1_i32 : i32
    %33 = arith.extui %32 : i1 to i32
    %c0_i32_16 = arith.constant 0 : i32
    %34 = arith.cmpi ne, %33, %c0_i32_16 : i32
    scf.if %34 {
      %35 = arith.index_cast %1 : i32 to index
      %c0_17 = arith.constant 0 : index
      %36 = vector.load %arg22[%35, %c0_17] : memref<16x64xf32, #tpu.memory_space<vmem>>, vector<8x64xf32>
      %37 = arith.index_cast %1 : i32 to index
      %c0_18 = arith.constant 0 : index
      %38 = vector.load %arg24[%37, %c0_18] : memref<16x64xf32, #tpu.memory_space<vmem>>, vector<8x64xf32>
      %39 = arith.addf %36, %38 : vector<8x64xf32>
      %c0_19 = arith.constant 0 : index
      %c0_20 = arith.constant 0 : index
      %40 = vector.load %arg18[%c0_19, %c0_20] : memref<1x64xf32, #tpu.memory_space<vmem>>, vector<1x64xf32>
      %41 = vector.broadcast %40 : vector<1x64xf32> to vector<8x64xf32>
      %42 = arith.addf %39, %41 : vector<8x64xf32>
      %c0_21 = arith.constant 0 : index
      %c0_22 = arith.constant 0 : index
      %c0_23 = arith.constant 0 : index
      %43 = vector.load %arg19[%c0_21, %c0_22, %c0_23] : memref<1x8x64xf32, #tpu.memory_space<vmem>>, vector<1x8x64xf32>
      %44 = vector.shape_cast %43 : vector<1x8x64xf32> to vector<8x64xf32>
      %45 = vector.shape_cast %42 : vector<8x64xf32> to vector<1x8x64xf32>
      tpu.vector_store %arg19[%c0_21, %c0_22, %c0_23], %45 {strides = array<i32>} : memref<1x8x64xf32, #tpu.memory_space<vmem>>, vector<1x8x64xf32>,
    } else {
    }
    return
  }
  func.func @transform_0(%arg0: i32, %arg1: i32, %arg2: i32) -> (i32, i32, i32) {
    %c0_i32 = arith.constant 0 : i32
    %c0_i32_0 = arith.constant 0 : i32
    %c0_i32_1 = arith.constant 0 : i32
    return %arg0, %c0_i32, %c0_i32_0 : i32, i32, i32
  }
  func.func @transform_1(%arg0: i32, %arg1: i32, %arg2: i32) -> (i32, i32) {
    %c0_i32 = arith.constant 0 : i32
    %c0_i32_0 = arith.constant 0 : i32
    %c0_i32_1 = arith.constant 0 : i32
    return %c0_i32, %c0_i32_0 : i32, i32
  }
  func.func @transform_2(%arg0: i32, %arg1: i32, %arg2: i32) -> (i32, i32) {
    %c0_i32 = arith.constant 0 : i32
    %c0_i32_0 = arith.constant 0 : i32
    %c0_i32_1 = arith.constant 0 : i32
    return %c0_i32, %c0_i32_0 : i32, i32
  }
  func.func @transform_3(%arg0: i32, %arg1: i32, %arg2: i32) -> (i32, i32) {
    %c0_i32 = arith.constant 0 : i32
    %c0_i32_0 = arith.constant 0 : i32
    %c0_i32_1 = arith.constant 0 : i32
    return %c0_i32, %c0_i32_0 : i32, i32
  }
  func.func @transform_4(%arg0: i32, %arg1: i32, %arg2: i32) -> (i32, i32) {
    %c0_i32 = arith.constant 0 : i32
    %c0_i32_0 = arith.constant 0 : i32
    %c0_i32_1 = arith.constant 0 : i32
    return %c0_i32, %c0_i32_0 : i32, i32
  }
  func.func @transform_5(%arg0: i32, %arg1: i32, %arg2: i32) -> (i32, i32) {
    %c0_i32 = arith.constant 0 : i32
    %c0_i32_0 = arith.constant 0 : i32
    %c0_i32_1 = arith.constant 0 : i32
    return %c0_i32, %c0_i32_0 : i32, i32
  }
  func.func @transform_6(%arg0: i32, %arg1: i32, %arg2: i32) -> (i32, i32) {
    %c0_i32 = arith.constant 0 : i32
    %c0_i32_0 = arith.constant 0 : i32
    %c0_i32_1 = arith.constant 0 : i32
    return %c0_i32, %c0_i32_0 : i32, i32
  }
  func.func @transform_7(%arg0: i32, %arg1: i32, %arg2: i32) -> (i32, i32) {
    %c0_i32 = arith.constant 0 : i32
    %c0_i32_0 = arith.constant 0 : i32
    %c0_i32_1 = arith.constant 0 : i32
    return %c0_i32, %c0_i32_0 : i32, i32
  }
  func.func @transform_8(%arg0: i32, %arg1: i32, %arg2: i32) -> (i32, i32) {
    %c0_i32 = arith.constant 0 : i32
    %c0_i32_0 = arith.constant 0 : i32
    %c0_i32_1 = arith.constant 0 : i32
    return %c0_i32, %c0_i32_0 : i32, i32
  }
  func.func @transform_9(%arg0: i32, %arg1: i32, %arg2: i32) -> (i32, i32) {
    %c0_i32 = arith.constant 0 : i32
    %c0_i32_0 = arith.constant 0 : i32
    %c0_i32_1 = arith.constant 0 : i32
    return %c0_i32, %c0_i32_0 : i32, i32
  }
  func.func @transform_10(%arg0: i32, %arg1: i32, %arg2: i32) -> (i32, i32) {
    %c0_i32 = arith.constant 0 : i32
    %c0_i32_0 = arith.constant 0 : i32
    %c0_i32_1 = arith.constant 0 : i32
    return %c0_i32, %c0_i32_0 : i32, i32
  }
  func.func @transform_11(%arg0: i32, %arg1: i32, %arg2: i32) -> (i32, i32) {
    %c0_i32 = arith.constant 0 : i32
    %c0_i32_0 = arith.constant 0 : i32
    %c0_i32_1 = arith.constant 0 : i32
    return %c0_i32, %c0_i32_0 : i32, i32
  }
  func.func @transform_12(%arg0: i32, %arg1: i32, %arg2: i32) -> (i32, i32) {
    %c0_i32 = arith.constant 0 : i32
    %c0_i32_0 = arith.constant 0 : i32
    return %c0_i32, %arg1 : i32, i32
  }
  func.func @transform_13(%arg0: i32, %arg1: i32, %arg2: i32) -> (i32, i32) {
    %c0_i32 = arith.constant 0 : i32
    %c0_i32_0 = arith.constant 0 : i32
    return %c0_i32, %arg1 : i32, i32
  }
  func.func @transform_14(%arg0: i32, %arg1: i32, %arg2: i32) -> (i32, i32) {
    %c0_i32 = arith.constant 0 : i32
    %c0_i32_0 = arith.constant 0 : i32
    return %arg1, %c0_i32 : i32, i32
  }
  func.func @transform_15(%arg0: i32, %arg1: i32, %arg2: i32) -> (i32, i32) {
    %c0_i32 = arith.constant 0 : i32
    %c0_i32_0 = arith.constant 0 : i32
    %c0_i32_1 = arith.constant 0 : i32
    return %c0_i32, %c0_i32_0 : i32, i32
  }
  func.func @transform_16(%arg0: i32, %arg1: i32, %arg2: i32) -> (i32, i32, i32) {
    %c1_i32 = arith.constant 1 : i32
    %0 = arith.cmpi eq, %arg1, %c1_i32 : i32
    %c0_i32 = arith.constant 0 : i32
    %1 = arith.select %0, %arg2, %c0_i32 : i32
    %c0_i32_0 = arith.constant 0 : i32
    %c0_i32_1 = arith.constant 0 : i32
    return %arg0, %1, %c0_i32_0 : i32, i32, i32
  }
}

module attributes {stable_mosaic.version = 11 : i64} {
  func.func @_residual_attention_block_kernel(%arg0: i32, %arg1: i32, %arg2: i32, %arg3: memref<1x16x64xf32, #tpu.memory_space<vmem>>, %arg4: memref<1x64xf32, #tpu.memory_space<vmem>>, %arg5: memref<1x64xf32, #tpu.memory_space<vmem>>, %arg6: memref<64x64xf32, #tpu.memory_space<vmem>>, %arg7: memref<1x64xf32, #tpu.memory_space<vmem>>, %arg8: memref<64x64xf32, #tpu.memory_space<vmem>>, %arg9: memref<64x64xf32, #tpu.memory_space<vmem>>, %arg10: memref<1x64xf32, #tpu.memory_space<vmem>>, %arg11: memref<64x64xf32, #tpu.memory_space<vmem>>, %arg12: memref<1x64xf32, #tpu.memory_space<vmem>>, %arg13: memref<1x64xf32, #tpu.memory_space<vmem>>, %arg14: memref<1x64xf32, #tpu.memory_space<vmem>>, %arg15: memref<64x128xf32, #tpu.memory_space<vmem>>, %arg16: memref<1x128xf32, #tpu.memory_space<vmem>>, %arg17: memref<128x64xf32, #tpu.memory_space<vmem>>, %arg18: memref<1x64xf32, #tpu.memory_space<vmem>>, %arg19: memref<1x8x64xf32, #tpu.memory_space<vmem>>, %arg20: memref<16x4x16xf32, #tpu.memory_space<vmem>>, %arg21: memref<16x4x16xf32, #tpu.memory_space<vmem>>, %arg22: memref<16x64xf32, #tpu.memory_space<vmem>>, %arg23: memref<16x64xf32, #tpu.memory_space<vmem>>, %arg24: memref<16x64xf32, #tpu.memory_space<vmem>>) attributes {dimension_semantics = [#tpu.dimension_semantics<parallel>, #tpu.dimension_semantics<arbitrary>, #tpu.dimension_semantics<arbitrary>], iteration_bounds = array<i64: 2, 2, 2>, scalar_prefetch = 0 : i64, scratch_operands = 5 : i64, tpu.core_type = #tpu.core_type<tc>, window_params = [{transform_indices = @transform_0, window_bounds = array<i64: 1, 16, 64>}, {pipeline_mode = #tpu.pipeline_mode<synchronous>, transform_indices = @transform_1, window_bounds = array<i64: 1, 64>}, {pipeline_mode = #tpu.pipeline_mode<synchronous>, transform_indices = @transform_2, window_bounds = array<i64: 1, 64>}, {pipeline_mode = #tpu.pipeline_mode<synchronous>, transform_indices = @transform_3, window_bounds = array<i64: 64, 64>}, {pipeline_mode = #tpu.pipeline_mode<synchronous>, transform_indices = @transform_4, window_bounds = array<i64: 1, 64>}, {pipeline_mode = #tpu.pipeline_mode<synchronous>, transform_indices = @transform_5, window_bounds = array<i64: 64, 64>}, {pipeline_mode = #tpu.pipeline_mode<synchronous>, transform_indices = @transform_6, window_bounds = array<i64: 64, 64>}, {pipeline_mode = #tpu.pipeline_mode<synchronous>, transform_indices = @transform_7, window_bounds = array<i64: 1, 64>}, {pipeline_mode = #tpu.pipeline_mode<synchronous>, transform_indices = @transform_8, window_bounds = array<i64: 64, 64>}, {pipeline_mode = #tpu.pipeline_mode<synchronous>, transform_indices = @transform_9, window_bounds = array<i64: 1, 64>}, {pipeline_mode = #tpu.pipeline_mode<synchronous>, transform_indices = @transform_10, window_bounds = array<i64: 1, 64>}, {pipeline_mode = #tpu.pipeline_mode<synchronous>, transform_indices = @transform_11, window_bounds = array<i64: 1, 64>}, {transform_indices = @transform_12, window_bounds = array<i64: 64, 128>}, {transform_indices = @transform_13, window_bounds = array<i64: 1, 128>}, {transform_indices = @transform_14, window_bounds = array<i64: 128, 64>}, {pipeline_mode = #tpu.pipeline_mode<synchronous>, transform_indices = @transform_15, window_bounds = array<i64: 1, 64>}, {transform_indices = @transform_16, window_bounds = array<i64: 1, 8, 64>}]} {
    %c8_i32 = arith.constant 8 : i32
    %0 = arith.muli %arg2, %c8_i32 : i32
    %1 = tpu.assume_multiple %0, 8 : i32
    %c0_i32 = arith.constant 0 : i32
    %2 = arith.cmpi eq, %arg1, %c0_i32 : i32
    %c0_i32_0 = arith.constant 0 : i32
    %3 = arith.cmpi eq, %arg2, %c0_i32_0 : i32
    %4 = arith.andi %2, %3 : i1
    %5 = arith.extui %4 : i1 to i32
    %c0_i32_1 = arith.constant 0 : i32
    %6 = arith.cmpi ne, %5, %c0_i32_1 : i32
    scf.if %6 {
      %c0_17 = arith.constant 0 : index
      %c0_18 = arith.constant 0 : index
      %c0_19 = arith.constant 0 : index
      %35 = vector.load %arg3[%c0_17, %c0_18, %c0_19] : memref<1x16x64xf32, #tpu.memory_space<vmem>>, vector<1x16x64xf32>
      %36 = vector.shape_cast %35 : vector<1x16x64xf32> to vector<16x64xf32>
      %c0_20 = arith.constant 0 : index
      %c0_21 = arith.constant 0 : index
      %37 = vector.load %arg4[%c0_20, %c0_21] : memref<1x64xf32, #tpu.memory_space<vmem>>, vector<1x64xf32>
      %c0_22 = arith.constant 0 : index
      %c0_23 = arith.constant 0 : index
      %38 = vector.load %arg5[%c0_22, %c0_23] : memref<1x64xf32, #tpu.memory_space<vmem>>, vector<1x64xf32>
      %cst_24 = arith.constant dense<0.000000e+00> : vector<16xf32>
      %39 = vector.multi_reduction <add>, %36, %cst_24 [1] : vector<16x64xf32> to vector<16xf32>
      %40 = vector.shape_cast %39 : vector<16xf32> to vector<16x1xf32>
      %cst_25 = arith.constant 6.400000e+01 : f32
      %41 = vector.broadcast %cst_25 : f32 to vector<16x1xf32>
      %42 = arith.divf %40, %41 : vector<16x1xf32>
      %43 = vector.broadcast %42 : vector<16x1xf32> to vector<16x64xf32>
      %44 = arith.subf %36, %43 : vector<16x64xf32>
      %45 = arith.mulf %44, %44 : vector<16x64xf32>
      %cst_26 = arith.constant dense<0.000000e+00> : vector<16xf32>
      %46 = vector.multi_reduction <add>, %45, %cst_26 [1] : vector<16x64xf32> to vector<16xf32>
      %47 = vector.shape_cast %46 : vector<16xf32> to vector<16x1xf32>
      %cst_27 = arith.constant 6.400000e+01 : f32
      %48 = vector.broadcast %cst_27 : f32 to vector<16x1xf32>
      %49 = arith.divf %47, %48 : vector<16x1xf32>
      %50 = vector.broadcast %42 : vector<16x1xf32> to vector<16x64xf32>
      %51 = arith.subf %36, %50 : vector<16x64xf32>
      %cst_28 = arith.constant 9.99999974E-6 : f32
      %52 = vector.broadcast %cst_28 : f32 to vector<16x1xf32>
      %53 = arith.addf %49, %52 : vector<16x1xf32>
      %54 = math.rsqrt %53 : vector<16x1xf32>
      %55 = vector.broadcast %54 : vector<16x1xf32> to vector<16x64xf32>
      %56 = arith.mulf %51, %55 : vector<16x64xf32>
      %57 = vector.broadcast %37 : vector<1x64xf32> to vector<16x64xf32>
      %58 = arith.mulf %56, %57 : vector<16x64xf32>
      %59 = vector.broadcast %38 : vector<1x64xf32> to vector<16x64xf32>
      %60 = arith.addf %58, %59 : vector<16x64xf32>
      %c0_29 = arith.constant 0 : index
      %c0_30 = arith.constant 0 : index
      %61 = vector.load %arg8[%c0_29, %c0_30] : memref<64x64xf32, #tpu.memory_space<vmem>>, vector<64x64xf32>
      %cst_31 = arith.constant dense<0.000000e+00> : vector<16x64xf32>
      %62 = tpu.matmul %60, %61, %cst_31 {dimension_numbers = #tpu.dot_dimension_numbers<[1], [0], [0], [1], [0, 0, 1, 1], [], []>} : vector<16x64xf32>, vector<64x64xf32>, vector<16x64xf32> -> vector<16x64xf32>
      %c0_32 = arith.constant 0 : index
      %c0_33 = arith.constant 0 : index
      %63 = vector.load %arg9[%c0_32, %c0_33] : memref<64x64xf32, #tpu.memory_space<vmem>>, vector<64x64xf32>
      %cst_34 = arith.constant dense<0.000000e+00> : vector<16x64xf32>
      %64 = tpu.matmul %60, %63, %cst_34 {dimension_numbers = #tpu.dot_dimension_numbers<[1], [0], [0], [1], [0, 0, 1, 1], [], []>} : vector<16x64xf32>, vector<64x64xf32>, vector<16x64xf32> -> vector<16x64xf32>
      %c0_35 = arith.constant 0 : index
      %c0_36 = arith.constant 0 : index
      %65 = vector.load %arg10[%c0_35, %c0_36] : memref<1x64xf32, #tpu.memory_space<vmem>>, vector<1x64xf32>
      %66 = vector.broadcast %65 : vector<1x64xf32> to vector<16x64xf32>
      %67 = arith.addf %64, %66 : vector<16x64xf32>
      %68 = vector.shape_cast %62 : vector<16x64xf32> to vector<16x4x16xf32>
      %c0_37 = arith.constant 0 : index
      %c0_38 = arith.constant 0 : index
      %c0_39 = arith.constant 0 : index
      %69 = vector.load %arg20[%c0_37, %c0_38, %c0_39] : memref<16x4x16xf32, #tpu.memory_space<vmem>>, vector<16x4x16xf32>
      tpu.vector_store %arg20[%c0_37, %c0_38, %c0_39], %68 {strides = array<i32>} : memref<16x4x16xf32, #tpu.memory_space<vmem>>, vector<16x4x16xf32>,
      %70 = vector.shape_cast %67 : vector<16x64xf32> to vector<16x4x16xf32>
      %c0_40 = arith.constant 0 : index
      %c0_41 = arith.constant 0 : index
      %c0_42 = arith.constant 0 : index
      %71 = vector.load %arg21[%c0_40, %c0_41, %c0_42] : memref<16x4x16xf32, #tpu.memory_space<vmem>>, vector<16x4x16xf32>
      tpu.vector_store %arg21[%c0_40, %c0_41, %c0_42], %70 {strides = array<i32>} : memref<16x4x16xf32, #tpu.memory_space<vmem>>, vector<16x4x16xf32>,
    } else {
    }
    %c0_i32_2 = arith.constant 0 : i32
    %7 = arith.cmpi eq, %arg1, %c0_i32_2 : i32
    %8 = arith.extui %7 : i1 to i32
    %c0_i32_3 = arith.constant 0 : i32
    %9 = arith.cmpi ne, %8, %c0_i32_3 : i32
    scf.if %9 {
      %c0_17 = arith.constant 0 : index
      %35 = arith.index_cast %1 : i32 to index
      %c0_18 = arith.constant 0 : index
      %36 = vector.load %arg3[%c0_17, %35, %c0_18] : memref<1x16x64xf32, #tpu.memory_space<vmem>>, vector<1x8x64xf32>
      %37 = vector.shape_cast %36 : vector<1x8x64xf32> to vector<8x64xf32>
      %c0_19 = arith.constant 0 : index
      %c0_20 = arith.constant 0 : index
      %38 = vector.load %arg4[%c0_19, %c0_20] : memref<1x64xf32, #tpu.memory_space<vmem>>, vector<1x64xf32>
      %c0_21 = arith.constant 0 : index
      %c0_22 = arith.constant 0 : index
      %39 = vector.load %arg5[%c0_21, %c0_22] : memref<1x64xf32, #tpu.memory_space<vmem>>, vector<1x64xf32>
      %cst_23 = arith.constant dense<0.000000e+00> : vector<8xf32>
      %40 = vector.multi_reduction <add>, %37, %cst_23 [1] : vector<8x64xf32> to vector<8xf32>
      %41 = vector.shape_cast %40 : vector<8xf32> to vector<8x1xf32>
      %cst_24 = arith.constant 6.400000e+01 : f32
      %42 = vector.broadcast %cst_24 : f32 to vector<8x1xf32>
      %43 = arith.divf %41, %42 : vector<8x1xf32>
      %44 = vector.broadcast %43 : vector<8x1xf32> to vector<8x64xf32>
      %45 = arith.subf %37, %44 : vector<8x64xf32>
      %46 = arith.mulf %45, %45 : vector<8x64xf32>
      %cst_25 = arith.constant dense<0.000000e+00> : vector<8xf32>
      %47 = vector.multi_reduction <add>, %46, %cst_25 [1] : vector<8x64xf32> to vector<8xf32>
      %48 = vector.shape_cast %47 : vector<8xf32> to vector<8x1xf32>
      %cst_26 = arith.constant 6.400000e+01 : f32
      %49 = vector.broadcast %cst_26 : f32 to vector<8x1xf32>
      %50 = arith.divf %48, %49 : vector<8x1xf32>
      %51 = vector.broadcast %43 : vector<8x1xf32> to vector<8x64xf32>
      %52 = arith.subf %37, %51 : vector<8x64xf32>
      %cst_27 = arith.constant 9.99999974E-6 : f32
      %53 = vector.broadcast %cst_27 : f32 to vector<8x1xf32>
      %54 = arith.addf %50, %53 : vector<8x1xf32>
      %55 = math.rsqrt %54 : vector<8x1xf32>
      %56 = vector.broadcast %55 : vector<8x1xf32> to vector<8x64xf32>
      %57 = arith.mulf %52, %56 : vector<8x64xf32>
      %58 = vector.broadcast %38 : vector<1x64xf32> to vector<8x64xf32>
      %59 = arith.mulf %57, %58 : vector<8x64xf32>
      %60 = vector.broadcast %39 : vector<1x64xf32> to vector<8x64xf32>
      %61 = arith.addf %59, %60 : vector<8x64xf32>
      %c0_28 = arith.constant 0 : index
      %c0_29 = arith.constant 0 : index
      %62 = vector.load %arg6[%c0_28, %c0_29] : memref<64x64xf32, #tpu.memory_space<vmem>>, vector<64x64xf32>
      %cst_30 = arith.constant dense<0.000000e+00> : vector<8x64xf32>
      %63 = tpu.matmul %61, %62, %cst_30 {dimension_numbers = #tpu.dot_dimension_numbers<[1], [0], [0], [1], [0, 0, 1, 1], [], []>} : vector<8x64xf32>, vector<64x64xf32>, vector<8x64xf32> -> vector<8x64xf32>
      %c0_31 = arith.constant 0 : index
      %c0_32 = arith.constant 0 : index
      %64 = vector.load %arg7[%c0_31, %c0_32] : memref<1x64xf32, #tpu.memory_space<vmem>>, vector<1x64xf32>
      %65 = vector.broadcast %64 : vector<1x64xf32> to vector<8x64xf32>
      %66 = arith.addf %63, %65 : vector<8x64xf32>
      %67 = vector.shape_cast %66 : vector<8x64xf32> to vector<8x4x16xf32>
      %c0_33 = arith.constant 0 : index
      %c0_34 = arith.constant 0 : index
      %c0_35 = arith.constant 0 : index
      %68 = vector.load %arg20[%c0_33, %c0_34, %c0_35] : memref<16x4x16xf32, #tpu.memory_space<vmem>>, vector<16x4x16xf32>
      "tpu.trace_start"() <{level = 10 : i32, message = "qhd,khd->hqk"}> : () -> ()
      %cst_36 = arith.constant dense<0.000000e+00> : vector<4x8x16xf32>
      %69 = tpu.matmul %67, %68, %cst_36 {dimension_numbers = #tpu.dot_dimension_numbers<[2], [2], [0], [0], [0, 1, 0, 0, 1, 0], [1], [1]>} : vector<8x4x16xf32>, vector<16x4x16xf32>, vector<4x8x16xf32> -> vector<4x8x16xf32>
      "tpu.trace_stop"() : () -> ()
      %cst_37 = arith.constant dense<0xFF800000> : vector<4x8xf32>
      %70 = vector.multi_reduction <maximumf>, %69, %cst_37 [2] : vector<4x8x16xf32> to vector<4x8xf32>
      %71 = vector.shape_cast %70 : vector<4x8xf32> to vector<4x8x1xf32>
      %72 = vector.broadcast %71 : vector<4x8x1xf32> to vector<4x8x16xf32>
      %73 = arith.subf %69, %72 : vector<4x8x16xf32>
      %74 = math.exp %73 : vector<4x8x16xf32>
      %cst_38 = arith.constant dense<0.000000e+00> : vector<4x8xf32>
      %75 = vector.multi_reduction <add>, %74, %cst_38 [2] : vector<4x8x16xf32> to vector<4x8xf32>
      %76 = vector.shape_cast %75 : vector<4x8xf32> to vector<4x8x1xf32>
      %77 = tpu.reciprocal %76 : vector<4x8x1xf32> -> vector<4x8x1xf32>
      %78 = vector.broadcast %77 : vector<4x8x1xf32> to vector<4x8x16xf32>
      %79 = arith.mulf %74, %78 : vector<4x8x16xf32>
      %c0_39 = arith.constant 0 : index
      %c0_40 = arith.constant 0 : index
      %c0_41 = arith.constant 0 : index
      %80 = vector.load %arg21[%c0_39, %c0_40, %c0_41] : memref<16x4x16xf32, #tpu.memory_space<vmem>>, vector<16x4x16xf32>
      "tpu.trace_start"() <{level = 10 : i32, message = "hqk,khd->qhd"}> : () -> ()
      %cst_42 = arith.constant dense<0.000000e+00> : vector<4x16x8xf32>
      %81 = tpu.matmul %80, %79, %cst_42 {dimension_numbers = #tpu.dot_dimension_numbers<[0], [2], [2], [1], [0, 1, 0, 2, 1, 1], [1], [0]>} : vector<16x4x16xf32>, vector<4x8x16xf32>, vector<4x16x8xf32> -> vector<4x16x8xf32>
      %82 = tpu.transpose %81, [2, 0, 1] : vector<4x16x8xf32> -> vector<8x4x16xf32>
      "tpu.trace_stop"() : () -> ()
      %83 = vector.shape_cast %82 : vector<8x4x16xf32> to vector<8x64xf32>
      %c0_43 = arith.constant 0 : index
      %c0_44 = arith.constant 0 : index
      %84 = vector.load %arg11[%c0_43, %c0_44] : memref<64x64xf32, #tpu.memory_space<vmem>>, vector<64x64xf32>
      %cst_45 = arith.constant dense<0.000000e+00> : vector<8x64xf32>
      %85 = tpu.matmul %83, %84, %cst_45 {dimension_numbers = #tpu.dot_dimension_numbers<[1], [0], [0], [1], [0, 0, 1, 1], [], []>} : vector<8x64xf32>, vector<64x64xf32>, vector<8x64xf32> -> vector<8x64xf32>
      %c0_46 = arith.constant 0 : index
      %c0_47 = arith.constant 0 : index
      %86 = vector.load %arg12[%c0_46, %c0_47] : memref<1x64xf32, #tpu.memory_space<vmem>>, vector<1x64xf32>
      %87 = vector.broadcast %86 : vector<1x64xf32> to vector<8x64xf32>
      %88 = arith.addf %85, %87 : vector<8x64xf32>
      %89 = arith.addf %37, %88 : vector<8x64xf32>
      %90 = arith.index_cast %1 : i32 to index
      %c0_48 = arith.constant 0 : index
      %91 = vector.load %arg22[%90, %c0_48] : memref<16x64xf32, #tpu.memory_space<vmem>>, vector<8x64xf32>
      tpu.vector_store %arg22[%90, %c0_48], %89 {strides = array<i32>} : memref<16x64xf32, #tpu.memory_space<vmem>>, vector<8x64xf32>,
      %c0_49 = arith.constant 0 : index
      %c0_50 = arith.constant 0 : index
      %92 = vector.load %arg13[%c0_49, %c0_50] : memref<1x64xf32, #tpu.memory_space<vmem>>, vector<1x64xf32>
      %c0_51 = arith.constant 0 : index
      %c0_52 = arith.constant 0 : index
      %93 = vector.load %arg14[%c0_51, %c0_52] : memref<1x64xf32, #tpu.memory_space<vmem>>, vector<1x64xf32>
      %cst_53 = arith.constant dense<0.000000e+00> : vector<8xf32>
      %94 = vector.multi_reduction <add>, %89, %cst_53 [1] : vector<8x64xf32> to vector<8xf32>
      %95 = vector.shape_cast %94 : vector<8xf32> to vector<8x1xf32>
      %cst_54 = arith.constant 6.400000e+01 : f32
      %96 = vector.broadcast %cst_54 : f32 to vector<8x1xf32>
      %97 = arith.divf %95, %96 : vector<8x1xf32>
      %98 = vector.broadcast %97 : vector<8x1xf32> to vector<8x64xf32>
      %99 = arith.subf %89, %98 : vector<8x64xf32>
      %100 = arith.mulf %99, %99 : vector<8x64xf32>
      %cst_55 = arith.constant dense<0.000000e+00> : vector<8xf32>
      %101 = vector.multi_reduction <add>, %100, %cst_55 [1] : vector<8x64xf32> to vector<8xf32>
      %102 = vector.shape_cast %101 : vector<8xf32> to vector<8x1xf32>
      %cst_56 = arith.constant 6.400000e+01 : f32
      %103 = vector.broadcast %cst_56 : f32 to vector<8x1xf32>
      %104 = arith.divf %102, %103 : vector<8x1xf32>
      %105 = vector.broadcast %97 : vector<8x1xf32> to vector<8x64xf32>
      %106 = arith.subf %89, %105 : vector<8x64xf32>
      %cst_57 = arith.constant 9.99999974E-6 : f32
      %107 = vector.broadcast %cst_57 : f32 to vector<8x1xf32>
      %108 = arith.addf %104, %107 : vector<8x1xf32>
      %109 = math.rsqrt %108 : vector<8x1xf32>
      %110 = vector.broadcast %109 : vector<8x1xf32> to vector<8x64xf32>
      %111 = arith.mulf %106, %110 : vector<8x64xf32>
      %112 = vector.broadcast %92 : vector<1x64xf32> to vector<8x64xf32>
      %113 = arith.mulf %111, %112 : vector<8x64xf32>
      %114 = vector.broadcast %93 : vector<1x64xf32> to vector<8x64xf32>
      %115 = arith.addf %113, %114 : vector<8x64xf32>
      %116 = arith.index_cast %1 : i32 to index
      %c0_58 = arith.constant 0 : index
      %117 = vector.load %arg23[%116, %c0_58] : memref<16x64xf32, #tpu.memory_space<vmem>>, vector<8x64xf32>
      tpu.vector_store %arg23[%116, %c0_58], %115 {strides = array<i32>} : memref<16x64xf32, #tpu.memory_space<vmem>>, vector<8x64xf32>,
      %cst_59 = arith.constant 0.000000e+00 : f32
      %118 = vector.broadcast %cst_59 : f32 to vector<8x64xf32>
      %119 = arith.index_cast %1 : i32 to index
      %c0_60 = arith.constant 0 : index
      %120 = vector.load %arg24[%119, %c0_60] : memref<16x64xf32, #tpu.memory_space<vmem>>, vector<8x64xf32>
      tpu.vector_store %arg24[%119, %c0_60], %118 {strides = array<i32>} : memref<16x64xf32, #tpu.memory_space<vmem>>, vector<8x64xf32>,
    } else {
    }
    %10 = arith.index_cast %1 : i32 to index
    %c0 = arith.constant 0 : index
    %11 = vector.load %arg23[%10, %c0] : memref<16x64xf32, #tpu.memory_space<vmem>>, vector<8x64xf32>
    %c0_4 = arith.constant 0 : index
    %c0_5 = arith.constant 0 : index
    %12 = vector.load %arg15[%c0_4, %c0_5] : memref<64x128xf32, #tpu.memory_space<vmem>>, vector<64x128xf32>
    %cst = arith.constant dense<0.000000e+00> : vector<8x128xf32>
    %13 = tpu.matmul %11, %12, %cst {dimension_numbers = #tpu.dot_dimension_numbers<[1], [0], [0], [1], [0, 0, 1, 1], [], []>} : vector<8x64xf32>, vector<64x128xf32>, vector<8x128xf32> -> vector<8x128xf32>
    %c0_6 = arith.constant 0 : index
    %c0_7 = arith.constant 0 : index
    %14 = vector.load %arg16[%c0_6, %c0_7] : memref<1x128xf32, #tpu.memory_space<vmem>>, vector<1x128xf32>
    %15 = vector.broadcast %14 : vector<1x128xf32> to vector<8x128xf32>
    %16 = arith.addf %13, %15 : vector<8x128xf32>
    %cst_8 = arith.constant 5.000000e-01 : f32
    %17 = vector.broadcast %cst_8 : f32 to vector<8x128xf32>
    %18 = arith.mulf %17, %16 : vector<8x128xf32>
    %cst_9 = arith.constant 0.707106769 : f32
    %19 = vector.broadcast %cst_9 : f32 to vector<8x128xf32>
    %20 = arith.mulf %16, %19 : vector<8x128xf32>
    %21 = math.erf %20 : vector<8x128xf32>
    %cst_10 = arith.constant 1.000000e+00 : f32
    %22 = vector.broadcast %cst_10 : f32 to vector<8x128xf32>
    %23 = arith.addf %22, %21 : vector<8x128xf32>
    %24 = arith.mulf %18, %23 : vector<8x128xf32>
    %25 = arith.index_cast %1 : i32 to index
    %c0_11 = arith.constant 0 : index
    %26 = vector.load %arg24[%25, %c0_11] : memref<16x64xf32, #tpu.memory_space<vmem>>, vector<8x64xf32>
    %c0_12 = arith.constant 0 : index
    %c0_13 = arith.constant 0 : index
    %27 = vector.load %arg17[%c0_12, %c0_13] : memref<128x64xf32, #tpu.memory_space<vmem>>, vector<128x64xf32>
    %cst_14 = arith.constant dense<0.000000e+00> : vector<8x64xf32>
    %28 = tpu.matmul %24, %27, %cst_14 {dimension_numbers = #tpu.dot_dimension_numbers<[1], [0], [0], [1], [0, 0, 1, 1], [], []>} : vector<8x128xf32>, vector<128x64xf32>, vector<8x64xf32> -> vector<8x64xf32>
    %29 = arith.addf %26, %28 : vector<8x64xf32>
    %30 = arith.index_cast %1 : i32 to index
    %c0_15 = arith.constant 0 : index
    %31 = vector.load %arg24[%30, %c0_15] : memref<16x64xf32, #tpu.memory_space<vmem>>, vector<8x64xf32>
    tpu.vector_store %arg24[%30, %c0_15], %29 {strides = array<i32>} : memref<16x64xf32, #tpu.memory_space<vmem>>, vector<8x64xf32>,
    %c1_i32 = arith.constant 1 : i32
    %32 = arith.cmpi eq, %arg1, %c1_i32 : i32
    %33 = arith.extui %32 : i1 to i32
    %c0_i32_16 = arith.constant 0 : i32
    %34 = arith.cmpi ne, %33, %c0_i32_16 : i32
    scf.if %34 {
      %35 = arith.index_cast %1 : i32 to index
      %c0_17 = arith.constant 0 : index
      %36 = vector.load %arg22[%35, %c0_17] : memref<16x64xf32, #tpu.memory_space<vmem>>, vector<8x64xf32>
      %37 = arith.index_cast %1 : i32 to index
      %c0_18 = arith.constant 0 : index
      %38 = vector.load %arg24[%37, %c0_18] : memref<16x64xf32, #tpu.memory_space<vmem>>, vector<8x64xf32>
      %39 = arith.addf %36, %38 : vector<8x64xf32>
      %c0_19 = arith.constant 0 : index
      %c0_20 = arith.constant 0 : index
      %40 = vector.load %arg18[%c0_19, %c0_20] : memref<1x64xf32, #tpu.memory_space<vmem>>, vector<1x64xf32>
      %41 = vector.broadcast %40 : vector<1x64xf32> to vector<8x64xf32>
      %42 = arith.addf %39, %41 : vector<8x64xf32>
      %c0_21 = arith.constant 0 : index
      %c0_22 = arith.constant 0 : index
      %c0_23 = arith.constant 0 : index
      %43 = vector.load %arg19[%c0_21, %c0_22, %c0_23] : memref<1x8x64xf32, #tpu.memory_space<vmem>>, vector<1x8x64xf32>
      %44 = vector.shape_cast %43 : vector<1x8x64xf32> to vector<8x64xf32>
      %45 = vector.shape_cast %42 : vector<8x64xf32> to vector<1x8x64xf32>
      tpu.vector_store %arg19[%c0_21, %c0_22, %c0_23], %45 {strides = array<i32>} : memref<1x8x64xf32, #tpu.memory_space<vmem>>, vector<1x8x64xf32>,
    } else {
    }
    return
  }
  func.func @transform_0(%arg0: i32, %arg1: i32, %arg2: i32) -> (i32, i32, i32) {
    %c0_i32 = arith.constant 0 : i32
    %c0_i32_0 = arith.constant 0 : i32
    %c0_i32_1 = arith.constant 0 : i32
    return %arg0, %c0_i32, %c0_i32_0 : i32, i32, i32
  }
  func.func @transform_1(%arg0: i32, %arg1: i32, %arg2: i32) -> (i32, i32) {
    %c0_i32 = arith.constant 0 : i32
    %c0_i32_0 = arith.constant 0 : i32
    %c0_i32_1 = arith.constant 0 : i32
    return %c0_i32, %c0_i32_0 : i32, i32
  }
  func.func @transform_2(%arg0: i32, %arg1: i32, %arg2: i32) -> (i32, i32) {
    %c0_i32 = arith.constant 0 : i32
    %c0_i32_0 = arith.constant 0 : i32
    %c0_i32_1 = arith.constant 0 : i32
    return %c0_i32, %c0_i32_0 : i32, i32
  }
  func.func @transform_3(%arg0: i32, %arg1: i32, %arg2: i32) -> (i32, i32) {
    %c0_i32 = arith.constant 0 : i32
    %c0_i32_0 = arith.constant 0 : i32
    %c0_i32_1 = arith.constant 0 : i32
    return %c0_i32, %c0_i32_0 : i32, i32
  }
  func.func @transform_4(%arg0: i32, %arg1: i32, %arg2: i32) -> (i32, i32) {
    %c0_i32 = arith.constant 0 : i32
    %c0_i32_0 = arith.constant 0 : i32
    %c0_i32_1 = arith.constant 0 : i32
    return %c0_i32, %c0_i32_0 : i32, i32
  }
  func.func @transform_5(%arg0: i32, %arg1: i32, %arg2: i32) -> (i32, i32) {
    %c0_i32 = arith.constant 0 : i32
    %c0_i32_0 = arith.constant 0 : i32
    %c0_i32_1 = arith.constant 0 : i32
    return %c0_i32, %c0_i32_0 : i32, i32
  }
  func.func @transform_6(%arg0: i32, %arg1: i32, %arg2: i32) -> (i32, i32) {
    %c0_i32 = arith.constant 0 : i32
    %c0_i32_0 = arith.constant 0 : i32
    %c0_i32_1 = arith.constant 0 : i32
    return %c0_i32, %c0_i32_0 : i32, i32
  }
  func.func @transform_7(%arg0: i32, %arg1: i32, %arg2: i32) -> (i32, i32) {
    %c0_i32 = arith.constant 0 : i32
    %c0_i32_0 = arith.constant 0 : i32
    %c0_i32_1 = arith.constant 0 : i32
    return %c0_i32, %c0_i32_0 : i32, i32
  }
  func.func @transform_8(%arg0: i32, %arg1: i32, %arg2: i32) -> (i32, i32) {
    %c0_i32 = arith.constant 0 : i32
    %c0_i32_0 = arith.constant 0 : i32
    %c0_i32_1 = arith.constant 0 : i32
    return %c0_i32, %c0_i32_0 : i32, i32
  }
  func.func @transform_9(%arg0: i32, %arg1: i32, %arg2: i32) -> (i32, i32) {
    %c0_i32 = arith.constant 0 : i32
    %c0_i32_0 = arith.constant 0 : i32
    %c0_i32_1 = arith.constant 0 : i32
    return %c0_i32, %c0_i32_0 : i32, i32
  }
  func.func @transform_10(%arg0: i32, %arg1: i32, %arg2: i32) -> (i32, i32) {
    %c0_i32 = arith.constant 0 : i32
    %c0_i32_0 = arith.constant 0 : i32
    %c0_i32_1 = arith.constant 0 : i32
    return %c0_i32, %c0_i32_0 : i32, i32
  }
  func.func @transform_11(%arg0: i32, %arg1: i32, %arg2: i32) -> (i32, i32) {
    %c0_i32 = arith.constant 0 : i32
    %c0_i32_0 = arith.constant 0 : i32
    %c0_i32_1 = arith.constant 0 : i32
    return %c0_i32, %c0_i32_0 : i32, i32
  }
  func.func @transform_12(%arg0: i32, %arg1: i32, %arg2: i32) -> (i32, i32) {
    %c0_i32 = arith.constant 0 : i32
    %c0_i32_0 = arith.constant 0 : i32
    return %c0_i32, %arg1 : i32, i32
  }
  func.func @transform_13(%arg0: i32, %arg1: i32, %arg2: i32) -> (i32, i32) {
    %c0_i32 = arith.constant 0 : i32
    %c0_i32_0 = arith.constant 0 : i32
    return %c0_i32, %arg1 : i32, i32
  }
  func.func @transform_14(%arg0: i32, %arg1: i32, %arg2: i32) -> (i32, i32) {
    %c0_i32 = arith.constant 0 : i32
    %c0_i32_0 = arith.constant 0 : i32
    return %arg1, %c0_i32 : i32, i32
  }
  func.func @transform_15(%arg0: i32, %arg1: i32, %arg2: i32) -> (i32, i32) {
    %c0_i32 = arith.constant 0 : i32
    %c0_i32_0 = arith.constant 0 : i32
    %c0_i32_1 = arith.constant 0 : i32
    return %c0_i32, %c0_i32_0 : i32, i32
  }
  func.func @transform_16(%arg0: i32, %arg1: i32, %arg2: i32) -> (i32, i32, i32) {
    %c0_i32 = arith.constant 0 : i32
    %c0_i32_0 = arith.constant 0 : i32
    return %arg0, %arg2, %c0_i32 : i32, i32, i32
  }
}

</mosaic_0001>

<bundles_post_ra>
// kernel: tpu_custom_call.1
= control target key start
LH: loop header
LB: loop body
LE: loop exit
PB: predicated region body
PF: predicated region fallthrough
CT: control target
= control target key end

     0   :  { %s8509_s0 = inlined_call_operand.hbm [shape: f32[2,16,64], index: 0, kind: input, shape index: {}]   ;;  %s8510_s1 = inlined_call_operand.hbm [shape: f32[1,64], index: 1, kind: input, shape index: {}]   ;;  %s8511_s2 = inlined_call_operand.hbm [shape: f32[1,64], index: 2, kind: input, shape index: {}]   ;;  %s8512_s3 = inlined_call_operand.vmem [shape: f32[64,64], index: 3, kind: input, shape index: {}]   ;;  %s8513_s4 = inlined_call_operand.vmem [shape: f32[1,64], index: 4, kind: input, shape index: {}]   ;;  %s8514_s5 = inlined_call_operand.vmem [shape: f32[64,64], index: 5, kind: input, shape index: {}]   ;;  %s8515_s6 = inlined_call_operand.vmem [shape: f32[64,64], index: 6, kind: input, shape index: {}]   ;;  %s8516_s7 = inlined_call_operand.vmem [shape: f32[1,64], index: 7, kind: input, shape index: {}]   ;;  %s8517_s8 = inlined_call_operand.vmem [shape: f32[64,64], index: 8, kind: input, shape index: {}]   ;;  %s8518_s9 = inlined_call_operand.vmem [shape: f32[1,64], index: 9, kind: input, shape index: {}]   ;;  %s8519_s10 = inlined_call_operand.vmem [shape: f32[1,64], index: 10, kind: input, shape index: {}]   ;;  %s8520_s11 = inlined_call_operand.vmem [shape: f32[1,64], index: 11, kind: input, shape index: {}]   ;;  %s8521_s12 = inlined_call_operand.vmem [shape: f32[64,256], index: 12, kind: input, shape index: {}]   ;;  %s8522_s13 = inlined_call_operand.vmem [shape: f32[1,256], index: 13, kind: input, shape index: {}]   ;;  %s8523_s14 = inlined_call_operand.vmem [shape: f32[256,64], index: 14, kind: input, shape index: {}]   ;;  %s8524_s15 = inlined_call_operand.vmem [shape: f32[1,64], index: 15, kind: input, shape index: {}]   ;;  %s8525_s16 = inlined_call_operand.hbm [shape: f32[2,16,64], index: 16, kind: output, shape index: {}]  }
   0x1   :  { %8554 = sst [smem:[#allocation30_spill]] %s8509_s0 }
   0x2   :  { %8555 = sst [smem:[#allocation31_spill]] %s8510_s1 }
   0x3   :  { %8556 = sst [smem:[#allocation32_spill]] %s8512_s3 }
   0x4   :  { %8557 = sst [smem:[#allocation33_spill]] %s8513_s4 }
   0x5   :  { %8558 = sst [smem:[#allocation34_spill]] %s8514_s5 }
   0x6   :  { %8559 = sst [smem:[#allocation35_spill]] %s8515_s6 }
   0x7   :  { %8560 = sst [smem:[#allocation36_spill]] %s8516_s7 }
   0x8   :  { %8561 = sst [smem:[#allocation37_spill]] %s8517_s8 }
   0x9   :  { %8562 = sst [smem:[#allocation38_spill]] %s8518_s9 }
   0xa   :  { %8563 = sst [smem:[#allocation39_spill]] %s8519_s10 }
   0xb   :  { %8564 = sst [smem:[#allocation40_spill]] %s8520_s11 }
   0xc   :  { %8565 = sst [smem:[#allocation41_spill]] %s8522_s13 }
   0xd   :  { %8566 = sst [smem:[#allocation42_spill]] %s8523_s14 }
   0xe   :  { %8567 = sst [smem:[#allocation43_spill]] %s8524_s15 }
   0xf   :  { %8568 = sst [smem:[#allocation44_spill]] %s8525_s16 }
  0x10   :  { %21 = vsyncpa [#allocation8], 0 }
  0x11   :  { %22 = vsyncpa [#allocation11], 0 }
  0x12   :  { %23 = vsyncpa [#allocation9], 0 }
  0x13   :  { %25 = vsyncpa [#allocation9 + $0x1], 0  ;;  %s7167_s21 = smov 0   ;;  %s7169_s22 = smov 0  }
  0x14   :  { %s7171_s23 = smov 0   ;;  %s7173_s24 = smov 0  }
  0x15   :  { %s7175_s25 = smov 0   ;;  %s7177_s26 = smov 0  }
  0x16   :  { %s7179_s27 = smov 0   ;;  %s7181_s28 = smov 0  }
  0x17   :  { %s7183_s29 = smov 0   ;;  %s7185_s30 = smov 0  }
  0x18   :  { %s7187_s0 = smov 0   ;;  %s7189_s17 = smov 0  }
  0x19   :  { %s7191_s18 = smov 0   ;;  %s7193_s19 = smov 0  }
  0x1a   :  { %s7195_s20 = smov 0  }
  0x1b LB: > { %8569 = sst [smem:[#allocation18_spill]] %s7008_s23  ;;  %s8529_s16 = sadd.s32 4294967295, %s7056_s20   ;;  %s7056_s20 = sphi %s7195_s20, %s31_s20   ;;  %s7052_s19 = sphi %s7193_s19, %s8646_s19   ;;  %s7048_s18 = sphi %s7191_s18, %s8645_s18   ;;  %s7044_s17 = sphi %s7189_s17, %s8636_s17   ;;  %s7040_s0 = sphi %s7187_s0, %s8635_s0   ;;  %s7036_s30 = sphi %s7185_s30, %s8644_s30   ;;  %s7032_s29 = sphi %s7183_s29, %s8634_s29   ;;  %s7028_s28 = sphi %s7181_s28, %s8633_s28   ;;  %s7024_s27 = sphi %s7179_s27, %s8632_s27   ;;  %s7020_s26 = sphi %s7177_s26, %s8631_s26   ;;  %s7016_s25 = sphi %s7175_s25, %s8643_s25   ;;  %s7012_s24 = sphi %s7173_s24, %s8642_s24   ;;  %s7008_s23 = sphi %s7171_s23, %s8629_s23   ;;  %s7004_s22 = sphi %s7169_s22, %s8641_s22   ;;  %s7000_s21 = sphi %s7167_s21, %s8640_s21  }
  0x1c   : > { %8570 = sst [smem:[#allocation19_spill]] %s7024_s27  ;;  %s43_s11 = sadd.s32 1, %s7044_s17 }
  0x1d   : > { %8571 = sst [smem:[#allocation20_spill]] %s7028_s28  ;;  %s46_s10 = sadd.s32 1, %s7048_s18 }
  0x1e   : > { %8572 = sst [smem:[#allocation21_spill]] %s7032_s29  ;;  %p44_p0 = scmp.ge.s32.totalorder %s43_s11, 2 }
  0x1f   : > { %8573 = sst [smem:[#allocation22_spill]] %s7044_s17  ;;  %s50_s9 = sadd.s32 1, %s7052_s19 }
  0x20   : > { %8574 = sst [smem:[#allocation23_spill]] %s7052_s19  ;;  %s57_s8 = sadd.s32 1, %s7028_s28 }
  0x21   : > { %p70_p1 = scmp.ne.s32.totalorder %s7024_s27, %s7020_s26  ;;  %s8648_s11 = smov (%p44_p0, %s43_s11), 0 }
  0x22   : > { %8575 = sst [smem:[#allocation24_spill]] %s8648_s11  ;;  %s8650_s10 = smov (!%p44_p0, %s46_s10), %s7048_s18 }
  0x23   : > { %p7252_p2 = scmp.eq.s32.totalorder %s8529_s16, 0  ;;  %s314_s15 = sadd.s32 1, %s7016_s25 }
  0x24   : > { %p48_p3 = scmp.ge.s32.totalorder %s8650_s10, 2  ;;  %p321_p4 = scmp.ne.s32.totalorder %s7016_s25, %s7012_s24 }
  0x25   : > { %s8576_s4 = scalar_select %p7252_p2, 1, 0 }
  0x26   : > { %p7261_p5 = por %p7252_p2, %p70_p1  ;;  %p322_p6 = scmp.eq.s32.totalorder %s7056_s20, 0 }
  0x27   : > { %s8652_s10 = smov (%p48_p3, %s8650_s10), 0  ;;  %s8654_s9 = smov (!%p48_p3, %s50_s9), %s7052_s19 }
  0x28   : > { %s8577_s26 = scalar_select %p7261_p5, 1, 0 }
  0x29   : > { %8578 = sst [smem:[#allocation25_spill]] %s8652_s10  ;;  %s311_s16 = ssub.s32 %s7048_s18, %s8652_s10 }
  0x2a   : > { %p7271_p7 = por %p322_p6, %p321_p4  ;;  %p52_p8 = scmp.ge.s32.totalorder %s8654_s9, 2 }
  0x2b   : > { %p312_p9 = scmp.eq.s32.totalorder %s311_s16, 0  ;;  %p410_p10 = scmp.eq.s32.totalorder %s7048_s18, 1 }
  0x2c   : > { %s8579_s27 = scalar_select %p7271_p7, 1, 0 }
  0x2d   : > { %p412_p11 = scmp.eq.s32.totalorder %s8652_s10, 1  ;;  %s8656_s9 = smov (%p52_p8, %s8654_s9), 0 }
  0x2e   : > { %8580 = sst [smem:[#allocation26_spill]] %s8656_s9  ;;  %s54_s7 = ssub.s32 %s7052_s19, %s8656_s9 }
  0x2f   : > { %s7280_s3 = scalar_select %p312_p9, %s7016_s25, %s314_s15  }
  0x30   : > { %s419_s6 = sadd.s32 1, %s7008_s23  ;;  %p55_p12 = scmp.eq.s32.totalorder %s54_s7, 0 }
  0x31   : > { %8581 = sst [smem:[#allocation27_spill]] %s7280_s3  ;;  %p429_p13 = scmp.ne.s32.totalorder %s7008_s23, %s7004_s22 }
  0x32   : > { %s411_s5 = scalar_select %p410_p10, %s7044_s17, 0 }
  0x33   : > { %s7289_s14 = scalar_select %p55_p12, %s7028_s28, %s57_s8  }
  0x34   : > { %s413_s13 = scalar_select %p412_p11, %s8648_s11, 0 }
  0x35   : > { %8582 = sst [smem:[#allocation28_spill]] %s7289_s14  ;;  %s8583_s29 = sadd.s32 4294967295, %s7056_s20  }
  0x36   : > { %p430_p0 = scmp.eq.s32.totalorder %s8583_s29, 7  ;;  %p435_p1 = scmp.ne.s32.totalorder %s7004_s22, %s7000_s21 }
  0x37   : > { %s415_s16 = ssub.s32 %s411_s5, %s413_s13  ;;  %s8584_s10 = sadd.s32 4294967294, %s7056_s20  }
  0x38   : > { %p436_p3 = scmp.eq.s32.totalorder %s8584_s10, 7  ;;  %s416_s15 = sor.u32 %s415_s16, %s54_s7 }
  0x39   : > { %p7298_p4 = por %p430_p0, %p429_p13  ;;  %p417_p6 = scmp.eq.s32.totalorder %s416_s15, 0 }
  0x3a   : > { %p7302_p8 = por %p436_p3, %p435_p1  ;;  %p6293_p9 = scmp.ge.s32.totalorder %s7056_s20, 1 }
  0x3b   : > { %s8585_s9 = scalar_select %p7298_p4, 1, 0 }
  0x3c   : > { %s8586_s19 = scalar_select %p7302_p8, 1, 0 }
  0x3d   : > { %p443_p10 = scmp.lt.s32.totalorder %s7056_s20, 9  ;;  %s7058_s5 = smov [#allocation10]  }
  0x3e   : > { %s7309_s8 = scalar_select %p417_p6, %s7008_s23, %s419_s6  }
  0x3f   : > { %p7311_p11 = pnand %p6293_p9, %p443_p10  ;;  %s472_s7 = sshll.u32 %s7058_s5, 4  ;;  %s473_s7 = int_to_ptr.vmem [resolvable:$true] %s472_s7 }
  0x40   : > { %8587 = sst [smem:[#allocation29_spill]] %s7309_s8  ;;  %s6831_s6 = scalar_lea.vmem %s473_s7, 16 }
  0x41   : > { %s8588_s29 = scalar_select %p7311_p11, 1, 0 }
  0x42   : > { %p6631_p12 = pneg %p7311_p11  ;;  %p6832_p3 = scmp.ne.s32.totalorder %s473_s7, %s6831_s6 }
  0x43   : > { %s6838_s16 = scalar_lea.vmem %s473_s7, 32  ;;  %p6839_p10 = scmp.lt.s32.totalorder %s473_s7, %s473_s7 }
  0x44   : > { %p7319_p13 = pnand %p6631_p12, %p7261_p5  ;;  %p7325_p0 = pnand %p6631_p12, %p7252_p2 }
  0x45   : > { %p6840_p8 = scmp.lt.s32.totalorder %s6838_s16, %s6831_s6 }
  0x46   : > { %s8590_s13 = scalar_select %p7325_p0, 1, 0 }
  0x47   : > { %p8545_p1 = pneg %p7325_p0  ;;  %p6841_p4 = por %p6840_p8, %p6839_p10 }
  0x49   : > { %p6834_p6 = pnand %p6832_p3, %p8545_p1 }
  0x4b   : > { %p6835_p9 = pneg %p6834_p6 }
  0x4d   : > { %p6842_p5 = pnand %p6841_p4, %p6835_p9 }
  0x4f   : > { %6845 = shalt.err (!%p6842_p5)
}
  0x50   : > { %s8591_s1 = sld [smem:[#allocation31_spill]]  ;;  %s6352_s11 = sshll.u32 %s7040_s0, 8 }
  0x51   : > { %s8592_s28 = sld [smem:[#allocation30_spill]]  ;;  %s7059_s6 = smov [#allocation7]  }
  0x52   : > { %s458_s16 = sshll.u32 %s7059_s6, 4  ;;  %p6848_p4 = pneg %p7319_p13  ;;  %s459_s16 = int_to_ptr.vmem [resolvable:$true] %s458_s16 }
  0x56   : > { %6637 = dma.hbm_to_vmem [thread:$0]  (!%p7325_p0), %s8591_s1, 16, %s473_s7, [#allocation11]  }
  0x57   : > { %s8593_s3 = smov %s8592_s28  ;;  %s7343_s8 = scalar_lea.hbm %s8592_s28, %s6352_s11 }
  0x58   : > { %s6846_s23 = scalar_lea.hbm %s7343_s8, 256  ;;  %s6851_s5 = scalar_lea.hbm %s8593_s3, 512 }
  0x59   : > { %p6847_p5 = scmp.ne.s32.totalorder %s7343_s8, %s6846_s23  ;;  %p6852_p3 = scmp.lt.s32.totalorder %s7343_s8, %s8593_s3 }
  0x5a   : > { %p6853_p6 = scmp.lt.s32.totalorder %s6851_s5, %s6846_s23 }
  0x5b   : > { %p6849_p8 = pnand %p6848_p4, %p6847_p5 }
  0x5c   : > { %p6854_p9 = por %p6853_p6, %p6852_p3 }
  0x5d   : > { %p6850_p12 = pneg %p6849_p8 }
  0x5f   : > { %p6855_p10 = pnand %p6854_p9, %p6850_p12 }
  0x61   : > { %6858 = shalt.err (!%p6855_p10)
}
  0x62   : > { %s6859_s11 = scalar_lea.vmem %s459_s16, 256  ;;  %p6867_p7 = scmp.lt.s32.totalorder %s459_s16, %s459_s16 }
  0x63   : > { %p6860_p1 = scmp.ne.s32.totalorder %s459_s16, %s6859_s11  ;;  %p6868_p0 = scmp.lt.s32.totalorder %s6859_s11, %s6859_s11 }
  0x65   : > { %p6862_p2 = pnand %p6860_p1, %p6848_p4  ;;  %p6869_p5 = por %p6868_p0, %p6867_p7 }
  0x67   : > { %p6863_p11 = pneg %p6862_p2 }
  0x69   : > { %p6870_p8 = pnand %p6869_p5, %p6863_p11 }
  0x6b   : > { %6873 = shalt.err (!%p6870_p8)
}
  0x6c   : > { %s7060_s28 = smov 128   ;;  %s7061_s17 = smov 8  }
  0x6d   : > { %6634 = dma.hbm_to_vmem [thread:$0]  (!%p7319_p13), %s7343_s8, 256, %s459_s16, [#allocation8], %s7060_s28, %s7060_s28, %s7061_s17  }
  0x6e   : > { %s7062_s1 = smov [#allocation12]   ;;  %p8594_p3 = scmp.ne.s32.totalorder %s8590_s13, 0 }
  0x6f   : > { %s483_s23 = sshll.u32 %s7062_s1, 4  ;;  %s484_s23 = int_to_ptr.vmem [resolvable:$true] %s483_s23 }
  0x70   : > { %s6885_s6 = scalar_lea.vmem %s484_s23, 16  ;;  %p8595_p1 = pneg %p8594_p3 }
  0x71   : > { %p6886_p12 = scmp.ne.s32.totalorder %s484_s23, %s6885_s6  ;;  %s6892_s15 = scalar_lea.vmem %s484_s23, 32 }
  0x72   : > { %p6893_p7 = scmp.lt.s32.totalorder %s484_s23, %s484_s23  ;;  %p6894_p11 = scmp.lt.s32.totalorder %s6892_s15, %s6885_s6 }
  0x73   : > { %p6888_p2 = pnand %p6886_p12, %p8595_p1 }
  0x74   : > { %p6895_p0 = por %p6894_p11, %p6893_p7 }
  0x75   : > { %p6889_p4 = pneg %p6888_p2 }
  0x77   : > { %p6896_p6 = pnand %p6895_p0, %p6889_p4 }
  0x79   : > { %6899 = shalt.err (!%p6896_p6)
}
  0x7a   : > { %6640 = dma.hbm_to_vmem [thread:$0]  (!%p8594_p3), %s8511_s2, 16, %s484_s23, [#allocation11]  }
  0x7b   : > { %p6298_p13 = scmp.ge.s32.totalorder %s7056_s20, 8 }
  0x7c   : > { %p8596_p9 = scmp.ne.s32.totalorder (!%p6298_p13), %s8579_s27, 0 }
  0x7d   : > { %520 = sbr.rel (%p6298_p13) target bundleno = 138 (0x8a), region = 68 }
  0x82   : > { %523 = sbr.rel (!%p8596_p9) target bundleno = 138 (0x8a), region = 72  ;;  %s525_s8 = sand.u32 (%p8596_p9), 1, %s7016_s25  }
  0x83   : > { %s6300_s16 = sshll.u32 (%p8596_p9), %s7048_s18, 3  ;;  %s6299_s5 = sshll.u32 (%p8596_p9), %s525_s8, 6 }
  0x84   : > { %s529_s28 = scalar_lea.vmem (%p8596_p9), %s8521_s12, %s6300_s16  ;;  %s527_s13 = scalar_lea.vmem (%p8596_p9), [#allocation13], %s6299_s5 }
  0x85   : > { %v572_v0 = vld [vmem:[%s529_s28] sm:$0xff] (%p8596_p9)  ;;  %v574_v1 = vld [vmem:[%s529_s28 + $0x10] sm:$0xff] (%p8596_p9) }
  0x86   : > { %v576_v2 = vld [vmem:[%s529_s28 + $0x20] sm:$0xff] (%p8596_p9)  ;;  %573 = vst [vmem:[%s527_s13] sm:$0xff] (%p8596_p9), %v572_v0  ;;  %575 = vst [vmem:[%s527_s13 + $0x8] sm:$0xff] (%p8596_p9), %v574_v1  ;;  %v578_v3 = vld [vmem:[%s529_s28 + $0x30] sm:$0xff] (%p8596_p9) }
  0x87   : > { %577 = vst [vmem:[%s527_s13 + $0x10] sm:$0xff] %v576_v2  ;;  %v580_v4 = vld [vmem:[%s529_s28 + $0x40] sm:$0xff]  ;;  %v582_v5 = vld [vmem:[%s529_s28 + $0x50] sm:$0xff]  ;;  %579 = vst [vmem:[%s527_s13 + $0x18] sm:$0xff] %v578_v3 }
  0x88   : > { %581 = vst [vmem:[%s527_s13 + $0x20] sm:$0xff] %v580_v4  ;;  %583 = vst [vmem:[%s527_s13 + $0x28] sm:$0xff] %v582_v5  ;;  %v584_v6 = vld [vmem:[%s529_s28 + $0x60] sm:$0xff]  ;;  %v586_v7 = vld [vmem:[%s529_s28 + $0x70] sm:$0xff] }
  0x89   : > { %585 = vst [vmem:[%s527_s13 + $0x30] sm:$0xff] %v584_v6  ;;  %587 = vst [vmem:[%s527_s13 + $0x38] sm:$0xff] %v586_v7 }
  0x8a PF: > { %p8597_p10 = scmp.ne.s32.totalorder %s8588_s29, 0 }
  0x8b   : > { %p8598_p5 = scmp.ne.s32.totalorder (!%p8597_p10), %s8577_s26, 0 }
  0x8c   : > { %611 = sbr.rel (%p8597_p10) target bundleno = 3511 (0xdb7), region = 118 }
  0x91   : > { %6987 = dma.done.wait (%p8598_p5), [#allocation8], 256  }
  0x92   : > { %6989 = vsyncadd (%p8598_p5), [#allocation8], 4294967040  ;;  %p8599_p8 = scmp.ne.s32.totalorder %s8576_s4, 0 }
  0x94   : > { %6991 = dma.done.wait (%p8599_p8), [#allocation11], 32  }
  0x95   : > { %6993 = vsyncadd (%p8599_p8), [#allocation11], 4294967264  ;;  %s8600_s27 = sld [smem:[#allocation21_spill]]  ;;  %s626_s29 = sand.u32 1, %s7012_s24  }
  0x96   : > { %s8551_s17 = sand.u32 1, %s7004_s22   ;;  %s6304_s1 = sshll.u32 %s626_s29, 6 }
  0x97   : > { %s7389_s26 = sshll.u32 %s8551_s17, 3  ;;  %p683_p12 = scmp.lt.s32.totalorder %s7036_s30, 1 }
  0x98   : > { %s6306_s23 = sshll.u32 %s7036_s30, 4  ;;  %p695_p1 = scmp.eq.s32.totalorder %s7036_s30, 0 }
  0x99   : > { %p687_p3 = scmp.lt.s32.totalorder %s6306_s23, 31  ;;  %s8602_s14 = sld [smem:[#allocation42_spill]] }
  0x9a   : > { %s7397_s6 = scalar_select %p683_p12, %s7036_s30, 1 }
  0x9b   : > { %s7394_s4 = sshll.u32 %s8600_s27, 3  ;;  %s8658_s23 = smov (!%p687_p3, %s6306_s23), 31 }
  0x9c   : > { %s6307_s24 = sshll.u32 %s8658_s23, 3  ;;  %p696_p2 = scmp.eq.s32.totalorder %s8600_s27, 0 }
  0x9d   : > { %s7410_s28 = scalar_lea.vmem [#allocation13], %s6304_s1 }
  0x9e   : > { %p697_p4 = pnand %p696_p2, %p695_p1 }
  0x9f   : > { %s7408_s11 = scalar_lea.vmem %s8602_s14, %s6307_s24  ;;  %s8603_s1 = sld [smem:[#allocation34_spill]] (!%p697_p4) }
  0xa0   : > { %700 = sbr.rel (%p697_p4) target bundleno = 825 (0x339), region = 138  ;;  %s8604_s7 = sld [smem:[#allocation35_spill]] (!%p697_p4) }
  0xa1   : > { %s7063_s23 = smov (!%p697_p4), 112   ;;  %s7064_s15 = smov (!%p697_p4), 96  }
  0xa2   : > { %s7065_s10 = smov (!%p697_p4), 80   ;;  %s8605_s16 = sld [smem:[#allocation36_spill]] (!%p697_p4) }
  0xa5   : > { %v701_v8 = vld [vmem:[#allocation7] sm:$0xff]  ;;  %vm705_vm0 = vcmask 523264   ;;  %v702_v9 = vld [vmem:[#allocation7 + $0x8] sm:$0xff]  ;;  %v754_v26 = vld [vmem:[%s8603_s1 + $0x28] sm:$0xff]  ;;  %v7066_v61 = vmov 1983009808   ;;  %v953_v63 = vlaneseq }
  0xa6   : > { %v706_v10 = vsel %vm705_vm0, %v701_v8, 0.0  ;;  %v709_v11 = vsel %vm705_vm0, %v702_v9, 0.0  ;;  %v756_v22 = vld [vmem:[%s8603_s1 + $0x38] sm:$0xff]  ;;  %v755_v24 = vld [vmem:[%s8603_s1 + $0x30] sm:$0xff]  ;;  %v843_v27 = vld [vmem:[%s8604_s7 + $0x28] sm:$0xff]  ;;  %v951_v62 = vunpack.c.l.s4 %v7066_v61  ;;  %vm1084_vm1 = vcmask 125952  }
  0xa7   : > { %707 = vadd.xlane.f32.xlu0 %v706_v10  ;;  %v845_v23 = vld [vmem:[%s8604_s7 + $0x38] sm:$0xff]  ;;  %6441 = vmatprep.subr.mxu0 %v756_v22  ;;  %v844_v25 = vld [vmem:[%s8604_s7 + $0x30] sm:$0xff]  ;;  %v753_v28 = vld [vmem:[%s8603_s1 + $0x20] sm:$0xff]  ;;  %v7067_v2 = vmov 1934713408   ;;  %v954_v5 = vshrl.u32 %v953_v63, 7 }
  0xa8   : > { %6460 = vmatprep.subr.mxu1 %v845_v23  ;;  %6442 = vmatpush3.msra.mxu0 %v756_v22  ;;  %v842_v29 = vld [vmem:[%s8604_s7 + $0x20] sm:$0xff]  ;;  %v752_v30 = vld [vmem:[%s8603_s1 + $0x18] sm:$0xff]  ;;  %v751_v32 = vld [vmem:[%s8603_s1 + $0x10] sm:$0xff]  ;;  %v983_v3 = vunpack.c.l.s4 %v7067_v2  ;;  %v952_v4 = vunpack.c.0.s8 %v951_v62 }
  0xa9   : > { %6461 = vmatpush3.msra.mxu1 %v845_v23  ;;  %6443 = vmatprep.subr.mxu0 %v755_v24  ;;  %v841_v31 = vld [vmem:[%s8604_s7 + $0x18] sm:$0xff]  ;;  %v840_v33 = vld [vmem:[%s8604_s7 + $0x10] sm:$0xff]  ;;  %v750_v34 = vld [vmem:[%s8603_s1 + $0x8] sm:$0xff] }
  0xaa   : > { %6462 = vmatprep.subr.mxu1 %v844_v25  ;;  %6444 = vmatpush3.msra.mxu0 %v755_v24  ;;  %v839_v35 = vld [vmem:[%s8604_s7 + $0x8] sm:$0xff]  ;;  %v749_v36 = vld [vmem:[%s8603_s1] sm:$0xff] }
  0xab   : > { %710 = vadd.xlane.f32.xlu0 %v709_v11  ;;  %6463 = vmatpush3.msra.mxu1 %v844_v25  ;;  %v838_v37 = vld [vmem:[%s8604_s7] sm:$0xff] }
  0xac   : > { %6445 = vmatprep.subr.mxu0 %v754_v26  ;;  %6464 = vmatprep.subr.mxu1 %v843_v27  ;;  %v6309_v45 = vld [vmem:[#allocation10] ss:$0 sm:$0xff]  ;;  %v6310_v47 = vld [vmem:[#allocation12] ss:$0 sm:$0xff] }
  0xad   : > { %6446 = vmatpush3.msra.mxu0 %v754_v26  ;;  %6465 = vmatpush3.msra.mxu1 %v843_v27  ;;  %v6313_v58 = vld [vmem:[%s8605_s16] ss:$0 sm:$0xff] }
  0xae   : > { %6447 = vmatprep.subr.mxu0 %v753_v28  ;;  %6466 = vmatprep.subr.mxu1 %v842_v29 }
  0xaf   : > { %6448 = vmatpush3.msra.mxu0 %v753_v28  ;;  %6467 = vmatpush3.msra.mxu1 %v842_v29 }
  0xb0   : > { %6449 = vmatprep.subr.mxu0 %v752_v30  ;;  %6468 = vmatprep.subr.mxu1 %v841_v31 }
  0xb1   : > { %6450 = vmatpush3.msra.mxu0 %v752_v30  ;;  %6469 = vmatpush3.msra.mxu1 %v841_v31 }
  0xb2   : > { %6451 = vmatprep.subr.mxu0 %v751_v32  ;;  %6470 = vmatprep.subr.mxu1 %v840_v33 }
  0xb3   : > { %6452 = vmatpush3.msra.mxu0 %v751_v32  ;;  %6471 = vmatpush3.msra.mxu1 %v840_v33 }
  0xb4   : > { %6453 = vmatprep.subr.mxu0 %v750_v34  ;;  %6472 = vmatprep.subr.mxu1 %v839_v35 }
  0xb5   : > { %6454 = vmatpush3.msra.mxu0 %v750_v34  ;;  %6473 = vmatpush3.msra.mxu1 %v839_v35 }
  0xb6   : > { %6455 = vmatprep.subr.mxu0 %v749_v36  ;;  %6474 = vmatprep.subr.mxu1 %v838_v37 }
  0xb7   : > { %6456 = vmatpush3.msra.mxu0 %v749_v36  ;;  %6475 = vmatpush3.msra.mxu1 %v838_v37 }
 0x130   : > { %v708_v12 = vpop.xlane.xlu0 %707 }
 0x131   : > { %v713_v13 = vmul.f32 0.015625, %v708_v12 }
 0x133   : > { %v7415_v14 = vsub.f32 %v701_v8, %v713_v13  ;;  %v984_v8 = vunpack.c.0.s8 %v983_v3 }
 0x134   : > { %v711_v15 = vpop.xlane.xlu0 %710 }
 0x135   : > { %v714_v16 = vmul.f32 0.015625, %v711_v15  ;;  %v717_v17 = vmul.f32 %v7415_v14, %v7415_v14 }
 0x137   : > { %v7419_v18 = vsub.f32 %v702_v9, %v714_v16  ;;  %v719_v19 = vsel %vm705_vm0, %v717_v17, 0.0  ;;  %v7492_v9 = vsub.s32 %v952_v4, %v954_v5  ;;  %v7494_v17 = vsub.s32 %v984_v8, %v954_v5 }
 0x138   : > { %720 = vadd.xlane.f32.xlu1 %v719_v19 }
 0x139   : > { %v718_v20 = vmul.f32 %v7419_v18, %v7419_v18 }
 0x13b   : > { %v722_v21 = vsel %vm705_vm0, %v718_v20, 0.0 }
 0x13c   : > { %723 = vadd.xlane.f32.xlu1 %v722_v21 }
 0x1c1   : > { %v721_v38 = vpop.xlane.xlu1 %720 }
 0x1c2   : > { %v725_v39 = vmul.f32 0.015625, %v721_v38 }
 0x1c4   : > { %v727_v40 = vadd.f32 1e-05, %v725_v39 }
 0x1c5   : > { %v724_v41 = vpop.xlane.xlu1 %723 }
 0x1c6   : > { %6793 = vrsqrt.f32 %v727_v40  ;;  %v726_v42 = vmul.f32 0.015625, %v724_v41 }
 0x1c8   : > { %v728_v43 = vadd.f32 1e-05, %v726_v42  ;;  %v7068_v42 = vmov 0.0  }
 0x1ca   : > { %6795 = vrsqrt.f32 %v728_v43 }
 0x1d3   : > { %v6794_v44 = vpop.eup %6793 }
 0x1d4   : > { %v731_v46 = vmul.f32 %v6794_v44, %v7415_v14 }
 0x1d6   : > { %v739_v48 = vmul.f32 %v6309_v45, %v731_v46 }
 0x1d7   : > { %v6796_v49 = vpop.eup %6795 }
 0x1d8   : > { %v732_v50 = vmul.f32 %v6796_v49, %v7419_v18  ;;  %v747_v51 = vadd.f32 %v6310_v47, %v739_v48 }
 0x1da   : > { %v740_v52 = vmul.f32 %v6309_v45, %v732_v50  ;;  %6457 = vmatprep.mubr.msk.f32.mxu0 %vm705_vm0, %v747_v51  ;;  %6476 = vmatprep.mubr.msk.f32.mxu1 %vm705_vm0, %v747_v51 }
 0x1dc   : > { %v748_v53 = vadd.f32 %v6310_v47, %v740_v52 }
 0x1de   : > { %6458 = vmatmul.mubr.msk.f32.vlgmr.msra.gmra.mxu0 %vm705_vm0, %v748_v53  ;;  %6477 = vmatmul.mubr.msk.f32.vlgmr.msra.gmra.mxu1 %vm705_vm0, %v748_v53 }
 0x29e   : > { %v6459_v54 = vpop.f32.mrf.mxu0  ;;  %v6478_v55 = vpop.f32.mrf.mxu1 }
 0x29f   : > { %932 = vrot.lane.b32.xlu1 %v6459_v54, %s7063_s23  ;;  %v7485_v60 = vadd.f32 %v6478_v55, %v6313_v58 }
 0x2a0   : > { %v829_v56 = vpop.f32.mrf.mxu0  ;;  %v919_v57 = vpop.f32.mrf.mxu1 }
 0x2a1   : > { %930 = vrot.lane.b32.xlu0 %v829_v56, %s7063_s23  ;;  %v7482_v59 = vadd.f32 %v6313_v58, %v919_v57 }
 0x2a3   : > { %938 = vrot.lane.b32.xlu1 %v6459_v54, %s7064_s15 }
 0x2a5   : > { %942 = vrot.lane.b32.xlu0 %v829_v56, %s7065_s10 }
 0x2a7   : > { %944 = vrot.lane.b32.xlu1 %v6459_v54, %s7065_s10 }
 0x2a9   : > { %1103 = vrot.lane.b32.xlu0 %v7482_v59, %s7063_s23 }
 0x2ab   : > { %936 = vrot.lane.b32.xlu1 %v829_v56, %s7064_s15 }
 0x2ad   : > { %1109 = vrot.lane.b32.xlu0 %v7482_v59, %s7064_s15 }
 0x2af   : > { %1105 = vrot.lane.b32.xlu1 %v7485_v60, %s7063_s23 }
 0x2b1   : > { %1115 = vrot.lane.b32.xlu0 %v7482_v59, %s7065_s10 }
 0x2b3   : > { %1111 = vrot.lane.b32.xlu1 %v7485_v60, %s7064_s15 }
 0x2b7   : > { %1117 = vrot.lane.b32.xlu1 %v7485_v60, %s7065_s10 }
 0x311   : > { %v933_v0 = vpop.permute.xlu1 %932 }
 0x313   : > { %v931_v1 = vpop.permute.xlu0 %930 }
 0x315   : > { %v939_v6 = vpop.permute.xlu1 %938 }
 0x316   : > { %v1016_v10 = vcombine.low %v6459_v54, %v939_v6  ;;  %v1017_v11 = vcombine.high %v6459_v54, %v939_v6 }
 0x317   : > { %v943_v7 = vpop.permute.xlu0 %942 }
 0x318   : > { %v964_v15 = vcombine.low %v931_v1, %v943_v7  ;;  %v965_v16 = vcombine.high %v931_v1, %v943_v7  ;;  %v1024_v19 = vrot.slane %v1016_v10, %v7492_v9  ;;  %v1031_v20 = vrot.slane %v1017_v11, %v7492_v9 }
 0x319   : > { %v945_v12 = vpop.permute.xlu1 %944 }
 0x31a   : > { %v1032_v13 = vcombine.low %v933_v0, %v945_v12  ;;  %v1033_v14 = vcombine.high %v933_v0, %v945_v12  ;;  %v972_v28 = vrot.slane %v964_v15, %v7492_v9  ;;  %v979_v29 = vrot.slane %v965_v16, %v7492_v9 }
 0x31b   : > { %v1104_v18 = vpop.permute.xlu0 %1103 }
 0x31c   : > { %v1040_v21 = vrot.slane %v1032_v13, %v7492_v9  ;;  %v1047_v22 = vrot.slane %v1033_v14, %v7492_v9 }
 0x31d   : > { %v937_v23 = vpop.permute.xlu1 %936 }
 0x31e   : > { %v1048_v24 = vcombine.low %v1024_v19, %v1040_v21  ;;  %v1049_v25 = vcombine.high %v1024_v19, %v1040_v21  ;;  %v1064_v26 = vcombine.low %v1031_v20, %v1047_v22  ;;  %v1065_v27 = vcombine.high %v1031_v20, %v1047_v22 }
 0x31f   : > { %v948_v30 = vcombine.low %v829_v56, %v937_v23  ;;  %v949_v31 = vcombine.high %v829_v56, %v937_v23  ;;  %v1110_v32 = vpop.permute.xlu0 %1109 }
 0x320   : > { %v1056_v33 = vrot.slane %v1048_v24, %v7494_v17  ;;  %v1063_v34 = vrot.slane %v1049_v25, %v7494_v17  ;;  %v1072_v35 = vrot.slane %v1064_v26, %v7494_v17  ;;  %v1079_v36 = vrot.slane %v1065_v27, %v7494_v17 }
 0x321   : > { %v956_v37 = vrot.slane %v948_v30, %v7492_v9  ;;  %v963_v38 = vrot.slane %v949_v31, %v7492_v9  ;;  %v1121_v39 = vcombine.low %v7482_v59, %v1110_v32  ;;  %v1122_v40 = vcombine.high %v7482_v59, %v1110_v32  ;;  %v7510_v41 = vpop.permute.xlu1 %1105 }
 0x322   : > { %v1080_v43 = vcombine.high %v1056_v33, %v7068_v42  ;;  %v1081_v44 = vcombine.high %v1063_v34, %v7068_v42  ;;  %v1082_v45 = vcombine.high %v1072_v35, %v7068_v42  ;;  %v1083_v46 = vcombine.high %v1079_v36, %v7068_v42  ;;  %1093 = vst.msk [vmem:[#allocation2 + $0x20] sm:$0xf] %vm1084_vm1, %v1056_v33 }
 0x323   : > { %1095 = vst.msk [vmem:[#allocation2 + $0x28] sm:$0xf] %vm1084_vm1, %v1063_v34  ;;  %1097 = vst.msk [vmem:[#allocation2 + $0x30] sm:$0xf] %vm1084_vm1, %v1072_v35  ;;  %v980_v47 = vcombine.low %v956_v37, %v972_v28  ;;  %v981_v48 = vcombine.high %v956_v37, %v972_v28  ;;  %v996_v49 = vcombine.low %v963_v38, %v979_v29  ;;  %v1116_v51 = vpop.permute.xlu0 %1115 }
 0x324   : > { %1099 = vst.msk [vmem:[#allocation2 + $0x38] sm:$0xf] %vm1084_vm1, %v1079_v36  ;;  %v997_v50 = vcombine.high %v963_v38, %v979_v29  ;;  %1094 = vst.msk [vmem:[#allocation2 + $0x24] sm:$0xf] %vm1084_vm1, %v1080_v43  ;;  %v1137_v52 = vcombine.low %v1104_v18, %v1116_v51  ;;  %v1138_v53 = vcombine.high %v1104_v18, %v1116_v51 }
 0x325   : > { %1096 = vst.msk [vmem:[#allocation2 + $0x2c] sm:$0xf] %vm1084_vm1, %v1081_v44  ;;  %1098 = vst.msk [vmem:[#allocation2 + $0x34] sm:$0xf] %vm1084_vm1, %v1082_v45  ;;  %v988_v54 = vrot.slane %v980_v47, %v7494_v17  ;;  %v995_v55 = vrot.slane %v981_v48, %v7494_v17  ;;  %v1004_v56 = vrot.slane %v996_v49, %v7494_v17  ;;  %v1112_v58 = vpop.permute.xlu1 %1111 }
 0x326   : > { %1100 = vst.msk [vmem:[#allocation2 + $0x3c] sm:$0xf] %vm1084_vm1, %v1083_v46  ;;  %v1011_v57 = vrot.slane %v997_v50, %v7494_v17  ;;  %v1129_v59 = vrot.slane %v1121_v39, %v7492_v9  ;;  %v1136_v61 = vrot.slane %v1122_v40, %v7492_v9  ;;  %v1145_v62 = vrot.slane %v1137_v52, %v7492_v9 }
 0x327   : > { %v1152_v63 = vrot.slane %v1138_v53, %v7492_v9  ;;  %v1012_v0 = vcombine.high %v988_v54, %v7068_v42  ;;  %v1013_v1 = vcombine.high %v995_v55, %v7068_v42  ;;  %v1014_v2 = vcombine.high %v1004_v56, %v7068_v42  ;;  %1085 = vst.msk [vmem:[#allocation2] sm:$0xf] %vm1084_vm1, %v988_v54 }
 0x328   : > { %v1015_v3 = vcombine.high %v1011_v57, %v7068_v42  ;;  %1087 = vst.msk [vmem:[#allocation2 + $0x8] sm:$0xf] %vm1084_vm1, %v995_v55  ;;  %1089 = vst.msk [vmem:[#allocation2 + $0x10] sm:$0xf] %vm1084_vm1, %v1004_v56  ;;  %v1153_v4 = vcombine.low %v1129_v59, %v1145_v62  ;;  %v1154_v5 = vcombine.high %v1129_v59, %v1145_v62 }
 0x329   : > { %1091 = vst.msk [vmem:[#allocation2 + $0x18] sm:$0xf] %vm1084_vm1, %v1011_v57  ;;  %v1169_v6 = vcombine.low %v1136_v61, %v1152_v63  ;;  %v1170_v7 = vcombine.high %v1136_v61, %v1152_v63  ;;  %1086 = vst.msk [vmem:[#allocation2 + $0x4] sm:$0xf] %vm1084_vm1, %v1012_v0  ;;  %v1189_v8 = vcombine.low %v7485_v60, %v1112_v58  ;;  %v1118_v11 = vpop.permute.xlu1 %1117 }
 0x32a   : > { %1088 = vst.msk [vmem:[#allocation2 + $0xc] sm:$0xf] %vm1084_vm1, %v1013_v1  ;;  %1090 = vst.msk [vmem:[#allocation2 + $0x14] sm:$0xf] %vm1084_vm1, %v1014_v2  ;;  %v1190_v10 = vcombine.high %v7485_v60, %v1112_v58  ;;  %v1161_v12 = vrot.slane %v1153_v4, %v7494_v17  ;;  %v1168_v13 = vrot.slane %v1154_v5, %v7494_v17 }
 0x32b   : > { %1092 = vst.msk [vmem:[#allocation2 + $0x1c] sm:$0xf] %vm1084_vm1, %v1015_v3  ;;  %v1177_v14 = vrot.slane %v1169_v6, %v7494_v17  ;;  %v1184_v15 = vrot.slane %v1170_v7, %v7494_v17  ;;  %v1205_v16 = vcombine.low %v7510_v41, %v1118_v11  ;;  %v1206_v18 = vcombine.high %v7510_v41, %v1118_v11 }
 0x32c   : > { %v1185_v19 = vcombine.high %v1161_v12, %v7068_v42  ;;  %v1186_v20 = vcombine.high %v1168_v13, %v7068_v42  ;;  %1257 = vst.msk [vmem:[#allocation3] sm:$0xf] %vm1084_vm1, %v1161_v12  ;;  %1259 = vst.msk [vmem:[#allocation3 + $0x8] sm:$0xf] %vm1084_vm1, %v1168_v13  ;;  %v1197_v22 = vrot.slane %v1189_v8, %v7492_v9 }
 0x32d   : > { %v1187_v21 = vcombine.high %v1177_v14, %v7068_v42  ;;  %v1188_v60 = vcombine.high %v1184_v15, %v7068_v42  ;;  %1261 = vst.msk [vmem:[#allocation3 + $0x10] sm:$0xf] %vm1084_vm1, %v1177_v14  ;;  %1263 = vst.msk [vmem:[#allocation3 + $0x18] sm:$0xf] %vm1084_vm1, %v1184_v15  ;;  %v1204_v23 = vrot.slane %v1190_v10, %v7492_v9 }
 0x32e   : > { %v1213_v24 = vrot.slane %v1205_v16, %v7492_v9  ;;  %v1220_v25 = vrot.slane %v1206_v18, %v7492_v9  ;;  %1258 = vst.msk [vmem:[#allocation3 + $0x4] sm:$0xf] %vm1084_vm1, %v1185_v19  ;;  %1260 = vst.msk [vmem:[#allocation3 + $0xc] sm:$0xf] %vm1084_vm1, %v1186_v20 }
 0x32f   : > { %1262 = vst.msk [vmem:[#allocation3 + $0x14] sm:$0xf] %vm1084_vm1, %v1187_v21  ;;  %1264 = vst.msk [vmem:[#allocation3 + $0x1c] sm:$0xf] %vm1084_vm1, %v1188_v60 }
 0x330   : > { %v1221_v26 = vcombine.low %v1197_v22, %v1213_v24  ;;  %v1222_v27 = vcombine.high %v1197_v22, %v1213_v24  ;;  %v1237_v28 = vcombine.low %v1204_v23, %v1220_v25  ;;  %v1238_v29 = vcombine.high %v1204_v23, %v1220_v25 }
 0x332   : > { %v1229_v30 = vrot.slane %v1221_v26, %v7494_v17  ;;  %v1236_v31 = vrot.slane %v1222_v27, %v7494_v17  ;;  %v1245_v32 = vrot.slane %v1237_v28, %v7494_v17  ;;  %v1252_v9 = vrot.slane %v1238_v29, %v7494_v17 }
 0x334   : > { %v1253_v33 = vcombine.high %v1229_v30, %v7068_v42  ;;  %v1254_v34 = vcombine.high %v1236_v31, %v7068_v42  ;;  %v1255_v35 = vcombine.high %v1245_v32, %v7068_v42  ;;  %v1256_v36 = vcombine.high %v1252_v9, %v7068_v42  ;;  %1265 = vst.msk [vmem:[#allocation3 + $0x20] sm:$0xf] %vm1084_vm1, %v1229_v30 }
 0x335   : > { %1267 = vst.msk [vmem:[#allocation3 + $0x28] sm:$0xf] %vm1084_vm1, %v1236_v31  ;;  %1269 = vst.msk [vmem:[#allocation3 + $0x30] sm:$0xf] %vm1084_vm1, %v1245_v32 }
 0x336   : > { %1271 = vst.msk [vmem:[#allocation3 + $0x38] sm:$0xf] %vm1084_vm1, %v1252_v9  ;;  %1266 = vst.msk [vmem:[#allocation3 + $0x24] sm:$0xf] %vm1084_vm1, %v1253_v33 }
 0x337   : > { %1268 = vst.msk [vmem:[#allocation3 + $0x2c] sm:$0xf] %vm1084_vm1, %v1254_v34  ;;  %1270 = vst.msk [vmem:[#allocation3 + $0x34] sm:$0xf] %vm1084_vm1, %v1255_v35 }
 0x338   : > { %1272 = vst.msk [vmem:[#allocation3 + $0x3c] sm:$0xf] %vm1084_vm1, %v1256_v36 }
 0x339 PF: > { %p6316_p7 = scmp.ne.s32.totalorder %s7036_s30, 0 }
 0x33a   : > { %s1276_s5 = scalar_lea.vmem (!%p6316_p7), [#allocation7], %s7394_s4  ;;  %s5916_s14 = scalar_lea.vmem (!%p6316_p7), [#allocation6], %s7394_s4 }
 0x33b   : > { %1275 = sbr.rel (%p6316_p7) target bundleno = 3043 (0xbe3), region = 142  ;;  %s8606_s23 = sld [smem:[#allocation32_spill]] (!%p6316_p7) }
 0x33c   : > { %s8608_s10 = sld [smem:[#allocation33_spill]] (!%p6316_p7)  ;;  %s7073_s24 = smov (!%p6316_p7), 112  }
 0x33d   : > { %s7074_s17 = smov (!%p6316_p7), 96   ;;  %s7075_s16 = smov (!%p6316_p7), 80  }
 0x33e   : > { %s8612_s29 = sld [smem:[#allocation37_spill]] (!%p6316_p7)  ;;  %s7078_s27 = smov (!%p6316_p7), 48  }
 0x33f   : > { %s5914_s8 = scalar_lea.vmem (!%p6316_p7), [#allocation5], %s7394_s4 }
 0x340   : > { %vm1280_vm2 = vcmask 523264   ;;  %v1404_v17 = vld [vmem:[#allocation2] sm:$0xf]  ;;  %v8552_v38 = vmov 0.0   ;;  %v1405_v40 = vld [vmem:[#allocation2 + $0x4] sm:$0xf]  ;;  %v1937_v6 = vlaneseq }
 0x341   : > { %v1277_v37 = vld [vmem:[%s1276_s5] sm:$0xff]  ;;  %5917 = vst.msk [vmem:[%s5916_s14] sm:$0xff] %vm1280_vm2, %v8552_v38  ;;  %1420 = vxpose.xlu1.b32.start.end [1/1] (short) (narrow) %v1404_v17, 16  ;;  %6479 = vmatprep.subr.mxu0 %v8552_v38  ;;  %v1407_v41 = vld [vmem:[#allocation2 + $0xc] sm:$0xf]  ;;  %s8607_s15 = smov %s8606_s23  ;;  %v1316_v7 = vld [vmem:[%s8606_s23 + $0x38] sm:$0xff] }
 0x342   : > { %v1281_v39 = vsel %vm1280_vm2, %v1277_v37, 0.0  ;;  %6498 = vmatprep.subr.mxu1 %v8552_v38  ;;  %v1408_v42 = vld [vmem:[#allocation2 + $0x10] sm:$0xf]  ;;  %v1409_v43 = vld [vmem:[#allocation2 + $0x14] sm:$0xf]  ;;  %6480 = vmatpush3.msra.mxu0 %v1316_v7  ;;  %vm7071_vm3 = vmmov 0  }
 0x343   : > { %1282 = vadd.xlane.f32.xlu0 %v1281_v39  ;;  %v1410_v44 = vld [vmem:[#allocation2 + $0x18] sm:$0xf]  ;;  %v1411_v45 = vld [vmem:[#allocation2 + $0x1c] sm:$0xf]  ;;  %v1412_v46 = vld [vmem:[#allocation2 + $0x20] sm:$0xf]  ;;  %6495 = vmatprep.mubr.msk.f32.mxu0 %vm7071_vm3, %v8552_v38 }
 0x344   : > { %v1413_v47 = vld [vmem:[#allocation2 + $0x24] sm:$0xf]  ;;  %v1414_v48 = vld [vmem:[#allocation2 + $0x28] sm:$0xf]  ;;  %v1415_v49 = vld [vmem:[#allocation2 + $0x2c] sm:$0xf]  ;;  %6481 = vmatprep.subr.mxu0 %v8552_v38  ;;  %6502 = vmatprep.mubr.msk.f32.mxu1 %vm7071_vm3, %v8552_v38 }
 0x345   : > { %v1417_v50 = vld [vmem:[#allocation2 + $0x34] sm:$0xf]  ;;  %v1419_v51 = vld [vmem:[#allocation2 + $0x3c] sm:$0xf]  ;;  %v7070_v4 = vmov 1983009808  }
 0x346   : > { %1452 = vxpose.xlu1.b32.start.end [1/1] (short) (narrow) %v1405_v40, 16  ;;  %v1935_v5 = vunpack.c.l.s4 %v7070_v4  ;;  %v1315_v8 = vld [vmem:[%s8607_s15 + $0x30] sm:$0xff]  ;;  %v1314_v10 = vld [vmem:[%s8607_s15 + $0x28] sm:$0xff]  ;;  %v7635_v13 = vshrl.u32 %v1937_v6, 7  ;;  %v1313_v14 = vld [vmem:[%s8607_s15 + $0x20] sm:$0xff]  ;;  %vm3124_vm4 = vcmask 130048  }
 0x347   : > { %6482 = vmatpush3.msra.mxu0 %v1315_v8  ;;  %v1312_v15 = vld [vmem:[%s8607_s15 + $0x18] sm:$0xff]  ;;  %v1311_v20 = vld [vmem:[%s8607_s15 + $0x10] sm:$0xff]  ;;  %v1310_v21 = vld [vmem:[%s8607_s15 + $0x8] sm:$0xff]  ;;  %s7077_s14 = smov 16   ;;  %vm5790_vm5 = vcmask 261120   ;;  %vm5792_vm6 = vcmask 392192  }
 0x348   : > { %v1936_v12 = vunpack.c.0.s8 %v1935_v5  ;;  %6483 = vmatprep.subr.mxu0 %v8552_v38  ;;  %v1309_v24 = vld [vmem:[%s8607_s15] sm:$0xff]  ;;  %v1406_v31 = vld [vmem:[#allocation2 + $0x8] sm:$0xf]  ;;  %v1416_v9 = vld [vmem:[#allocation2 + $0x30] sm:$0xf]  ;;  %s5883_s23 = scalar_lea.vmem [#allocation4], %s7394_s4 }
 0x349   : > { %6484 = vmatpush3.msra.mxu0 %v1314_v10  ;;  %v1418_v34 = vld [vmem:[#allocation2 + $0x38] sm:$0xf] }
 0x34a   : > { %6485 = vmatprep.subr.mxu0 %v8552_v38  ;;  %v7648_v18 = vsub.s32 %v1936_v12, %v7635_v13 }
 0x34b   : > { %1516 = vxpose.xlu1.b32.start.end [1/1] (short) (narrow) %v1407_v41, 16  ;;  %6486 = vmatpush3.msra.mxu0 %v1313_v14 }
 0x34c   : > { %6487 = vmatprep.subr.mxu0 %v8552_v38 }
 0x34d   : > { %6488 = vmatpush3.msra.mxu0 %v1312_v15 }
 0x34e   : > { %6489 = vmatprep.subr.mxu0 %v8552_v38 }
 0x34f   : > { %6490 = vmatpush3.msra.mxu0 %v1311_v20 }
 0x350   : > { %1548 = vxpose.xlu1.b32.start.end [1/1] (short) (narrow) %v1408_v42, 16  ;;  %6491 = vmatprep.subr.mxu0 %v8552_v38 }
 0x351   : > { %6492 = vmatpush3.msra.mxu0 %v1310_v21 }
 0x352   : > { %6493 = vmatprep.subr.mxu0 %v8552_v38 }
 0x353   : > { %6494 = vmatpush3.msra.mxu0 %v1309_v24 }
 0x354   : > { %6546 = vmatprep.subr.mxu0 %v8552_v38 }
 0x355   : > { %1580 = vxpose.xlu1.b32.start.end [1/1] (short) (narrow) %v1409_v43, 16 }
 0x35a   : > { %1612 = vxpose.xlu1.b32.start.end [1/1] (short) (narrow) %v1410_v44, 16 }
 0x35f   : > { %1644 = vxpose.xlu1.b32.start.end [1/1] (short) (narrow) %v1411_v45, 16 }
 0x364   : > { %1676 = vxpose.xlu1.b32.start.end [1/1] (short) (narrow) %v1412_v46, 16  ;;  %v6317_v46 = vld [vmem:[#allocation10] ss:$0 sm:$0xff] }
 0x369   : > { %1708 = vxpose.xlu1.b32.start.end [1/1] (short) (narrow) %v1413_v47, 16 }
 0x36e   : > { %1740 = vxpose.xlu1.b32.start.end [1/1] (short) (narrow) %v1414_v48, 16  ;;  %v6318_v48 = vld [vmem:[#allocation12] ss:$0 sm:$0xff] }
 0x373   : > { %1772 = vxpose.xlu1.b32.start.end [1/1] (short) (narrow) %v1415_v49, 16 }
 0x378   : > { %1836 = vxpose.xlu1.b32.start.end [1/1] (short) (narrow) %v1417_v50, 16 }
 0x37d   : > { %1900 = vxpose.xlu1.b32.start.end [1/1] (short) (narrow) %v1419_v51, 16 }
 0x3bd   : > { %v7594_v52 = vpop.trf.xlu1 }
 0x3c1   : > { %v7596_v53 = vpop.trf.xlu1 }
 0x3c5   : > { %v7598_v54 = vpop.trf.xlu1 }
 0x3c9   : > { %v7600_v55 = vpop.trf.xlu1 }
 0x3cc   : > { %v1283_v56 = vpop.xlane.xlu0 %1282 }
 0x3cd   : > { %v1285_v57 = vmul.f32 0.015625, %v1283_v56  ;;  %v7602_v58 = vpop.trf.xlu1 }
 0x3ce   : > { %v1949_v56 = vcombine.high %v7598_v54, %v7602_v58 }
 0x3cf   : > { %v7604_v59 = vsub.f32 %v1277_v37, %v1285_v57  ;;  %v7072_v57 = vmov 1934713408  }
 0x3d0   : > { %v7721_v5 = vrot.slane %v1949_v56, %v7648_v18 }
 0x3d1   : > { %v1287_v61 = vmul.f32 %v7604_v59, %v7604_v59  ;;  %v7608_v62 = vpop.trf.xlu1 }
 0x3d2   : > { %v2220_v8 = vcombine.low %v7600_v55, %v7608_v62 }
 0x3d3   : > { %v1288_v63 = vsel %vm1280_vm2, %v1287_v61, 0.0  ;;  %v1999_v61 = vunpack.c.l.s4 %v7072_v57 }
 0x3d4   : > { %1289 = vadd.xlane.f32.xlu0 %v1288_v63 }
 0x3d5   : > { %v7611_v0 = vpop.trf.xlu1  ;;  %v2000_v6 = vunpack.c.0.s8 %v1999_v61 }
 0x3d7   : > { %v7741_v20 = vsub.s32 %v2000_v6, %v7635_v13 }
 0x3d9   : > { %v7613_v1 = vpop.trf.xlu1 }
 0x3dd   : > { %v7615_v2 = vpop.trf.xlu1 }
 0x3e1   : > { %v7617_v3 = vpop.trf.xlu1 }
 0x3e5   : > { %v7633_v11 = vpop.trf.xlu1 }
 0x3e6   : > { %v1965_v19 = vcombine.high %v7611_v0, %v7633_v11 }
 0x3e8   : > { %v7663_v22 = vrot.slane %v1965_v19, %v7648_v18 }
 0x3e9   : > { %v7645_v16 = vpop.trf.xlu1 }
 0x3ea   : > { %v2236_v63 = vcombine.low %v7613_v1, %v7645_v16 }
 0x3ec   : > { %v7728_v10 = vrot.slane %v2236_v63, %v7648_v18 }
 0x3ed   : > { %v7660_v60 = vpop.trf.xlu1 }
 0x3ee   : > { %v1981_v23 = vcombine.high %v7615_v2, %v7660_v60 }
 0x3f0   : > { %v7672_v25 = vrot.slane %v1981_v23, %v7648_v18  ;;  %v7744_v23 = vrot.slane %v2220_v8, %v7648_v18 }
 0x3f1   : > { %v7675_v26 = vpop.trf.xlu1 }
 0x3f2   : > { %v2045_v27 = vcombine.high %v7663_v22, %v7672_v25 }
 0x3f4   : > { %v7758_v13 = vrot.slane %v2045_v27, %v7741_v20 }
 0x3f5   : > { %v7680_v28 = vpop.trf.xlu1 }
 0x3f9   : > { %v7682_v29 = vpop.trf.xlu1 }
 0x3fd   : > { %v7684_v30 = vpop.trf.xlu1 }
 0x401   : > { %1484 = vxpose.xlu0.b32.start.end [1/1] (short) (narrow) %v1406_v31, 16  ;;  %v7686_v32 = vpop.trf.xlu1 }
 0x405   : > { %v7688_v33 = vpop.trf.xlu1 }
 0x406   : > { %1804 = vxpose.xlu0.b32.start.end [1/1] (short) (narrow) %v1416_v9, 16  ;;  %v2069_v36 = vcombine.high %v7680_v28, %v7688_v33 }
 0x408   : > { %v7697_v37 = vrot.slane %v2069_v36, %v7648_v18 }
 0x409   : > { %v7690_v35 = vpop.trf.xlu1 }
 0x40a   : > { %v2340_v56 = vcombine.low %v7682_v29, %v7690_v35 }
 0x40b   : > { %1868 = vxpose.xlu0.b32.start.end [1/1] (short) (narrow) %v1418_v34, 16 }
 0x40c   : > { %v2348_v8 = vrot.slane %v2340_v56, %v7648_v18  ;;  %v2221_v56 = vcombine.high %v7600_v55, %v7608_v62 }
 0x40d   : > { %v7694_v17 = vpop.trf.xlu1 }
 0x40e   : > { %v2085_v39 = vcombine.high %v7684_v30, %v7694_v17 }
 0x410   : > { %v7702_v40 = vrot.slane %v2085_v39, %v7648_v18 }
 0x411   : > { %v7707_v51 = vpop.trf.xlu1 }
 0x412   : > { %v2149_v41 = vcombine.high %v7697_v37, %v7702_v40  ;;  %v2356_v57 = vcombine.low %v7686_v32, %v7707_v51  ;;  %v2357_v62 = vcombine.high %v7686_v32, %v7707_v51 }
 0x415   : > { %v7718_v4 = vpop.trf.xlu1 }
 0x419   : > { %v7738_v19 = vpop.trf.xlu1 }
 0x45d   : > { %v1290_v42 = vpop.xlane.xlu0 %1289 }
 0x45e   : > { %v1291_v43 = vmul.f32 0.015625, %v1290_v42 }
 0x460   : > { %v1292_v44 = vadd.f32 1e-05, %v1291_v43 }
 0x462   : > { %6797 = vrsqrt.f32 %v1292_v44  ;;  %v7762_v44 = vpop.trf.xlu1 }
 0x463   : > { %v2117_v27 = vcombine.high %v7718_v4, %v7762_v44 }
 0x466   : > { %v1917_v61 = vpop.trf.xlu1 }
 0x46f   : > { %v6798_v45 = vpop.eup %6797 }
 0x470   : > { %v1294_v47 = vmul.f32 %v6798_v45, %v7604_v59  ;;  %v2252_v59 = vcombine.low %v7617_v3, %v7675_v26 }
 0x472   : > { %v1301_v49 = vmul.f32 %v6317_v46, %v1294_v47  ;;  %v7731_v12 = vrot.slane %v2252_v59, %v7648_v18  ;;  %v7778_v59 = vrot.slane %v2117_v27, %v7648_v18 }
 0x474   : > { %v1308_v50 = vadd.f32 %v6318_v48, %v1301_v49  ;;  %v2300_v9 = vcombine.low %v7728_v10, %v7731_v12  ;;  %v2341_v48 = vcombine.high %v7682_v29, %v7690_v35 }
 0x476   : > { %6496 = vmatmul.mubr.msk.f32.vlgmr.msra.gmra.mxu0 %vm1280_vm2, %v1308_v50  ;;  %v2308_v43 = vrot.slane %v2300_v9, %v7741_v20 }
 0x477   : > { %6562 = vmatprep.mubr.msk.f32.mxu0 %vm7071_vm3, %v8552_v38 }
 0x47d   : > { %v7723_v7 = vpop.trf.xlu0 }
 0x47e   : > { %v1933_v14 = vcombine.high %v7594_v52, %v7723_v7 }
 0x480   : > { %v7736_v15 = vrot.slane %v1933_v14, %v7648_v18  ;;  %v2364_v14 = vrot.slane %v2356_v57, %v7648_v18 }
 0x481   : > { %v1501_v21 = vpop.trf.xlu0 }
 0x482   : > { %v2013_v24 = vcombine.high %v7736_v15, %v7721_v5  ;;  %v2204_v31 = vcombine.low %v7596_v53, %v1501_v21 }
 0x484   : > { %v2212_v34 = vrot.slane %v2204_v31, %v7648_v18  ;;  %v7755_v39 = vrot.slane %v2013_v24, %v7741_v20  ;;  %v2388_v24 = vcombine.low %v7738_v19, %v1917_v61 }
 0x485   : > { %v7752_v36 = vpop.trf.xlu0 }
 0x486   : > { %v2268_v42 = vcombine.low %v2212_v34, %v7744_v23  ;;  %v2269_v55 = vcombine.high %v2212_v34, %v7744_v23 }
 0x488   : > { %v2276_v45 = vrot.slane %v2268_v42, %v7741_v20 }
 0x489   : > { %v1821_v46 = vpop.trf.xlu0 }
 0x48a   : > { %v2333_v49 = vcombine.high %v2276_v45, %v2308_v43  ;;  %v2332_v50 = vcombine.low %v2276_v45, %v2308_v43  ;;  %v2404_v43 = vcombine.low %v2348_v8, %v2364_v14  ;;  %v2396_v45 = vrot.slane %v2388_v24, %v7648_v18 }
 0x48b   : > { %v2253_v24 = vcombine.high %v7617_v3, %v7675_v26  ;;  %v2389_v26 = vcombine.high %v7738_v19, %v1917_v61  ;;  %v2355_v19 = vrot.slane %v2341_v48, %v7648_v18 }
 0x48c   : > { %2764 = vxpose.xlu0.b32.start [1/2] (short) (narrow) %v2333_v49, 8  ;;  %2732 = vxpose.xlu1.b32.start [1/2] (short) (narrow) %v2332_v50, 8  ;;  %v7795_v50 = vrot.slane %v2149_v41, %v7741_v20  ;;  %v2301_v41 = vcombine.high %v7728_v10, %v7731_v12  ;;  %v2412_v38 = vrot.slane %v2404_v43, %v7741_v20 }
 0x48d   : > { %v7775_v63 = vpop.trf.xlu0  ;;  %v2235_v10 = vrot.slane %v2221_v56, %v7648_v18  ;;  %v2403_v61 = vrot.slane %v2389_v26, %v7648_v18  ;;  %v1980_v26 = vcombine.low %v7615_v2, %v7660_v60 }
 0x48e   : > { %v2101_v6 = vcombine.high %v7752_v36, %v7775_v63  ;;  %v2315_v32 = vrot.slane %v2301_v41, %v7741_v20  ;;  %v2100_v2 = vcombine.low %v7752_v36, %v7775_v63 }
 0x490   : > { %v7786_v31 = vrot.slane %v2101_v6, %v7648_v18  ;;  %v2237_v6 = vcombine.high %v7613_v1, %v7645_v16  ;;  %v2405_v1 = vcombine.high %v2348_v8, %v2364_v14  ;;  %v2283_v8 = vrot.slane %v2269_v55, %v7741_v20 }
 0x491   : > { %v1885_v9 = vpop.trf.xlu0 }
 0x492   : > { %v2181_v42 = vcombine.high %v7786_v31, %v7778_v59  ;;  %v2372_v49 = vcombine.low %v1821_v46, %v1885_v9  ;;  %v2373_v29 = vcombine.high %v1821_v46, %v1885_v9  ;;  %v2251_v12 = vrot.slane %v2237_v6, %v7648_v18 }
 0x493   : > { %v2371_v46 = vrot.slane %v2357_v62, %v7648_v18  ;;  %v2334_v43 = vcombine.low %v2283_v8, %v2315_v32 }
 0x494   : > { %v7798_v27 = vrot.slane %v2181_v42, %v7741_v20  ;;  %v2380_v57 = vrot.slane %v2372_v49, %v7648_v18  ;;  %v2205_v42 = vcombine.high %v7596_v53, %v1501_v21  ;;  %v2267_v21 = vrot.slane %v2253_v24, %v7648_v18 }
 0x495   : > { %v2387_v14 = vrot.slane %v2373_v29, %v7648_v18  ;;  %v2420_v56 = vcombine.low %v2355_v19, %v2371_v46  ;;  %v2068_v29 = vcombine.low %v7680_v28, %v7688_v33 }
 0x496   : > { %v2436_v47 = vcombine.low %v2380_v57, %v2396_v45  ;;  %v2202_v3 = vcombine.low %v7795_v50, %v7798_v27  ;;  %v2203_v16 = vcombine.high %v7795_v50, %v7798_v27  ;;  %v2437_v35 = vcombine.high %v2380_v57, %v2396_v45  ;;  %v3469_v50 = vld [vmem:[#allocation3 + $0x30] sm:$0xf]  ;;  %v3472_v27 = vld [vmem:[#allocation3 + $0x3c] sm:$0xf] }
 0x497   : > { %v2219_v51 = vrot.slane %v2205_v42, %v7648_v18  ;;  %v2335_v45 = vcombine.high %v2283_v8, %v2315_v32  ;;  %v2452_v57 = vcombine.low %v2387_v14, %v2403_v61  ;;  %v1948_v42 = vcombine.low %v7598_v54, %v7602_v58 }
 0x498   : > { %v2444_v53 = vrot.slane %v2436_v47, %v7741_v20  ;;  %v2419_v47 = vrot.slane %v2405_v1, %v7741_v20  ;;  %v2451_v9 = vrot.slane %v2437_v35, %v7741_v20  ;;  %v2428_v55 = vrot.slane %v2420_v56, %v7741_v20 }
 0x499   : > { %v2284_v49 = vcombine.low %v2219_v51, %v2235_v10  ;;  %v2460_v62 = vrot.slane %v2452_v57, %v7741_v20  ;;  %v1964_v1 = vcombine.low %v7611_v0, %v7633_v11  ;;  %v2317_v35 = vcombine.high %v2251_v12, %v2267_v21 }
 0x49a   : > { %v2469_v23 = vcombine.high %v2412_v38, %v2444_v53  ;;  %v2468_v34 = vcombine.low %v2412_v38, %v2444_v53  ;;  %v2316_v38 = vcombine.low %v2251_v12, %v2267_v21  ;;  %v2470_v48 = vcombine.low %v2419_v47, %v2451_v9 }
 0x49b   : > { %v2471_v6 = vcombine.high %v2419_v47, %v2451_v9  ;;  %v2292_v24 = vrot.slane %v2284_v49, %v7741_v20  ;;  %v1932_v53 = vcombine.low %v7594_v52, %v7723_v7  ;;  %v2285_v32 = vcombine.high %v2219_v51, %v2235_v10 }
 0x49c   : > { %2765 = vxpose.xlu0.b32.end [2/2] (short) (narrow) %v2469_v23, 8  ;;  %2733 = vxpose.xlu1.b32.end [2/2] (short) (narrow) %v2468_v34, 8  ;;  %v2324_v41 = vrot.slane %v2316_v38, %v7741_v20  ;;  %v2084_v23 = vcombine.low %v7684_v30, %v7694_v17  ;;  %v2421_v34 = vcombine.high %v2355_v19, %v2371_v46 }
 0x49d   : > { %v2116_v0 = vcombine.low %v7718_v4, %v7762_v44  ;;  %v2453_v11 = vcombine.high %v2387_v14, %v2403_v61  ;;  %v2472_v60 = vcombine.low %v2428_v55, %v2460_v62  ;;  %v2473_v28 = vcombine.high %v2428_v55, %v2460_v62 }
 0x49e   : > { %v2336_v54 = vcombine.low %v2292_v24, %v2324_v41  ;;  %v2337_v58 = vcombine.high %v2292_v24, %v2324_v41  ;;  %v1956_v52 = vrot.slane %v1948_v42, %v7648_v18  ;;  %v1972_v33 = vrot.slane %v1964_v1, %v7648_v18 }
 0x49f   : > { %v1988_v7 = vrot.slane %v1980_v26, %v7648_v18  ;;  %v1940_v30 = vrot.slane %v1932_v53, %v7648_v18  ;;  %v2299_v17 = vrot.slane %v2285_v32, %v7741_v20  ;;  %v2331_v4 = vrot.slane %v2317_v35, %v7741_v20 }
 0x4a0   : > { %2796 = vxpose.xlu0.b32.start [1/2] (short) (narrow) %v2334_v43, 8  ;;  %2828 = vxpose.xlu1.b32.start [1/2] (short) (narrow) %v2335_v45, 8  ;;  %v2076_v44 = vrot.slane %v2068_v29, %v7648_v18  ;;  %v2092_v36 = vrot.slane %v2084_v23, %v7648_v18  ;;  %v2124_v63 = vrot.slane %v2116_v0, %v7648_v18 }
 0x4a1   : > { %v2108_v10 = vrot.slane %v2100_v2, %v7648_v18  ;;  %v2435_v12 = vrot.slane %v2421_v34, %v7741_v20  ;;  %v2467_v21 = vrot.slane %v2453_v11, %v7741_v20  ;;  %v2338_v51 = vcombine.low %v2299_v17, %v2331_v4 }
 0x4a2   : > { %v2339_v8 = vcombine.high %v2299_v17, %v2331_v4  ;;  %v1996_v19 = vcombine.low %v1940_v30, %v1956_v52  ;;  %v2028_v46 = vcombine.low %v1972_v33, %v1988_v7  ;;  %v2132_v47 = vcombine.low %v2076_v44, %v2092_v36 }
 0x4a3   : > { %v2164_v61 = vcombine.low %v2108_v10, %v2124_v63  ;;  %v2474_v14 = vcombine.low %v2435_v12, %v2467_v21  ;;  %v2475_v9 = vcombine.high %v2435_v12, %v2467_v21  ;;  %v2133_v42 = vcombine.high %v2076_v44, %v2092_v36 }
 0x4a4   : > { %2797 = vxpose.xlu0.b32.end [2/2] (short) (narrow) %v2470_v48, 8  ;;  %2829 = vxpose.xlu1.b32.end [2/2] (short) (narrow) %v2471_v6, 8  ;;  %v2004_v43 = vrot.slane %v1996_v19, %v7741_v20  ;;  %v2036_v45 = vrot.slane %v2028_v46, %v7741_v20  ;;  %v2140_v49 = vrot.slane %v2132_v47, %v7741_v20 }
 0x4a5   : > { %v2172_v38 = vrot.slane %v2164_v61, %v7741_v20  ;;  %v1997_v48 = vcombine.high %v1940_v30, %v1956_v52  ;;  %v2029_v6 = vcombine.high %v1972_v33, %v1988_v7  ;;  %v2165_v55 = vcombine.high %v2108_v10, %v2124_v63  ;;  %v6319_v61 = vld [vmem:[%s8608_s10] ss:$0 sm:$0xff]  ;;  %s8613_s10 = smov %s8612_s29 }
 0x4a6   : > { %v2060_v56 = vcombine.low %v2004_v43, %v2036_v45  ;;  %v2061_v57 = vcombine.high %v2004_v43, %v2036_v45  ;;  %v2147_v26 = vrot.slane %v2133_v42, %v7741_v20  ;;  %v2044_v29 = vcombine.low %v7663_v22, %v7672_v25  ;;  %v3457_v42 = vld [vmem:[#allocation3] sm:$0xf] }
 0x4a7   : > { %v2196_v24 = vcombine.low %v2140_v49, %v2172_v38  ;;  %v2197_v41 = vcombine.high %v2140_v49, %v2172_v38  ;;  %v2011_v62 = vrot.slane %v1997_v48, %v7741_v20  ;;  %v2043_v1 = vrot.slane %v2029_v6, %v7741_v20 }
 0x4a8   : > { %2860 = vxpose.xlu0.b32.start [1/2] (short) (narrow) %v2336_v54, 8  ;;  %2892 = vxpose.xlu1.b32.start [1/2] (short) (narrow) %v2337_v58, 8  ;;  %v2179_v54 = vrot.slane %v2165_v55, %v7741_v20  ;;  %v2012_v58 = vcombine.low %v7736_v15, %v7721_v5  ;;  %v2148_v32 = vcombine.low %v7697_v37, %v7702_v40  ;;  %v3459_v55 = vld [vmem:[#allocation3 + $0x8] sm:$0xf] }
 0x4a9   : > { %v2062_v35 = vcombine.low %v2011_v62, %v2043_v1  ;;  %v2063_v53 = vcombine.high %v2011_v62, %v2043_v1  ;;  %v2052_v23 = vrot.slane %v2044_v29, %v7741_v20  ;;  %v2180_v34 = vcombine.low %v7786_v31, %v7778_v59  ;;  %v3460_v1 = vld [vmem:[#allocation3 + $0xc] sm:$0xf]  ;;  %v3462_v29 = vld [vmem:[#allocation3 + $0x14] sm:$0xf] }
 0x4aa   : > { %v2198_v0 = vcombine.low %v2147_v26, %v2179_v54  ;;  %v2199_v2 = vcombine.high %v2147_v26, %v2179_v54  ;;  %v2020_v22 = vrot.slane %v2012_v58, %v7741_v20  ;;  %v2156_v5 = vrot.slane %v2148_v32, %v7741_v20  ;;  %v3458_v26 = vld [vmem:[#allocation3 + $0x4] sm:$0xf]  ;;  %v3467_v58 = vld [vmem:[#allocation3 + $0x28] sm:$0xf]  ;;  %v3470_v32 = vld [vmem:[#allocation3 + $0x34] sm:$0xf] }
 0x4ab   : > { %v2188_v15 = vrot.slane %v2180_v34, %v7741_v20  ;;  %v8611_v62 = vcombine.high %v7755_v39, %v7758_v13  ;;  %v3466_v54 = vld [vmem:[#allocation3 + $0x24] sm:$0xf] }
 0x4ac   : > { %2861 = vxpose.xlu0.b32.end [2/2] (short) (narrow) %v2472_v60, 8  ;;  %2893 = vxpose.xlu1.b32.end [2/2] (short) (narrow) %v2473_v28, 8  ;;  %v2064_v25 = vcombine.low %v2020_v22, %v2052_v23  ;;  %v2065_v11 = vcombine.high %v2020_v22, %v2052_v23 }
 0x4ad   : > { %v2200_v37 = vcombine.low %v2156_v5, %v2188_v15  ;;  %v2201_v40 = vcombine.high %v2156_v5, %v2188_v15 }
 0x4b0   : > { %2924 = vxpose.xlu0.b32.start [1/2] (short) (narrow) %v2338_v51, 8  ;;  %2956 = vxpose.xlu1.b32.start [1/2] (short) (narrow) %v2339_v8, 8 }
 0x4b4   : > { %2925 = vxpose.xlu0.b32.end [2/2] (short) (narrow) %v2474_v14, 8  ;;  %2957 = vxpose.xlu1.b32.end [2/2] (short) (narrow) %v2475_v9, 8 }
 0x4b8   : > { %2476 = vxpose.xlu0.b32.start [1/2] (short) (narrow) %v2060_v56, 8  ;;  %2508 = vxpose.xlu1.b32.start [1/2] (short) (narrow) %v2061_v57, 8  ;;  %v8609_v56 = vmov 0.0  }
 0x4bc   : > { %2477 = vxpose.xlu0.b32.end [2/2] (short) (narrow) %v2196_v24, 8  ;;  %2509 = vxpose.xlu1.b32.end [2/2] (short) (narrow) %v2197_v41, 8  ;;  %v8610_v41 = vcombine.low %v7755_v39, %v7758_v13  ;;  %v3465_v39 = vld [vmem:[#allocation3 + $0x20] sm:$0xf]  ;;  %v3468_v13 = vld [vmem:[#allocation3 + $0x2c] sm:$0xf] }
 0x4c0   : > { %2540 = vxpose.xlu0.b32.start [1/2] (short) (narrow) %v2062_v35, 8  ;;  %2572 = vxpose.xlu1.b32.start [1/2] (short) (narrow) %v2063_v53, 8  ;;  %v3461_v35 = vld [vmem:[#allocation3 + $0x10] sm:$0xf]  ;;  %v3463_v53 = vld [vmem:[#allocation3 + $0x18] sm:$0xf] }
 0x4c4   : > { %2541 = vxpose.xlu0.b32.end [2/2] (short) (narrow) %v2198_v0, 8  ;;  %2573 = vxpose.xlu1.b32.end [2/2] (short) (narrow) %v2199_v2, 8 }
 0x4c8   : > { %2604 = vxpose.xlu0.b32.start [1/2] (short) (narrow) %v2064_v25, 8  ;;  %2636 = vxpose.xlu1.b32.start [1/2] (short) (narrow) %v2065_v11, 8 }
 0x4cc   : > { %2605 = vxpose.xlu0.b32.end [2/2] (short) (narrow) %v2200_v37, 8  ;;  %2637 = vxpose.xlu1.b32.end [2/2] (short) (narrow) %v2201_v40, 8 }
 0x514   : > { %v2780_v60 = vpop.trf.xlu0  ;;  %v2748_v59 = vpop.trf.xlu1 }
 0x51c   : > { %v2812_v31 = vpop.trf.xlu0  ;;  %v2844_v28 = vpop.trf.xlu1 }
 0x51d   : > { %v3056_v52 = vcombine.low %v2748_v59, %v2812_v31  ;;  %v3064_v33 = vcombine.low %v2780_v60, %v2844_v28 }
 0x51f   : > { %v3063_v7 = vrot.slane %v3056_v52, %v7648_v18  ;;  %v3071_v30 = vrot.slane %v3064_v33, %v7648_v18 }
 0x521   : > { %v3089_v17 = vcombine.high %v3063_v7, %v3071_v30  ;;  %v3088_v10 = vcombine.low %v3063_v7, %v3071_v30 }
 0x523   : > { %v7891_v47 = vrot.slane %v3088_v10, %v7741_v20  ;;  %v7910_v57 = vrot.slane %v3089_v17, %v7741_v20 }
 0x524   : > { %v2876_v4 = vpop.trf.xlu0  ;;  %v2908_v44 = vpop.trf.xlu1 }
 0x52c   : > { %v2940_v36 = vpop.trf.xlu0  ;;  %v2972_v63 = vpop.trf.xlu1 }
 0x52d   : > { %v3072_v12 = vcombine.low %v2876_v4, %v2940_v36  ;;  %v3080_v21 = vcombine.low %v2908_v44, %v2972_v63 }
 0x52f   : > { %v3079_v51 = vrot.slane %v3072_v12, %v7648_v18  ;;  %v3087_v8 = vrot.slane %v3080_v21, %v7648_v18 }
 0x531   : > { %v3104_v19 = vcombine.low %v3079_v51, %v3087_v8  ;;  %v3105_v46 = vcombine.high %v3079_v51, %v3087_v8 }
 0x533   : > { %v7897_v14 = vrot.slane %v3104_v19, %v7741_v20  ;;  %v7913_v48 = vrot.slane %v3105_v46, %v7741_v20 }
 0x534   : > { %v2492_v23 = vpop.trf.xlu0  ;;  %v2524_v0 = vpop.trf.xlu1 }
 0x535   : > { %v3120_v43 = vcombine.low %v7891_v47, %v7897_v14  ;;  %v3121_v45 = vcombine.high %v7891_v47, %v7897_v14  ;;  %v3122_v6 = vcombine.low %v7910_v57, %v7913_v48  ;;  %v3123_v24 = vcombine.high %v7910_v57, %v7913_v48 }
 0x536   : > { %v1393_v9 = vpop.f32.mrf.mxu0 }
 0x537   : > { %v7903_v49 = vadd.f32 %v6319_v61, %v1393_v9  ;;  %6499 = vmatpush3.msra.mxu1 %v3120_v43 }
 0x538   : > { %v6497_v38 = vpop.f32.mrf.mxu0  ;;  %6500 = vmatprep.subr.mxu1 %v8609_v56 }
 0x539   : > { %1398 = vrot.lane.b32.xlu0 %v7903_v49, %s7073_s24  ;;  %1400 = vrot.lane.b32.xlu1 %v7903_v49, %s7074_s17  ;;  %s8615_s17 = sld [smem:[#allocation39_spill]] }
 0x53c   : > { %v2556_v34 = vpop.trf.xlu0  ;;  %v2588_v22 = vpop.trf.xlu1 }
 0x53d   : > { %1402 = vrot.lane.b32.xlu1 %v7903_v49, %s7075_s16  ;;  %v2988_v40 = vcombine.low %v2492_v23, %v2556_v34  ;;  %v2996_v60 = vcombine.low %v2524_v0, %v2588_v22  ;;  %s7076_s16 = smov 32  }
 0x53f   : > { %v2995_v28 = vrot.slane %v2988_v40, %v7648_v18  ;;  %v3003_v52 = vrot.slane %v2996_v60, %v7648_v18 }
 0x541   : > { %v3020_v44 = vcombine.low %v2995_v28, %v3003_v52  ;;  %v3021_v38 = vcombine.high %v2995_v28, %v3003_v52 }
 0x543   : > { %v3028_v8 = vrot.slane %v3020_v44, %v7741_v20 }
 0x544   : > { %v2620_v2 = vpop.trf.xlu0  ;;  %v2652_v11 = vpop.trf.xlu1 }
 0x557   : > { %2668 = vxpose.xlu0.b32.start [1/2] (short) (narrow) %v8610_v41, 8 }
 0x55b   : > { %2669 = vxpose.xlu0.b32.end [2/2] (short) (narrow) %v2202_v3, 8  ;;  %v3464_v3 = vld [vmem:[#allocation3 + $0x1c] sm:$0xf] }
 0x55f   : > { %3473 = vxpose.xlu0.b32.start.end [1/1] (short) (narrow) %v3457_v42, 16 }
 0x564   : > { %3537 = vxpose.xlu0.b32.start.end [1/1] (short) (narrow) %v3459_v55, 16 }
 0x566   : > { %2700 = vxpose.xlu1.b32.start [1/2] (short) (narrow) %v8611_v62, 8 }
 0x569   : > { %3569 = vxpose.xlu0.b32.start.end [1/1] (short) (narrow) %v3460_v1, 16 }
 0x56a   : > { %2701 = vxpose.xlu1.b32.end [2/2] (short) (narrow) %v2203_v16, 8  ;;  %v3471_v16 = vld [vmem:[#allocation3 + $0x38] sm:$0xf] }
 0x56e   : > { %3505 = vxpose.xlu1.b32.start.end [1/1] (short) (narrow) %v3458_v26, 16  ;;  %3633 = vxpose.xlu0.b32.start.end [1/1] (short) (narrow) %v3462_v29, 16 }
 0x573   : > { %3601 = vxpose.xlu1.b32.start.end [1/1] (short) (narrow) %v3461_v35, 16  ;;  %3697 = vxpose.xlu0.b32.start.end [1/1] (short) (narrow) %v3464_v3, 16  ;;  %v3035_v35 = vrot.slane %v3021_v38, %v7741_v20 }
 0x578   : > { %3665 = vxpose.xlu1.b32.start.end [1/1] (short) (narrow) %v3463_v53, 16  ;;  %3761 = vxpose.xlu0.b32.start.end [1/1] (short) (narrow) %v3466_v54, 16 }
 0x57d   : > { %3729 = vxpose.xlu1.b32.start.end [1/1] (short) (narrow) %v3465_v39, 16  ;;  %3825 = vxpose.xlu0.b32.start.end [1/1] (short) (narrow) %v3468_v13, 16 }
 0x582   : > { %3793 = vxpose.xlu1.b32.start.end [1/1] (short) (narrow) %v3467_v58, 16  ;;  %3889 = vxpose.xlu0.b32.start.end [1/1] (short) (narrow) %v3470_v32, 16 }
 0x587   : > { %3857 = vxpose.xlu1.b32.start.end [1/1] (short) (narrow) %v3469_v50, 16  ;;  %3953 = vxpose.xlu0.b32.start.end [1/1] (short) (narrow) %v3472_v27, 16 }
 0x58c   : > { %3921 = vxpose.xlu1.b32.start.end [1/1] (short) (narrow) %v3471_v16, 16 }
 0x5ab   : > { %v1399_v25 = vpop.permute.xlu0 %1398  ;;  %v1401_v15 = vpop.permute.xlu1 %1400 }
 0x5af   : > { %v7933_v59 = vpop.permute.xlu1 %1402 }
 0x5d3   : > { %v2684_v5 = vpop.trf.xlu0 }
 0x5d4   : > { %v3004_v33 = vcombine.low %v2620_v2, %v2684_v5 }
 0x5d6   : > { %v3011_v36 = vrot.slane %v3004_v33, %v7648_v18 }
 0x5db   : > { %v7931_v37 = vpop.trf.xlu0 }
 0x5df   : > { %v3490_v31 = vpop.trf.xlu0 }
 0x5e2   : > { %v2716_v7 = vpop.trf.xlu1 }
 0x5e3   : > { %v3012_v30 = vcombine.low %v2652_v11, %v2716_v7  ;;  %v7937_v17 = vpop.trf.xlu0 }
 0x5e4   : > { %v3986_v4 = vcombine.high %v7931_v37, %v7937_v17  ;;  %v3985_v3 = vcombine.low %v7931_v37, %v7937_v17 }
 0x5e5   : > { %v3019_v63 = vrot.slane %v3012_v30, %v7648_v18 }
 0x5e6   : > { %v7996_v23 = vrot.slane %v3985_v3, %v7648_v18 }
 0x5e7   : > { %v3036_v10 = vcombine.low %v3011_v36, %v3019_v63  ;;  %v3554_v12 = vpop.trf.xlu0  ;;  %v3037_v61 = vcombine.high %v3011_v36, %v3019_v63 }
 0x5e8   : > { %v4257_v21 = vcombine.low %v3490_v31, %v3554_v12  ;;  %v4258_v51 = vcombine.high %v3490_v31, %v3554_v12 }
 0x5e9   : > { %v3044_v19 = vrot.slane %v3036_v10, %v7741_v20  ;;  %v3051_v42 = vrot.slane %v3037_v61, %v7741_v20 }
 0x5ea   : > { %v7945_v46 = vpop.trf.xlu1  ;;  %v7959_v1 = vrot.slane %v4257_v21, %v7648_v18  ;;  %v7962_v26 = vrot.slane %v4258_v51, %v7648_v18 }
 0x5eb   : > { %v7947_v9 = vpop.trf.xlu0  ;;  %v3052_v43 = vcombine.low %v3028_v8, %v3044_v19  ;;  %v3053_v62 = vcombine.high %v3028_v8, %v3044_v19  ;;  %v3054_v39 = vcombine.low %v3035_v35, %v3051_v42  ;;  %v3055_v16 = vcombine.high %v3035_v35, %v3051_v42 }
 0x5ec   : > { %v4001_v53 = vcombine.low %v7945_v46, %v7947_v9 }
 0x5ed   : > { %6501 = vmatpush3.msra.mxu1 %v3052_v43 }
 0x5ee   : > { %6503 = vmatmul.mubr.msk.f32.vlgmr.msra.gmra.mxu1 %vm3124_vm4, %v7903_v49  ;;  %6505 = vmatprep.subr.mxu1 %v8609_v56  ;;  %v3522_v41 = vpop.trf.xlu1  ;;  %v7999_v34 = vrot.slane %v4001_v53, %v7648_v18 }
 0x5ef   : > { %v3586_v55 = vpop.trf.xlu0  ;;  %6506 = vmatpush3.msra.mxu1 %v3121_v45  ;;  %6509 = vmatprep.mubr.msk.f32.mxu1 %vm7071_vm3, %v8609_v56 }
 0x5f0   : > { %v4273_v49 = vcombine.low %v3522_v41, %v3586_v55  ;;  %v4274_v29 = vcombine.high %v3522_v41, %v3586_v55  ;;  %6507 = vmatprep.subr.mxu1 %v8609_v56  ;;  %v4049_v2 = vcombine.low %v7996_v23, %v7999_v34 }
 0x5f1   : > { %6508 = vmatpush3.msra.mxu1 %v3053_v62 }
 0x5f2   : > { %v4281_v47 = vrot.slane %v4273_v49, %v7648_v18  ;;  %v4288_v14 = vrot.slane %v4274_v29, %v7648_v18  ;;  %6510 = vmatmul.mubr.msk.f32.vlgmr.msra.gmra.mxu1 %vm3124_vm4, %v1399_v25  ;;  %6512 = vmatprep.subr.mxu1 %v8609_v56  ;;  %v7970_v45 = vpop.trf.xlu1  ;;  %v4057_v31 = vrot.slane %v4049_v2, %v7741_v20 }
 0x5f3   : > { %v7976_v54 = vpop.trf.xlu0  ;;  %6513 = vmatpush3.msra.mxu1 %v3122_v6  ;;  %6516 = vmatprep.mubr.msk.f32.mxu1 %vm7071_vm3, %v8609_v56 }
 0x5f4   : > { %v4322_v13 = vcombine.high %v7959_v1, %v4281_v47  ;;  %v4337_v58 = vcombine.low %v7962_v26, %v4288_v14  ;;  %v4338_v32 = vcombine.high %v7962_v26, %v4288_v14  ;;  %6514 = vmatprep.subr.mxu1 %v8609_v56  ;;  %v4321_v50 = vcombine.low %v7959_v1, %v4281_v47 }
 0x5f5   : > { %6515 = vmatpush3.msra.mxu1 %v3054_v39 }
 0x5f6   : > { %6517 = vmatmul.mubr.msk.f32.vlgmr.msra.gmra.mxu1 %vm3124_vm4, %v1401_v15  ;;  %6519 = vmatprep.subr.mxu1 %v8609_v56  ;;  %v3618_v6 = vpop.trf.xlu1  ;;  %v8033_v19 = vrot.slane %v4322_v13, %v7741_v20  ;;  %v8036_v61 = vrot.slane %v4337_v58, %v7741_v20  ;;  %v8041_v38 = vrot.slane %v4321_v50, %v7741_v20 }
 0x5f7   : > { %v3650_v27 = vpop.trf.xlu0  ;;  %6520 = vmatpush3.msra.mxu1 %v3123_v24  ;;  %6523 = vmatprep.mubr.msk.f32.mxu1 %vm7071_vm3, %v8609_v56  ;;  %v8044_v42 = vrot.slane %v4338_v32, %v7741_v20 }
 0x5f8   : > { %6521 = vmatprep.subr.mxu1 %v8609_v56 }
 0x5f9   : > { %6522 = vmatpush3.msra.mxu1 %v3055_v16 }
 0x5fa   : > { %6524 = vmatmul.mubr.msk.f32.vlgmr.msra.gmra.mxu1 %vm3124_vm4, %v7933_v59  ;;  %v8004_v0 = vpop.trf.xlu1 }
 0x5fb   : > { %v8006_v57 = vpop.trf.xlu0  ;;  %v4017_v48 = vcombine.low %v7970_v45, %v8004_v0 }
 0x5fc   : > { %v4033_v24 = vcombine.low %v7976_v54, %v8006_v57  ;;  %v4034_v37 = vcombine.high %v7976_v54, %v8006_v57 }
 0x5fd   : > { %v8015_v22 = vrot.slane %v4017_v48, %v7648_v18 }
 0x5fe   : > { %v8018_v25 = vrot.slane %v4033_v24, %v7648_v18  ;;  %v3682_v11 = vpop.trf.xlu1 }
 0x5ff   : > { %v3714_v5 = vpop.trf.xlu0  ;;  %v4289_v15 = vcombine.low %v3618_v6, %v3682_v11  ;;  %v4290_v40 = vcombine.high %v3618_v6, %v3682_v11 }
 0x600   : > { %v4305_v60 = vcombine.low %v3650_v27, %v3714_v5  ;;  %v4306_v59 = vcombine.high %v3650_v27, %v3714_v5  ;;  %v4081_v28 = vcombine.low %v8015_v22, %v8018_v25 }
 0x601   : > { %v4297_v52 = vrot.slane %v4289_v15, %v7648_v18  ;;  %v4304_v33 = vrot.slane %v4290_v40, %v7648_v18 }
 0x602   : > { %v4313_v7 = vrot.slane %v4305_v60, %v7648_v18  ;;  %v4320_v30 = vrot.slane %v4306_v59, %v7648_v18  ;;  %v8027_v44 = vpop.trf.xlu1  ;;  %v4089_v36 = vrot.slane %v4081_v28, %v7741_v20 }
 0x603   : > { %v8030_v63 = vpop.trf.xlu0 }
 0x604   : > { %v4354_v10 = vcombine.high %v4297_v52, %v4313_v7  ;;  %v4369_v12 = vcombine.low %v4304_v33, %v4320_v30  ;;  %v4370_v21 = vcombine.high %v4304_v33, %v4320_v30  ;;  %v4114_v51 = vcombine.high %v4057_v31, %v4089_v36 }
 0x605   : > { %v4113_v8 = vcombine.low %v4057_v31, %v4089_v36  ;;  %v4353_v41 = vcombine.low %v4297_v52, %v4313_v7  ;;  %v4002_v33 = vcombine.high %v7945_v46, %v7947_v9  ;;  %v4050_v9 = vcombine.high %v7996_v23, %v7999_v34 }
 0x606   : > { %v8038_v43 = vpop.trf.xlu1  ;;  %4561 = vxpose.xlu0.b32.start [1/2] (short) (narrow) %v4114_v51, 8  ;;  %v8049_v62 = vrot.slane %v4354_v10, %v7741_v20  ;;  %v8052_v1 = vrot.slane %v4369_v12, %v7741_v20  ;;  %v8055_v26 = vrot.slane %v4370_v21, %v7741_v20  ;;  %v8100_v21 = vrot.slane %v3986_v4, %v7648_v18 }
 0x607   : > { %v8046_v55 = vpop.trf.xlu0  ;;  %4529 = vxpose.xlu1.b32.start [1/2] (short) (narrow) %v4113_v8, 8  ;;  %v8058_v49 = vrot.slane %v4353_v41, %v7741_v20  ;;  %v8104_v8 = vrot.slane %v4002_v33, %v7648_v18  ;;  %v4018_v41 = vcombine.high %v7970_v45, %v8004_v0  ;;  %v4082_v4 = vcombine.high %v8015_v22, %v8018_v25 }
 0x608   : > { %v4388_v29 = vcombine.high %v8033_v19, %v8049_v62  ;;  %v4387_v35 = vcombine.low %v8033_v19, %v8049_v62  ;;  %v4389_v47 = vcombine.low %v8036_v61, %v8052_v1  ;;  %v4390_v14 = vcombine.high %v8036_v61, %v8052_v1 }
 0x609   : > { %v4385_v53 = vcombine.low %v8041_v38, %v8058_v49  ;;  %v4386_v39 = vcombine.high %v8041_v38, %v8058_v49  ;;  %v4391_v13 = vcombine.low %v8044_v42, %v8055_v26  ;;  %v4392_v58 = vcombine.high %v8044_v42, %v8055_v26 }
 0x60a   : > { %v3809_v3 = vpop.trf.xlu1  ;;  %v4032_v57 = vrot.slane %v4018_v41, %v7648_v18  ;;  %v4064_v25 = vrot.slane %v4050_v9, %v7741_v20 }
 0x60b   : > { %v3841_v32 = vpop.trf.xlu0  ;;  %v4121_v15 = vcombine.low %v8027_v44, %v3809_v3  ;;  %v4122_v17 = vcombine.high %v8027_v44, %v3809_v3 }
 0x60c   : > { %v4137_v5 = vcombine.low %v8030_v63, %v3841_v32  ;;  %v4138_v45 = vcombine.high %v8030_v63, %v3841_v32  ;;  %v4048_v63 = vrot.slane %v4034_v37, %v7648_v18  ;;  %v4096_v32 = vrot.slane %v4082_v4, %v7741_v20 }
 0x60d   : > { %v4129_v52 = vrot.slane %v4121_v15, %v7648_v18  ;;  %v4136_v3 = vrot.slane %v4122_v17, %v7648_v18 }
 0x60e   : > { %v8076_v50 = vpop.trf.xlu1  ;;  %v4145_v28 = vrot.slane %v4137_v5, %v7648_v18  ;;  %v4097_v9 = vcombine.low %v4032_v57, %v4048_v63  ;;  %v4115_v37 = vcombine.low %v4064_v25, %v4096_v32 }
 0x60f   : > { %v8078_v6 = vpop.trf.xlu0  ;;  %v4394_v27 = vcombine.high %v8038_v43, %v8076_v50 }
 0x610   : > { %v4410_v16 = vcombine.high %v8046_v55, %v8078_v6  ;;  %v4185_v10 = vcombine.low %v4129_v52, %v4145_v28  ;;  %v4186_v0 = vcombine.high %v4129_v52, %v4145_v28 }
 0x611   : > { %v4408_v48 = vrot.slane %v4394_v27, %v7648_v18 }
 0x612   : > { %v3873_v24 = vpop.trf.xlu1  ;;  %v4424_v2 = vrot.slane %v4410_v16, %v7648_v18  ;;  %v4200_v33 = vrot.slane %v4186_v0, %v7741_v20 }
 0x613   : > { %v3905_v11 = vpop.trf.xlu0 }
 0x614   : > { %v4473_v40 = vcombine.low %v4408_v48, %v4424_v2  ;;  %v4474_v60 = vcombine.high %v4408_v48, %v4424_v2  ;;  %v4193_v2 = vrot.slane %v4185_v10, %v7741_v20 }
 0x616   : > { %v8088_v59 = vpop.trf.xlu1 }
 0x617   : > { %v8090_v31 = vpop.trf.xlu0 }
 0x61a   : > { %v3937_v7 = vpop.trf.xlu1 }
 0x61b   : > { %v3969_v30 = vpop.trf.xlu0  ;;  %v4153_v36 = vcombine.low %v3873_v24, %v3937_v7  ;;  %v4154_v5 = vcombine.high %v3873_v24, %v3937_v7  ;;  %v8137_v7 = vrot.slane %v4473_v40, %v7741_v20  ;;  %v4116_v40 = vcombine.high %v4064_v25, %v4096_v32 }
 0x61c   : > { %v4169_v12 = vcombine.low %v3905_v11, %v3969_v30  ;;  %v4170_v34 = vcombine.high %v3905_v11, %v3969_v30  ;;  %v4152_v11 = vrot.slane %v4138_v45, %v7648_v18  ;;  %v4393_v32 = vcombine.low %v8038_v43, %v8076_v50 }
 0x61d   : > { %v4161_v51 = vrot.slane %v4153_v36, %v7648_v18  ;;  %v4168_v36 = vrot.slane %v4154_v5, %v7648_v18 }
 0x61e   : > { %v4177_v46 = vrot.slane %v4169_v12, %v7648_v18  ;;  %v8111_v27 = vpop.trf.xlu1  ;;  %v4184_v30 = vrot.slane %v4170_v34, %v7648_v18  ;;  %v8143_v12 = vrot.slane %v4474_v60, %v7741_v20 }
 0x61f   : > { %v4426_v16 = vcombine.high %v8088_v59, %v8111_v27  ;;  %v8122_v23 = vpop.trf.xlu0 }
 0x620   : > { %v4217_v48 = vcombine.low %v4161_v51, %v4177_v46  ;;  %v4218_v15 = vcombine.high %v4161_v51, %v4177_v46  ;;  %v4442_v54 = vcombine.high %v8090_v31, %v8122_v23  ;;  %v4065_v46 = vcombine.low %v8100_v21, %v8104_v8 }
 0x621   : > { %v4440_v44 = vrot.slane %v4426_v16, %v7648_v18  ;;  %v4201_v16 = vcombine.low %v4136_v3, %v4152_v11  ;;  %v4233_v45 = vcombine.low %v4168_v36, %v4184_v30 }
 0x622   : > { %v4225_v22 = vrot.slane %v4217_v48, %v7741_v20  ;;  %v4456_v24 = vrot.slane %v4442_v54, %v7648_v18  ;;  %v4232_v10 = vrot.slane %v4218_v15, %v7741_v20  ;;  %v4073_v15 = vrot.slane %v4065_v46, %v7741_v20 }
 0x623   : > { %v4105_v54 = vrot.slane %v4097_v9, %v7741_v20  ;;  %v4241_v25 = vrot.slane %v4233_v45, %v7741_v20 }
 0x624   : > { %v4250_v28 = vcombine.high %v4193_v2, %v4225_v22  ;;  %v4249_v52 = vcombine.low %v4193_v2, %v4225_v22  ;;  %v4505_v51 = vcombine.low %v4440_v44, %v4456_v24  ;;  %v4506_v41 = vcombine.high %v4440_v44, %v4456_v24 }
 0x625   : > { %v4251_v60 = vcombine.low %v4200_v33, %v4232_v10  ;;  %v4252_v0 = vcombine.high %v4200_v33, %v4232_v10  ;;  %v4209_v22 = vrot.slane %v4201_v16, %v7741_v20  ;;  %v4066_v44 = vcombine.high %v8100_v21, %v8104_v8 }
 0x626   : > { %4562 = vxpose.xlu0.b32.end [2/2] (short) (narrow) %v4250_v28, 8  ;;  %4530 = vxpose.xlu1.b32.end [2/2] (short) (narrow) %v4249_v52, 8  ;;  %v8148_v17 = vrot.slane %v4505_v51, %v7741_v20  ;;  %v8151_v4 = vrot.slane %v4506_v41, %v7741_v20  ;;  %v4117_v24 = vcombine.low %v4073_v15, %v4105_v54 }
 0x627   : > { %v4118_v28 = vcombine.high %v4073_v15, %v4105_v54  ;;  %v4098_v52 = vcombine.high %v4032_v57, %v4048_v63  ;;  %v4202_v33 = vcombine.high %v4136_v3, %v4152_v11  ;;  %v4409_v10 = vcombine.low %v8046_v55, %v8078_v6 }
 0x628   : > { %v4525_v48 = vcombine.low %v8137_v7, %v8148_v17  ;;  %v4526_v2 = vcombine.high %v8137_v7, %v8148_v17  ;;  %v4527_v34 = vcombine.low %v8143_v12, %v8151_v4  ;;  %v4528_v5 = vcombine.high %v8143_v12, %v8151_v4 }
 0x629   : > { %v4234_v51 = vcombine.high %v4168_v36, %v4184_v30  ;;  %v4425_v41 = vcombine.low %v8088_v59, %v8111_v27  ;;  %v4253_v46 = vcombine.low %v4209_v22, %v4241_v25  ;;  %v4254_v9 = vcombine.high %v4209_v22, %v4241_v25 }
 0x62a   : > { %4593 = vxpose.xlu0.b32.start [1/2] (short) (narrow) %v4115_v37, 8  ;;  %4625 = vxpose.xlu1.b32.start [1/2] (short) (narrow) %v4116_v40, 8  ;;  %v4441_v21 = vcombine.low %v8090_v31, %v8122_v23  ;;  %v4080_v43 = vrot.slane %v4066_v44, %v7741_v20  ;;  %v4112_v50 = vrot.slane %v4098_v52, %v7741_v20 }
 0x62b   : > { %v4417_v8 = vrot.slane %v4409_v10, %v7648_v18  ;;  %v4401_v57 = vrot.slane %v4393_v32, %v7648_v18  ;;  %v4216_v55 = vrot.slane %v4202_v33, %v7741_v20  ;;  %v4433_v59 = vrot.slane %v4425_v41, %v7648_v18 }
 0x62c   : > { %v4449_v6 = vrot.slane %v4441_v21, %v7648_v18  ;;  %v4248_v27 = vrot.slane %v4234_v51, %v7741_v20  ;;  %v4119_v63 = vcombine.low %v4080_v43, %v4112_v50  ;;  %v4120_v31 = vcombine.high %v4080_v43, %v4112_v50 }
 0x62d   : > { %v4457_v23 = vcombine.low %v4401_v57, %v4417_v8  ;;  %v4458_v45 = vcombine.high %v4401_v57, %v4417_v8 }
 0x62e   : > { %4594 = vxpose.xlu0.b32.end [2/2] (short) (narrow) %v4251_v60, 8  ;;  %4626 = vxpose.xlu1.b32.end [2/2] (short) (narrow) %v4252_v0, 8  ;;  %v4489_v3 = vcombine.low %v4433_v59, %v4449_v6  ;;  %v4255_v11 = vcombine.low %v4216_v55, %v4248_v27  ;;  %v4256_v30 = vcombine.high %v4216_v55, %v4248_v27 }
 0x62f   : > { %v4465_v36 = vrot.slane %v4457_v23, %v7741_v20  ;;  %v4490_v60 = vcombine.high %v4433_v59, %v4449_v6  ;;  %v4472_v0 = vrot.slane %v4458_v45, %v7741_v20 }
 0x630   : > { %v4497_v37 = vrot.slane %v4489_v3, %v7741_v20 }
 0x631   : > { %v4504_v15 = vrot.slane %v4490_v60, %v7741_v20 }
 0x632   : > { %4657 = vxpose.xlu0.b32.start [1/2] (short) (narrow) %v4117_v24, 8  ;;  %4689 = vxpose.xlu1.b32.start [1/2] (short) (narrow) %v4118_v28, 8  ;;  %v4522_v40 = vcombine.high %v4465_v36, %v4497_v37  ;;  %v4521_v16 = vcombine.low %v4465_v36, %v4497_v37 }
 0x633   : > { %v4524_v38 = vcombine.high %v4472_v0, %v4504_v15  ;;  %v4523_v49 = vcombine.low %v4472_v0, %v4504_v15 }
 0x636   : > { %4658 = vxpose.xlu0.b32.end [2/2] (short) (narrow) %v4253_v46, 8  ;;  %4690 = vxpose.xlu1.b32.end [2/2] (short) (narrow) %v4254_v9, 8 }
 0x63a   : > { %4721 = vxpose.xlu0.b32.start [1/2] (short) (narrow) %v4119_v63, 8  ;;  %4753 = vxpose.xlu1.b32.start [1/2] (short) (narrow) %v4120_v31, 8 }
 0x63e   : > { %4722 = vxpose.xlu0.b32.end [2/2] (short) (narrow) %v4255_v11, 8  ;;  %4754 = vxpose.xlu1.b32.end [2/2] (short) (narrow) %v4256_v30, 8 }
 0x642   : > { %4785 = vxpose.xlu0.b32.start [1/2] (short) (narrow) %v4385_v53, 8  ;;  %4817 = vxpose.xlu1.b32.start [1/2] (short) (narrow) %v4386_v39, 8 }
 0x646   : > { %4818 = vxpose.xlu1.b32.end [2/2] (short) (narrow) %v4522_v40, 8  ;;  %4786 = vxpose.xlu0.b32.end [2/2] (short) (narrow) %v4521_v16, 8 }
 0x64a   : > { %4881 = vxpose.xlu1.b32.start [1/2] (short) (narrow) %v4388_v29, 8  ;;  %4849 = vxpose.xlu0.b32.start [1/2] (short) (narrow) %v4387_v35, 8 }
 0x64e   : > { %4882 = vxpose.xlu1.b32.end [2/2] (short) (narrow) %v4524_v38, 8  ;;  %4850 = vxpose.xlu0.b32.end [2/2] (short) (narrow) %v4523_v49, 8 }
 0x69e   : > { %v4577_v53 = vpop.trf.xlu0  ;;  %v4545_v39 = vpop.trf.xlu1 }
 0x6a6   : > { %v4609_v54 = vpop.trf.xlu0  ;;  %v4641_v22 = vpop.trf.xlu1 }
 0x6a7   : > { %v5041_v25 = vcombine.low %v4545_v39, %v4609_v54  ;;  %v5049_v44 = vcombine.low %v4577_v53, %v4641_v22 }
 0x6a9   : > { %v5048_v32 = vrot.slane %v5041_v25, %v7648_v18  ;;  %v5056_v24 = vrot.slane %v5049_v44, %v7648_v18 }
 0x6ab   : > { %v5074_v28 = vcombine.high %v5048_v32, %v5056_v24  ;;  %v5073_v8 = vcombine.low %v5048_v32, %v5056_v24 }
 0x6ad   : > { %v8208_v31 = vrot.slane %v5073_v8, %v7741_v20  ;;  %v8211_v23 = vrot.slane %v5074_v28, %v7741_v20 }
 0x6ae   : > { %v3193_v29 = vpop.f32.mrf.mxu1  ;;  %v4673_v62 = vpop.trf.xlu0 }
 0x6af   : > { %v3413_v52 = vsel %vm3124_vm4, %v3193_v29, -inf  ;;  %v4705_v35 = vpop.trf.xlu1 }
 0x6b0   : > { %v6504_v19 = vpop.f32.mrf.mxu1  ;;  %3414 = vmax.xlane.f32.xlu0 %v3413_v52 }
 0x6b2   : > { %v3265_v33 = vpop.f32.mrf.mxu1 }
 0x6b3   : > { %v3416_v10 = vsel %vm3124_vm4, %v3265_v33, -inf }
 0x6b4   : > { %v6511_v51 = vpop.f32.mrf.mxu1  ;;  %3417 = vmax.xlane.f32.xlu1 %v3416_v10 }
 0x6b6   : > { %v3337_v41 = vpop.f32.mrf.mxu1  ;;  %v4737_v46 = vpop.trf.xlu0 }
 0x6b7   : > { %v3419_v9 = vsel %vm3124_vm4, %v3337_v41, -inf  ;;  %v5057_v21 = vcombine.low %v4673_v62, %v4737_v46  ;;  %v4769_v43 = vpop.trf.xlu1 }
 0x6b8   : > { %v6518_v50 = vpop.f32.mrf.mxu1  ;;  %3420 = vmax.xlane.f32.xlu1 %v3419_v9  ;;  %v5065_v57 = vcombine.low %v4705_v35, %v4769_v43 }
 0x6b9   : > { %v5064_v55 = vrot.slane %v5057_v21, %v7648_v18 }
 0x6ba   : > { %v3409_v6 = vpop.f32.mrf.mxu1  ;;  %v5072_v59 = vrot.slane %v5065_v57, %v7648_v18 }
 0x6bb   : > { %v3422_v27 = vsel %vm3124_vm4, %v3409_v6, -inf }
 0x6bc   : > { %v6525_v63 = vpop.f32.mrf.mxu1  ;;  %3423 = vmax.xlane.f32.xlu0 %v3422_v27  ;;  %v5089_v3 = vcombine.low %v5064_v55, %v5072_v59  ;;  %v5090_v11 = vcombine.high %v5064_v55, %v5072_v59 }
 0x6be   : > { %v8214_v30 = vrot.slane %v5089_v3, %v7741_v20  ;;  %v8217_v36 = vrot.slane %v5090_v11, %v7741_v20  ;;  %v4801_v37 = vpop.trf.xlu0  ;;  %v4833_v16 = vpop.trf.xlu1 }
 0x6c0   : > { %v5105_v40 = vcombine.low %v8208_v31, %v8214_v30  ;;  %v5106_v45 = vcombine.high %v8208_v31, %v8214_v30  ;;  %v5107_v60 = vcombine.low %v8211_v23, %v8217_v36  ;;  %v5108_v0 = vcombine.high %v8211_v23, %v8217_v36  ;;  %v5801_v23 = vld [vmem:[%s8612_s29 + $0x38] sm:$0xff]  ;;  %v5800_v36 = vld [vmem:[%s8613_s10 + $0x30] sm:$0xff]  ;;  %s8614_s29 = sld [smem:[#allocation38_spill]] }
 0x6c1   : > { %6547 = vmatpush3.msra.mxu0 %v5801_v23 }
 0x6c2   : > { %6528 = vmatprep.mubr.msk.f32.mxu1 %vm3124_vm4, %v5105_v40  ;;  %6548 = vmatprep.subr.mxu0 %v8609_v56 }
 0x6c3   : > { %6549 = vmatpush3.msra.mxu0 %v5800_v36 }
 0x6c4   : > { %6550 = vmatprep.subr.mxu0 %v8609_v56 }
 0x6c6   : > { %v4865_v15 = vpop.trf.xlu0  ;;  %v4897_v38 = vpop.trf.xlu1 }
 0x6c7   : > { %v5109_v49 = vcombine.low %v4801_v37, %v4865_v15  ;;  %v5117_v53 = vcombine.low %v4833_v16, %v4897_v38 }
 0x6c9   : > { %v8229_v39 = vrot.slane %v5109_v49, %v7648_v18  ;;  %v8232_v54 = vrot.slane %v5117_v53, %v7648_v18 }
 0x6cb   : > { %v5141_v22 = vcombine.low %v8229_v39, %v8232_v54  ;;  %v5142_v25 = vcombine.high %v8229_v39, %v8232_v54 }
 0x6cd   : > { %v5156_v15 = vrot.slane %v5142_v25, %v7741_v20 }
 0x6e9   : > { %4913 = vxpose.xlu0.b32.start [1/2] (short) (narrow) %v4389_v47, 8 }
 0x6eb   : > { %4945 = vxpose.xlu1.b32.start [1/2] (short) (narrow) %v4390_v14, 8 }
 0x6ed   : > { %4914 = vxpose.xlu0.b32.end [2/2] (short) (narrow) %v4525_v48, 8 }
 0x6ef   : > { %4946 = vxpose.xlu1.b32.end [2/2] (short) (narrow) %v4526_v2, 8 }
 0x739   : > { %v3415_v44 = vpop.xlane.xlu0 %3414 }
 0x73a   : > { %v3425_v32 = vsub.f32 %v3193_v29, %v3415_v44  ;;  %v5798_v44 = vld [vmem:[%s8613_s10 + $0x20] sm:$0xff] }
 0x73c   : > { %v3429_v24 = vmul.f32 1.442695, %v3425_v32  ;;  %v5797_v32 = vld [vmem:[%s8613_s10 + $0x18] sm:$0xff] }
 0x73d   : > { %v3418_v28 = vpop.xlane.xlu1 %3417 }
 0x73e   : > { %6799 = vpow2.f32 %v3429_v24  ;;  %v3426_v52 = vsub.f32 %v3265_v33, %v3418_v28 }
 0x740   : > { %v3431_v19 = vmul.f32 1.442695, %v3426_v52 }
 0x741   : > { %v3421_v47 = vpop.xlane.xlu1 %3420 }
 0x742   : > { %6801 = vpow2.f32 %v3431_v19  ;;  %v3427_v62 = vsub.f32 %v3337_v41, %v3421_v47 }
 0x744   : > { %v3433_v61 = vmul.f32 1.442695, %v3427_v62 }
 0x745   : > { %v3424_v1 = vpop.xlane.xlu0 %3423 }
 0x746   : > { %6803 = vpow2.f32 %v3433_v61  ;;  %v3428_v14 = vsub.f32 %v3409_v6, %v3424_v1  ;;  %v5149_v6 = vrot.slane %v5141_v22, %v7741_v20 }
 0x748   : > { %v3435_v35 = vmul.f32 1.442695, %v3428_v14 }
 0x74a   : > { %6805 = vpow2.f32 %v3435_v35 }
 0x74b   : > { %v6800_v48 = vpop.eup %6799 }
 0x74c   : > { %v3437_v7 = vsel %vm3124_vm4, %v6800_v48, 0.0 }
 0x74d   : > { %3438 = vadd.xlane.f32.xlu1 %v3437_v7 }
 0x74f   : > { %v6802_v17 = vpop.eup %6801 }
 0x750   : > { %v3440_v2 = vsel %vm3124_vm4, %v6802_v17, 0.0 }
 0x751   : > { %3441 = vadd.xlane.f32.xlu1 %v3440_v2 }
 0x753   : > { %v6804_v29 = vpop.eup %6803 }
 0x754   : > { %v3443_v33 = vsel %vm3124_vm4, %v6804_v29, 0.0 }
 0x755   : > { %3444 = vadd.xlane.f32.xlu0 %v3443_v33 }
 0x757   : > { %v6806_v10 = vpop.eup %6805 }
 0x758   : > { %v3446_v51 = vsel %vm3124_vm4, %v6806_v10, 0.0 }
 0x759   : > { %3447 = vadd.xlane.f32.xlu1 %v3446_v51  ;;  %v5795_v51 = vld [vmem:[%s8613_s10 + $0x8] sm:$0xff] }
 0x765   : > { %v4929_v42 = vpop.trf.xlu0 }
 0x767   : > { %v4961_v41 = vpop.trf.xlu1 }
 0x782   : > { %4977 = vxpose.xlu0.b32.start [1/2] (short) (narrow) %v4391_v13, 8 }
 0x786   : > { %4978 = vxpose.xlu0.b32.end [2/2] (short) (narrow) %v4527_v34, 8 }
 0x78c   : > { %5009 = vxpose.xlu1.b32.start [1/2] (short) (narrow) %v4392_v58, 8 }
 0x790   : > { %5010 = vxpose.xlu1.b32.end [2/2] (short) (narrow) %v4528_v5, 8 }
 0x7d6   : > { %v3439_v46 = vpop.xlane.xlu1 %3438 }
 0x7d7   : > { %6807 = vrcp.f32 %v3439_v46 }
 0x7da   : > { %v3442_v9 = vpop.xlane.xlu1 %3441 }
 0x7db   : > { %6809 = vrcp.f32 %v3442_v9 }
 0x7de   : > { %v3445_v26 = vpop.xlane.xlu0 %3444 }
 0x7df   : > { %6811 = vrcp.f32 %v3445_v26  ;;  %v5794_v26 = vld [vmem:[%s8613_s10] sm:$0xff] }
 0x7e2   : > { %v3448_v58 = vpop.xlane.xlu1 %3447 }
 0x7e3   : > { %6813 = vrcp.f32 %v3448_v58 }
 0x7e4   : > { %v6808_v21 = vpop.eup %6807 }
 0x7e5   : > { %v3453_v43 = vmul.f32 %v6808_v21, %v6800_v48 }
 0x7e7   : > { %6526 = vmatprep.subr.msk.mxu1 %vm3124_vm4, %v3453_v43 }
 0x7e8   : > { %v6810_v13 = vpop.eup %6809  ;;  %6527 = vmatpush3.xpose.msk.msra.mxu1 %vm3124_vm4, %v3453_v43 }
 0x7e9   : > { %v3454_v34 = vmul.f32 %v6810_v13, %v6802_v17 }
 0x7eb   : > { %6531 = vmatprep.subr.msk.mxu1 %vm3124_vm4, %v3454_v34 }
 0x7ec   : > { %v6812_v27 = vpop.eup %6811 }
 0x7ed   : > { %v3455_v11 = vmul.f32 %v6812_v27, %v6804_v29 }
 0x7f0   : > { %v6814_v37 = vpop.eup %6813 }
 0x7f1   : > { %v3456_v38 = vmul.f32 %v6814_v37, %v6806_v10  ;;  %v5796_v10 = vld [vmem:[%s8613_s10 + $0x10] sm:$0xff] }
 0x7fe   : > { %v4993_v12 = vpop.trf.xlu0 }
 0x7ff   : > { %v5125_v4 = vcombine.low %v4929_v42, %v4993_v12 }
 0x801   : > { %v5132_v8 = vrot.slane %v5125_v4, %v7648_v18 }
 0x808   : > { %v5025_v5 = vpop.trf.xlu1 }
 0x809   : > { %v5133_v50 = vcombine.low %v4961_v41, %v5025_v5 }
 0x80b   : > { %v5140_v57 = vrot.slane %v5133_v50, %v7648_v18 }
 0x80d   : > { %v5157_v55 = vcombine.low %v5132_v8, %v5140_v57  ;;  %v5158_v63 = vcombine.high %v5132_v8, %v5140_v57 }
 0x80f   : > { %v5165_v59 = vrot.slane %v5157_v55, %v7741_v20  ;;  %v5172_v40 = vrot.slane %v5158_v63, %v7741_v20 }
 0x811   : > { %v5173_v3 = vcombine.low %v5149_v6, %v5165_v59  ;;  %v5174_v16 = vcombine.high %v5149_v6, %v5165_v59  ;;  %v5175_v31 = vcombine.low %v5156_v15, %v5172_v40  ;;  %v5176_v30 = vcombine.high %v5156_v15, %v5172_v40 }
 0x813   : > { %6529 = vmatmul.mubr.msk.f32.vlgmr.msra.gmra.mxu1 %vm3124_vm4, %v5173_v3 }
 0x814   : > { %6532 = vmatpush3.xpose.msk.msra.mxu1 %vm3124_vm4, %v3454_v34  ;;  %6533 = vmatprep.mubr.msk.f32.mxu1 %vm3124_vm4, %v5106_v45 }
 0x815   : > { %6536 = vmatprep.subr.msk.mxu1 %vm3124_vm4, %v3455_v11 }
 0x817   : > { %6534 = vmatmul.mubr.msk.f32.vlgmr.msra.gmra.mxu1 %vm3124_vm4, %v5174_v16 }
 0x818   : > { %6537 = vmatpush3.xpose.msk.msra.mxu1 %vm3124_vm4, %v3455_v11  ;;  %6538 = vmatprep.mubr.msk.f32.mxu1 %vm3124_vm4, %v5107_v60 }
 0x819   : > { %6541 = vmatprep.subr.msk.mxu1 %vm3124_vm4, %v3456_v38 }
 0x81b   : > { %6539 = vmatmul.mubr.msk.f32.vlgmr.msra.gmra.mxu1 %vm3124_vm4, %v5175_v31  ;;  %v6339_v31 = vld [vmem:[%s8614_s29] ss:$0 sm:$0xff] }
 0x81c   : > { %6542 = vmatpush3.xpose.msk.msra.mxu1 %vm3124_vm4, %v3456_v38  ;;  %6543 = vmatprep.mubr.msk.f32.mxu1 %vm3124_vm4, %v5108_v0  ;;  %v5799_v0 = vld [vmem:[%s8613_s10 + $0x28] sm:$0xff] }
 0x81d   : > { %6551 = vmatpush3.msra.mxu0 %v5799_v0 }
 0x81e   : > { %6552 = vmatprep.subr.mxu0 %v8609_v56 }
 0x81f   : > { %6544 = vmatmul.mubr.msk.f32.vlgmr.msra.gmra.mxu1 %vm3124_vm4, %v5176_v30  ;;  %6553 = vmatpush3.msra.mxu0 %v5798_v44 }
 0x820   : > { %6554 = vmatprep.subr.mxu0 %v8609_v56 }
 0x821   : > { %6555 = vmatpush3.msra.mxu0 %v5797_v32 }
 0x822   : > { %6556 = vmatprep.subr.mxu0 %v8609_v56 }
 0x823   : > { %6557 = vmatpush3.msra.mxu0 %v5796_v10 }
 0x824   : > { %6558 = vmatprep.subr.mxu0 %v8609_v56 }
 0x825   : > { %6559 = vmatpush3.msra.mxu0 %v5795_v51 }
 0x826   : > { %6560 = vmatprep.subr.mxu0 %v8609_v56 }
 0x827   : > { %6561 = vmatpush3.msra.mxu0 %v5794_v26 }
 0x8d3   : > { %v6530_v45 = vpop.f32.mrf.mxu1 }
 0x8d5   : > { %v5252_v49 = vpop.f32.mrf.mxu1 }
 0x8d6   : > { %5513 = vxpose.xlu0.b32.start [1/2] (short) (narrow) %v5252_v49, 8 }
 0x8d7   : > { %v6535_v53 = vpop.f32.mrf.mxu1 }
 0x8d9   : > { %v5336_v60 = vpop.f32.mrf.mxu1 }
 0x8da   : > { %5514 = vxpose.xlu0.b32.end [2/2] (short) (narrow) %v6530_v45, 8  ;;  %5545 = vxpose.xlu1.b32.start [1/2] (short) (narrow) %v5336_v60, 8 }
 0x8db   : > { %v6540_v39 = vpop.f32.mrf.mxu1 }
 0x8dd   : > { %v5420_v54 = vpop.f32.mrf.mxu1 }
 0x8de   : > { %5546 = vxpose.xlu1.b32.end [2/2] (short) (narrow) %v6535_v53, 8  ;;  %5577 = vxpose.xlu0.b32.start [1/2] (short) (narrow) %v5420_v54, 8  ;;  %v6817_v53 = vld [vmem:[%s1276_s5] sm:$0xff] }
 0x8df   : > { %v6545_v22 = vpop.f32.mrf.mxu1 }
 0x8e1   : > { %v5504_v25 = vpop.f32.mrf.mxu1 }
 0x8e2   : > { %5578 = vxpose.xlu0.b32.end [2/2] (short) (narrow) %v6540_v39, 8  ;;  %5609 = vxpose.xlu1.b32.start [1/2] (short) (narrow) %v5504_v25, 8 }
 0x8e6   : > { %5610 = vxpose.xlu1.b32.end [2/2] (short) (narrow) %v6545_v22, 8 }
 0x952   : > { %v5529_v24 = vpop.trf.xlu0 }
 0x956   : > { %v5561_v28 = vpop.trf.xlu1 }
 0x95a   : > { %v5593_v52 = vpop.trf.xlu0 }
 0x95b   : > { %v5641_v19 = vcombine.low %v5529_v24, %v5593_v52  ;;  %v5642_v47 = vcombine.high %v5529_v24, %v5593_v52 }
 0x95d   : > { %v5649_v14 = vrot.slane %v5641_v19, %v7648_v18  ;;  %v5656_v35 = vrot.slane %v5642_v47, %v7648_v18 }
 0x95e   : > { %v5625_v62 = vpop.trf.xlu1 }
 0x95f   : > { %v5657_v61 = vcombine.low %v5561_v28, %v5625_v62  ;;  %v5658_v1 = vcombine.high %v5561_v28, %v5625_v62  ;;  %v6341_v28 = vld [vmem:[%s8615_s17] ss:$0 sm:$0xff] }
 0x961   : > { %v5665_v48 = vrot.slane %v5657_v61, %v7648_v18  ;;  %v5672_v7 = vrot.slane %v5658_v1, %v7648_v18 }
 0x963   : > { %v5673_v17 = vcombine.low %v5649_v14, %v5665_v48  ;;  %v5674_v2 = vcombine.high %v5649_v14, %v5665_v48  ;;  %v5689_v29 = vcombine.low %v5656_v35, %v5672_v7  ;;  %v5690_v33 = vcombine.high %v5656_v35, %v5672_v7 }
 0x965   : > { %v5681_v41 = vrot.slane %v5673_v17, %v7741_v20  ;;  %v5688_v46 = vrot.slane %v5674_v2, %v7741_v20  ;;  %v5697_v9 = vrot.slane %v5689_v29, %v7741_v20  ;;  %v5704_v21 = vrot.slane %v5690_v33, %v7741_v20 }
 0x967   : > { %v5709_v43 = vcombine.low %v5681_v41, %v5688_v46  ;;  %v6337_v13 = vcombine.high %v5681_v41, %v5688_v46  ;;  %v5725_v34 = vcombine.low %v5697_v9, %v5704_v21  ;;  %v6338_v42 = vcombine.high %v5697_v9, %v5704_v21 }
 0x969   : > { %v5716_v58 = vrot.slane %v5709_v43, %v7648_v18  ;;  %v5724_v12 = vrot.slane %v6337_v13, %v7648_v18  ;;  %v5732_v4 = vrot.slane %v5725_v34, %v7648_v18  ;;  %v5740_v5 = vrot.slane %v6338_v42, %v7648_v18 }
 0x96b   : > { %v5742_v50 = vcombine.high %v5716_v58, %v5724_v12  ;;  %v5758_v8 = vcombine.high %v5732_v4, %v5740_v5  ;;  %v5741_v57 = vcombine.low %v5716_v58, %v5724_v12  ;;  %v5757_v55 = vcombine.low %v5732_v4, %v5740_v5 }
 0x96d   : > { %v5756_v6 = vrot.slane %v5742_v50, %v7741_v20  ;;  %v5772_v56 = vrot.slane %v5758_v8, %v7741_v20  ;;  %v5749_v59 = vrot.slane %v5741_v57, %v7741_v20  ;;  %v5765_v27 = vrot.slane %v5757_v55, %v7741_v20 }
 0x96f   : > { %v5775_v63 = vcombine.low %v5756_v6, %v5772_v56  ;;  %v5774_v3 = vcombine.high %v5749_v59, %v5765_v27  ;;  %v5773_v11 = vcombine.low %v5749_v59, %v5765_v27  ;;  %v5776_v18 = vcombine.high %v5756_v6, %v5772_v56 }
 0x971   : > { %5782 = vrot.lane.b32.xlu1 %v5775_v63, %s7076_s16  ;;  %5778 = vrot.lane.b32.xlu0 %v5774_v3, %s7077_s14 }
 0x975   : > { %5786 = vrot.lane.b32.xlu1 %v5776_v18, %s7078_s27  ;;  %s8616_s27 = sld [smem:[#allocation40_spill]] }
 0x97b   : > { %v6342_v19 = vld [vmem:[%s8616_s27] ss:$0 sm:$0xff] }
 0x9e3   : > { %v5783_v37 = vpop.permute.xlu1 %5782  ;;  %v5779_v40 = vpop.permute.xlu0 %5778 }
 0x9e4   : > { %v5789_v16 = vsel %vm3124_vm4, %v5773_v11, %v5779_v40 }
 0x9e5   : > { %v5791_v20 = vsel %vm5790_vm5, %v5789_v16, %v5783_v37 }
 0x9e7   : > { %v5787_v15 = vpop.permute.xlu1 %5786 }
 0x9e8   : > { %v5793_v38 = vsel %vm5792_vm6, %v5791_v20, %v5787_v15 }
 0x9e9   : > { %6563 = vmatmul.mubr.msk.f32.vlgmr.msra.gmra.mxu0 %vm1280_vm2, %v5793_v38 }
 0xaa9   : > { %v5878_v30 = vpop.f32.mrf.mxu0 }
 0xaaa   : > { %v5879_v45 = vadd.f32 %v6339_v31, %v5878_v30 }
 0xaab   : > { %v6564_v49 = vpop.f32.mrf.mxu0 }
 0xaac   : > { %v5882_v60 = vadd.f32 %v6817_v53, %v5879_v45 }
 0xaae   : > { %5884 = vst.msk [vmem:[%s5883_s23] sm:$0xff] %vm1280_vm2, %v5882_v60  ;;  %v5887_v39 = vsel %vm1280_vm2, %v5882_v60, 0.0 }
 0xaaf   : > { %5888 = vadd.xlane.f32.xlu1 %v5887_v39 }
 0xb38   : > { %v5889_v54 = vpop.xlane.xlu1 %5888 }
 0xb39   : > { %v5890_v22 = vmul.f32 0.015625, %v5889_v54 }
 0xb3b   : > { %v5891_v25 = vsub.f32 %v5882_v60, %v5890_v22 }
 0xb3d   : > { %v5892_v23 = vmul.f32 %v5891_v25, %v5891_v25 }
 0xb3f   : > { %v5893_v36 = vsel %vm1280_vm2, %v5892_v23, 0.0 }
 0xb40   : > { %5894 = vadd.xlane.f32.xlu0 %v5893_v36 }
 0xbc9   : > { %v5895_v0 = vpop.xlane.xlu0 %5894 }
 0xbca   : > { %v5896_v44 = vmul.f32 0.015625, %v5895_v0 }
 0xbcc   : > { %v5897_v32 = vadd.f32 1e-05, %v5896_v44 }
 0xbce   : > { %6815 = vrsqrt.f32 %v5897_v32 }
 0xbdb   : > { %v6816_v24 = vpop.eup %6815 }
 0xbdc   : > { %v5899_v52 = vmul.f32 %v6816_v24, %v5891_v25 }
 0xbde   : > { %v5906_v47 = vmul.f32 %v6341_v28, %v5899_v52 }
 0xbe0   : > { %v5913_v62 = vadd.f32 %v6342_v19, %v5906_v47 }
 0xbe2   : > { %5915 = vst.msk [vmem:[%s5914_s8] sm:$0xff] %vm1280_vm2, %v5913_v62 }
 0xbe3 PF: > { %v5927_v61 = vld [vmem:[%s7410_s28 + $0x38] sm:$0xff]  ;;  %v7079_v1 = vmov 0.0   ;;  %v5926_v14 = vld [vmem:[%s7410_s28 + $0x30] sm:$0xff]  ;;  %vm7080_vm7 = vmmov 0   ;;  %v5925_v35 = vld [vmem:[%s7410_s28 + $0x28] sm:$0xff]  ;;  %s5918_s13 = scalar_lea.vmem [#allocation5], %s7394_s4 }
 0xbe4   : > { %6565 = vmatprep.subr.mxu0 %v7079_v1  ;;  %6581 = vmatprep.mubr.msk.f32.mxu0 %vm7080_vm7, %v7079_v1  ;;  %v6031_v48 = vld [vmem:[%s7408_s11 + $0x78] sm:$0xff]  ;;  %v6030_v7 = vld [vmem:[%s7408_s11 + $0x70] sm:$0xff]  ;;  %v5924_v17 = vld [vmem:[%s7410_s28 + $0x20] sm:$0xff]  ;;  %vm5935_vm8 = vcmask 523264   ;;  %s8617_s23 = sld [smem:[#allocation41_spill]]  ;;  %p6345_p11 = scmp.ne.s32.totalorder %s7036_s30, 1 }
 0xbe5   : > { %6566 = vmatpush3.msra.mxu0 %v5927_v61  ;;  %6584 = vmatprep.subr.mxu1 %v7079_v1  ;;  %v6029_v2 = vld [vmem:[%s7408_s11 + $0x68] sm:$0xff]  ;;  %v5923_v29 = vld [vmem:[%s7410_s28 + $0x18] sm:$0xff]  ;;  %v5922_v10 = vld [vmem:[%s7410_s28 + $0x10] sm:$0xff]  ;;  %s8619_s16 = sld [smem:[#allocation43_spill]] (!%p6345_p11)  ;;  %s8620_s14 = scalar_lea.vmem (!%p6345_p11), [#allocation14], %s7389_s26 }
 0xbe6   : > { %6567 = vmatprep.subr.mxu0 %v7079_v1  ;;  %6616 = vmatprep.mubr.msk.f32.mxu1 %vm7080_vm7, %v7079_v1  ;;  %v6028_v33 = vld [vmem:[%s7408_s11 + $0x60] sm:$0xff]  ;;  %v5921_v51 = vld [vmem:[%s7410_s28 + $0x8] sm:$0xff]  ;;  %v6027_v9 = vld [vmem:[%s7408_s11 + $0x58] sm:$0xff] }
 0xbe7   : > { %6568 = vmatpush3.msra.mxu0 %v5926_v14  ;;  %6585 = vmatpush3.msra.mxu1 %v6031_v48  ;;  %v5920_v41 = vld [vmem:[%s7410_s28] sm:$0xff]  ;;  %v6026_v21 = vld [vmem:[%s7408_s11 + $0x50] sm:$0xff]  ;;  %v6023_v34 = vld [vmem:[%s7408_s11 + $0x38] sm:$0xff] }
 0xbe8   : > { %6569 = vmatprep.subr.mxu0 %v7079_v1  ;;  %6586 = vmatprep.subr.mxu1 %v7079_v1  ;;  %v6025_v43 = vld [vmem:[%s7408_s11 + $0x48] sm:$0xff]  ;;  %v6024_v13 = vld [vmem:[%s7408_s11 + $0x40] sm:$0xff]  ;;  %v6022_v42 = vld [vmem:[%s7408_s11 + $0x30] sm:$0xff] }
 0xbe9   : > { %6570 = vmatpush3.msra.mxu0 %v5925_v35  ;;  %6587 = vmatpush3.msra.mxu1 %v6030_v7  ;;  %v5919_v46 = vld [vmem:[%s5918_s13] sm:$0xff]  ;;  %v6021_v26 = vld [vmem:[%s7408_s11 + $0x28] sm:$0xff]  ;;  %v6019_v12 = vld [vmem:[%s7408_s11 + $0x18] sm:$0xff] }
 0xbea   : > { %6571 = vmatprep.subr.mxu0 %v7079_v1  ;;  %6588 = vmatprep.subr.mxu1 %v7079_v1  ;;  %v6020_v58 = vld [vmem:[%s7408_s11 + $0x20] sm:$0xff]  ;;  %v6018_v4 = vld [vmem:[%s7408_s11 + $0x10] sm:$0xff]  ;;  %v6017_v5 = vld [vmem:[%s7408_s11 + $0x8] sm:$0xff]  ;;  %s8618_s5 = scalar_lea.vmem %s8617_s23, %s7397_s6  ;;  %s6108_s6 = scalar_lea.vmem (!%p6345_p11), [#allocation4], %s7394_s4 }
 0xbeb   : > { %6572 = vmatpush3.msra.mxu0 %v5924_v17  ;;  %6589 = vmatpush3.msra.mxu1 %v6029_v2  ;;  %v6016_v50 = vld [vmem:[%s7408_s11] sm:$0xff]  ;;  %s6014_s11 = scalar_lea.vmem [#allocation6], %s7394_s4 }
 0xbec   : > { %6573 = vmatprep.subr.mxu0 %v7079_v1  ;;  %6590 = vmatprep.subr.mxu1 %v7079_v1  ;;  %v6343_v8 = vld [vmem:[%s8618_s5] ss:$0 sm:$0xff] }
 0xbed   : > { %6574 = vmatpush3.msra.mxu0 %v5923_v29  ;;  %6591 = vmatpush3.msra.mxu1 %v6028_v33  ;;  %v6015_v11 = vld [vmem:[%s6014_s11] sm:$0xff] }
 0xbee   : > { %6575 = vmatprep.subr.mxu0 %v7079_v1  ;;  %6592 = vmatprep.subr.mxu1 %v7079_v1 }
 0xbef   : > { %6576 = vmatpush3.msra.mxu0 %v5922_v10  ;;  %6593 = vmatpush3.msra.mxu1 %v6027_v9 }
 0xbf0   : > { %6577 = vmatprep.subr.mxu0 %v7079_v1  ;;  %6594 = vmatprep.subr.mxu1 %v7079_v1 }
 0xbf1   : > { %6578 = vmatpush3.msra.mxu0 %v5921_v51  ;;  %6595 = vmatpush3.msra.mxu1 %v6026_v21 }
 0xbf2   : > { %6579 = vmatprep.subr.mxu0 %v7079_v1  ;;  %6596 = vmatprep.subr.mxu1 %v7079_v1 }
 0xbf3   : > { %6580 = vmatpush3.msra.mxu0 %v5920_v41  ;;  %6597 = vmatpush3.msra.mxu1 %v6025_v43 }
 0xbf4   : > { %6582 = vmatmul.mubr.msk.f32.vlgmr.msra.gmra.mxu0 %vm5935_vm8, %v5919_v46  ;;  %6598 = vmatprep.subr.mxu1 %v7079_v1 }
 0xbf5   : > { %6599 = vmatpush3.msra.mxu1 %v6024_v13 }
 0xbf6   : > { %6600 = vmatprep.subr.mxu1 %v7079_v1 }
 0xbf7   : > { %6601 = vmatpush3.msra.mxu1 %v6023_v34 }
 0xbf8   : > { %6602 = vmatprep.subr.mxu1 %v7079_v1 }
 0xbf9   : > { %6603 = vmatpush3.msra.mxu1 %v6022_v42 }
 0xbfa   : > { %6604 = vmatprep.subr.mxu1 %v7079_v1 }
 0xbfb   : > { %6605 = vmatpush3.msra.mxu1 %v6021_v26 }
 0xbfc   : > { %6606 = vmatprep.subr.mxu1 %v7079_v1 }
 0xbfd   : > { %6607 = vmatpush3.msra.mxu1 %v6020_v58 }
 0xbfe   : > { %6608 = vmatprep.subr.mxu1 %v7079_v1 }
 0xbff   : > { %6609 = vmatpush3.msra.mxu1 %v6019_v12 }
 0xc00   : > { %6610 = vmatprep.subr.mxu1 %v7079_v1 }
 0xc01   : > { %6611 = vmatpush3.msra.mxu1 %v6018_v4 }
 0xc02   : > { %6612 = vmatprep.subr.mxu1 %v7079_v1 }
 0xc03   : > { %6613 = vmatpush3.msra.mxu1 %v6017_v5 }
 0xc04   : > { %6614 = vmatprep.subr.mxu1 %v7079_v1 }
 0xc05   : > { %6615 = vmatpush3.msra.mxu1 %v6016_v50 }
 0xcb4   : > { %v6005_v57 = vpop.f32.mrf.mxu0 }
 0xcb5   : > { %v6006_v55 = vadd.f32 %v6343_v8, %v6005_v57 }
 0xcb6   : > { %v6583_v6 = vpop.f32.mrf.mxu0 }
 0xcb7   : > { %v6010_v56 = vmul.f32 0.70710677, %v6006_v55  ;;  %v6009_v27 = vmul.f32 0.5, %v6006_v55 }
 0xcb9   : > { %6818 = verf.f32 %v6010_v56 }
 0xcc6   : > { %v6819_v59 = vpop.eup %6818 }
 0xcc7   : > { %v6012_v63 = vadd.f32 1.0, %v6819_v59 }
 0xcc9   : > { %v6013_v3 = vmul.f32 %v6012_v63, %v6009_v27 }
 0xccb   : > { %6617 = vmatmul.mubr.f32.vlgmr.msra.gmra.mxu1 %v6013_v3 }
 0xd8a   : > { %6107 = sbr.rel (%p6345_p11) target bundleno = 3483 (0xd9b), region = 146 }
 0xd8b   : > { %v6098_v18 = vpop.f32.mrf.mxu1 }
 0xd8c   : > { %v6102_v37 = vadd.f32 %v6098_v18, %v6015_v11 }
 0xd8d   : > { %v6618_v40 = vpop.f32.mrf.mxu1 }
 0xd8e   : > { %6103 = vst.msk [vmem:[%s6014_s11] sm:$0xff] %vm5935_vm8, %v6102_v37 }
 0xd8f   : > { %v6109_v15 = vld [vmem:[%s6108_s6] sm:$0xff] }
 0xd90   : > { %v6346_v20 = vld [vmem:[%s8619_s16] ss:$0 sm:$0xff] }
 0xd95   : > { %v6110_v16 = vld [vmem:[%s6014_s11] sm:$0xff] }
 0xd96   : > { %v6111_v38 = vadd.f32 %v6110_v16, %v6109_v15 }
 0xd98   : > { %v6119_v31 = vadd.f32 %v6346_v20, %v6111_v38 }
 0xd9a   : > { %6120 = vst.msk [vmem:[%s8620_s14] sm:$0xff] %vm5935_vm8, %v6119_v31 }
 0xd9b PF: > { %s8621_s27 = sld [smem:[#allocation21_spill]]  ;;  %p6129_p0 = scmp.eq.s32.totalorder %s7036_s30, 1 }
 0xd9c   : > { %s6348_s8 = sshll.u32 %s7040_s0, 1  ;;  %s8622_s4 = scalar_lea.vmem [#allocation14], %s7389_s26 }
 0xd9d   : > { %s6139_s13 = sshll.u32 %s8622_s4, 4  ;;  %s8623_s11 = sld [smem:[#allocation44_spill]]  ;;  %s6140_s13 = int_to_ptr.vmem [resolvable:$true] %s6139_s13 }
 0xd9e   : > { %s8624_s24 = sand.u32 1, %s7004_s22   ;;  %s6900_s16 = scalar_lea.vmem %s6140_s13, 128 }
 0xd9f   : > { %s6122_s17 = scalar_lea.sflag [#allocation9], %s8624_s24  ;;  %p6901_p6 = scmp.ne.s32.totalorder %s6140_s13, %s6900_s16 }
 0xda0   : > { %p8625_p13 = scmp.ne.s32.totalorder %s8585_s9, 0  ;;  %s7081_s14 = smov [#allocation14]  }
 0xda1   : > { %s8660_s27 = smov (!%p6129_p0, %s8621_s27), 0  ;;  %s6904_s30 = sshll.u32 %s7081_s14, 4  ;;  %s6905_s30 = int_to_ptr.vmem [resolvable:$false] %s6904_s30 }
 0xda2   : > { %s6135_s28 = sadd.s32 %s6348_s8, %s8660_s27  ;;  %p6902_p9 = pnand %p6901_p6, %p8625_p13 }
 0xda3   : > { %s6349_s29 = sshll.u32 %s6135_s28, 7  ;;  %s6906_s0 = scalar_lea.vmem %s6905_s30, 256 }
 0xda4   : > { %s6137_s6 = scalar_lea.hbm %s8623_s11, %s6349_s29  ;;  %p6903_p10 = pneg %p6902_p9 }
 0xda5   : > { %p6907_p5 = scmp.lt.s32.totalorder %s6140_s13, %s6905_s30  ;;  %p6908_p8 = scmp.lt.s32.totalorder %s6906_s0, %s6900_s16 }
 0xda7   : > { %p6909_p12 = por %p6908_p8, %p6907_p5 }
 0xda9   : > { %p6910_p3 = pnand %p6909_p12, %p6903_p10 }
 0xdab   : > { %6913 = shalt.err (!%p6910_p3)
}
 0xdac   : > { %s6914_s26 = scalar_lea.hbm %s6137_s6, 128  ;;  %s6918_s4 = scalar_lea.hbm %s8623_s11, 512 }
 0xdad   : > { %p6915_p1 = scmp.ne.s32.totalorder %s6137_s6, %s6914_s26  ;;  %p6919_p7 = scmp.lt.s32.totalorder %s6137_s6, %s8623_s11 }
 0xdae   : > { %p6920_p11 = scmp.lt.s32.totalorder %s6918_s4, %s6914_s26 }
 0xdaf   : > { %p6916_p2 = pnand %p6915_p1, %p8625_p13 }
 0xdb0   : > { %p6921_p0 = por %p6920_p11, %p6919_p7 }
 0xdb1   : > { %p6917_p4 = pneg %p6916_p2 }
 0xdb3   : > { %p6922_p6 = pnand %p6921_p0, %p6917_p4 }
 0xdb5   : > { %6925 = shalt.err (!%p6922_p6)
}
 0xdb6   : > { %6629 = dma.vmem_to_hbm [thread:$0]  (%p8625_p13), %s6140_s13, 128, %s6137_s6, %s6122_s17  }
 0xdb7 PF: > { %p6649_p9 = scmp.ge.s32.totalorder %s7056_s20, 2  ;;  %s6151_s23 = sand.u32 1, %s7000_s21  }
 0xdb8   : > { %p8626_p10 = scmp.ne.s32.totalorder %s8586_s19, 0  ;;  %s6152_s5 = scalar_lea.sflag [#allocation9], %s6151_s23 }
 0xdba   : > { %p6642_p5 = pnand %p6649_p9, %p8626_p10 }
 0xdbc   : > { %p6643_p8 = pneg %p6642_p5 }
 0xdbe   : > { %6995 = dma.done.wait (%p6643_p8), %s6152_s5, 128  }
 0xdbf   : > { %6997 = vsyncadd (%p6643_p8), %s6152_s5, 4294967168  ;;  %s31_s20 = sadd.s32 1, %s7056_s20   ;;  %s8628_s9 = sld [smem:[#allocation18_spill]] }
 0xdc0   : > { %p8459_p12 = scmp.ge.s32.totalorder %s31_s20, 10   ;;  %s8629_s23 = sld [smem:[#allocation29_spill]] }
 0xdc1   : > { %s8630_s13 = sld [smem:[#allocation27_spill]]  ;;  %s8640_s21 = smov %s7004_s22 }
 0xdc2   : > { %s8631_s26 = sld [smem:[#allocation19_spill]]  ;;  %s8642_s24 = smov %s7016_s25 }
 0xdc3   : > { %s8632_s27 = sld [smem:[#allocation20_spill]]  ;;  %s8644_s30 = smov %s7048_s18 }
 0xdc4   : > { %s8633_s28 = sld [smem:[#allocation28_spill]] }
 0xdc5   : > { %s8634_s29 = sld [smem:[#allocation22_spill]]  ;;  %s8641_s22 = smov %s8628_s9 }
 0xdc6   : > { %s8635_s0 = sld [smem:[#allocation23_spill]] }
 0xdc7   : > { %s8636_s17 = sld [smem:[#allocation24_spill]]  ;;  %s8643_s25 = smov %s8630_s13 }
 0xdc8   : > { %s8637_s19 = sld [smem:[#allocation25_spill]] }
 0xdc9   : > { %s8638_s6 = sld [smem:[#allocation26_spill]] }
 0xdcb   :  { %30 = sbr.rel (!%p8459_p12) target bundleno = 27 (0x1b), region = 201 }
 0xdce   : > { %s8645_s18 = smov %s8637_s19 }
 0xdcf   : > { %s8646_s19 = smov %s8638_s6 }
 0xdd0   :  { %6157 = vsyncpa [#allocation8], 1 }
 0xdd1   :  { %6159 = vsyncpa [#allocation8 + $0x1], 1 }
 0xdd2   :  { %6160 = vsyncpa [#allocation11], 1 }
 0xdd3   :  { %6161 = vsyncpa [#allocation9], 1 }
 0xdd4   :  { %6163 = vsyncpa [#allocation9 + $0x1], 1 }

// kernel: tpu_custom_call.1
= control target key start
LH: loop header
LB: loop body
LE: loop exit
PB: predicated region body
PF: predicated region fallthrough
CT: control target
= control target key end

     0   :  { %s8519_s0 = inlined_call_operand.hbm [shape: f32[2,16,64], index: 0, kind: input, shape index: {}]   ;;  %s8520_s1 = inlined_call_operand.hbm [shape: f32[1,64], index: 1, kind: input, shape index: {}]   ;;  %s8521_s2 = inlined_call_operand.hbm [shape: f32[1,64], index: 2, kind: input, shape index: {}]   ;;  %s8522_s3 = inlined_call_operand.vmem [shape: f32[64,64], index: 3, kind: input, shape index: {}]   ;;  %s8523_s4 = inlined_call_operand.vmem [shape: f32[1,64], index: 4, kind: input, shape index: {}]   ;;  %s8524_s5 = inlined_call_operand.vmem [shape: f32[64,64], index: 5, kind: input, shape index: {}]   ;;  %s8525_s6 = inlined_call_operand.vmem [shape: f32[64,64], index: 6, kind: input, shape index: {}]   ;;  %s8526_s7 = inlined_call_operand.vmem [shape: f32[1,64], index: 7, kind: input, shape index: {}]   ;;  %s8527_s8 = inlined_call_operand.vmem [shape: f32[64,64], index: 8, kind: input, shape index: {}]   ;;  %s8528_s9 = inlined_call_operand.vmem [shape: f32[1,64], index: 9, kind: input, shape index: {}]   ;;  %s8529_s10 = inlined_call_operand.vmem [shape: f32[1,64], index: 10, kind: input, shape index: {}]   ;;  %s8530_s11 = inlined_call_operand.vmem [shape: f32[1,64], index: 11, kind: input, shape index: {}]   ;;  %s8531_s12 = inlined_call_operand.vmem [shape: f32[64,256], index: 12, kind: input, shape index: {}]   ;;  %s8532_s13 = inlined_call_operand.vmem [shape: f32[1,256], index: 13, kind: input, shape index: {}]   ;;  %s8533_s14 = inlined_call_operand.vmem [shape: f32[256,64], index: 14, kind: input, shape index: {}]   ;;  %s8534_s15 = inlined_call_operand.vmem [shape: f32[1,64], index: 15, kind: input, shape index: {}]   ;;  %s8535_s16 = inlined_call_operand.hbm [shape: f32[2,16,64], index: 16, kind: output, shape index: {}]  }
   0x1   :  { %8559 = sst [smem:[#allocation30_spill]] %s8519_s0 }
   0x2   :  { %8560 = sst [smem:[#allocation31_spill]] %s8520_s1 }
   0x3   :  { %8561 = sst [smem:[#allocation32_spill]] %s8521_s2 }
   0x4   :  { %8562 = sst [smem:[#allocation33_spill]] %s8522_s3 }
   0x5   :  { %8563 = sst [smem:[#allocation34_spill]] %s8523_s4 }
   0x6   :  { %8564 = sst [smem:[#allocation35_spill]] %s8524_s5 }
   0x7   :  { %8565 = sst [smem:[#allocation36_spill]] %s8525_s6 }
   0x8   :  { %8566 = sst [smem:[#allocation37_spill]] %s8526_s7 }
   0x9   :  { %8567 = sst [smem:[#allocation38_spill]] %s8527_s8 }
   0xa   :  { %8568 = sst [smem:[#allocation39_spill]] %s8528_s9 }
   0xb   :  { %8569 = sst [smem:[#allocation40_spill]] %s8529_s10 }
   0xc   :  { %8570 = sst [smem:[#allocation41_spill]] %s8530_s11 }
   0xd   :  { %8571 = sst [smem:[#allocation42_spill]] %s8532_s13 }
   0xe   :  { %8572 = sst [smem:[#allocation43_spill]] %s8533_s14 }
   0xf   :  { %8573 = sst [smem:[#allocation44_spill]] %s8534_s15 }
  0x10   :  { %8574 = sst [smem:[#allocation45_spill]] %s8535_s16 }
  0x11   :  { %21 = vsyncpa [#allocation8], 0 }
  0x12   :  { %23 = vsyncpa [#allocation8 + $0x1], 0 }
  0x13   :  { %24 = vsyncpa [#allocation11], 0 }
  0x14   :  { %25 = vsyncpa [#allocation9], 0 }
  0x15   :  { %27 = vsyncpa [#allocation9 + $0x1], 0  ;;  %s7181_s21 = smov 0   ;;  %s7183_s22 = smov 0  }
  0x16   :  { %s7185_s23 = smov 0   ;;  %s7187_s24 = smov 0  }
  0x17   :  { %s7189_s25 = smov 0   ;;  %s7191_s26 = smov 0  }
  0x18   :  { %s7193_s27 = smov 0   ;;  %s7195_s28 = smov 0  }
  0x19   :  { %s7197_s29 = smov 0   ;;  %s7199_s30 = smov 0  }
  0x1a   :  { %s7201_s0 = smov 0   ;;  %s7203_s17 = smov 0  }
  0x1b   :  { %s7205_s18 = smov 0   ;;  %s7207_s19 = smov 0  }
  0x1c   :  { %s7209_s20 = smov 0  }
  0x1d LB: > { %8575 = sst [smem:[#allocation18_spill]] %s7014_s21  ;;  %s8538_s16 = sadd.s32 4294967295, %s7070_s20   ;;  %s7070_s20 = sphi %s7209_s20, %s33_s20   ;;  %s7066_s19 = sphi %s7207_s19, %s8654_s19   ;;  %s7062_s18 = sphi %s7205_s18, %s8653_s18   ;;  %s7058_s17 = sphi %s7203_s17, %s8652_s17   ;;  %s7054_s0 = sphi %s7201_s0, %s8651_s0   ;;  %s7050_s30 = sphi %s7199_s30, %s8650_s30   ;;  %s7046_s29 = sphi %s7197_s29, %s8638_s29   ;;  %s7042_s28 = sphi %s7195_s28, %s8649_s28   ;;  %s7038_s27 = sphi %s7193_s27, %s8648_s27   ;;  %s7034_s26 = sphi %s7191_s26, %s8647_s26   ;;  %s7030_s25 = sphi %s7189_s25, %s8646_s25   ;;  %s7026_s24 = sphi %s7187_s24, %s8645_s24   ;;  %s7022_s23 = sphi %s7185_s23, %s8635_s23   ;;  %s7018_s22 = sphi %s7183_s22, %s8644_s22   ;;  %s7014_s21 = sphi %s7181_s21, %s8643_s21  }
  0x1e   : > { %8576 = sst [smem:[#allocation19_spill]] %s7022_s23  ;;  %s45_s15 = sadd.s32 1, %s7058_s17 }
  0x1f   : > { %8577 = sst [smem:[#allocation20_spill]] %s7054_s0  ;;  %s48_s11 = sadd.s32 1, %s7062_s18 }
  0x20   : > { %8578 = sst [smem:[#allocation21_spill]] %s7058_s17  ;;  %p46_p0 = scmp.ge.s32.totalorder %s45_s15, 2 }
  0x21   : > { %s52_s10 = sadd.s32 1, %s7066_s19  ;;  %s59_s9 = sadd.s32 1, %s7042_s28 }
  0x22   : > { %p66_p1 = scmp.ne.s32.totalorder %s7042_s28, %s7038_s27  ;;  %s8656_s15 = smov (%p46_p0, %s45_s15), 0 }
  0x23   : > { %8579 = sst [smem:[#allocation22_spill]] %s8656_s15  ;;  %s8658_s11 = smov (!%p46_p0, %s48_s11), %s7062_s18 }
  0x24   : > { %p67_p2 = scmp.eq.s32.totalorder %s7070_s20, 0  ;;  %p72_p3 = scmp.ne.s32.totalorder %s7038_s27, %s7034_s26 }
  0x25   : > { %p50_p4 = scmp.ge.s32.totalorder %s8658_s11, 2  ;;  %p7269_p5 = scmp.eq.s32.totalorder %s8538_s16, 0 }
  0x26   : > { %p7275_p6 = por %p67_p2, %p66_p1  ;;  %s316_s4 = sadd.s32 1, %s7030_s25 }
  0x27   : > { %s8580_s0 = scalar_select %p7269_p5, 1, 0 }
  0x28   : > { %s8660_s11 = smov (%p50_p4, %s8658_s11), 0  ;;  %s8662_s10 = smov (!%p50_p4, %s52_s10), %s7066_s19 }
  0x29   : > { %8582 = sst [smem:[#allocation23_spill]] %s8660_s11  ;;  %p7285_p7 = por %p7269_p5, %p72_p3 }
  0x2a   : > { %s313_s16 = ssub.s32 %s7062_s18, %s8660_s11  ;;  %p54_p8 = scmp.ge.s32.totalorder %s8662_s10, 2 }
  0x2b   : > { %s8583_s26 = scalar_select %p7285_p7, 1, 0 }
  0x2c   : > { %p314_p9 = scmp.eq.s32.totalorder %s313_s16, 0  ;;  %p323_p10 = scmp.ne.s32.totalorder %s7030_s25, %s7026_s24 }
  0x2d   : > { %s413_s3 = ssub.s32 %s7058_s17, %s8656_s15  ;;  %s8664_s10 = smov (%p54_p8, %s8662_s10), 0 }
  0x2e   : > { %8584 = sst [smem:[#allocation24_spill]] %s8664_s10  ;;  %s56_s6 = ssub.s32 %s7066_s19, %s8664_s10 }
  0x2f   : > { %s7298_s7 = scalar_select %p314_p9, %s7030_s25, %s316_s4  }
  0x30   : > { %p7304_p11 = por %p323_p10, %p67_p2  ;;  %p57_p12 = scmp.eq.s32.totalorder %s56_s6, 0 }
  0x31   : > { %8585 = sst [smem:[#allocation25_spill]] %s7298_s7  ;;  %s414_s11 = sor.u32 %s413_s3, %s56_s6 }
  0x32   : > { %s8586_s5 = scalar_select %p7304_p11, 1, 0 }
  0x33   : > { %p415_p13 = scmp.eq.s32.totalorder %s414_s11, 0  ;;  %s417_s16 = sadd.s32 1, %s7022_s23 }
  0x34   : > { %s7310_s14 = scalar_select %p57_p12, %s7042_s28, %s59_s9  }
  0x35   : > { %s7313_s15 = scalar_select %p415_p13, %s7022_s23, %s417_s16  }
  0x36   : > { %8587 = sst [smem:[#allocation26_spill]] %s7310_s14  ;;  %p427_p0 = scmp.ne.s32.totalorder %s7022_s23, %s7018_s22 }
  0x37   : > { %8588 = sst [smem:[#allocation27_spill]] %s7313_s15  ;;  %s8589_s17 = sadd.s32 4294967295, %s7070_s20  }
  0x38   : > { %p428_p1 = scmp.eq.s32.totalorder %s8589_s17, 7  ;;  %p433_p3 = scmp.ne.s32.totalorder %s7018_s22, %s7014_s21 }
  0x39   : > { %s8590_s4 = sadd.s32 4294967294, %s7070_s20   ;;  %p6311_p2 = scmp.ge.s32.totalorder %s7070_s20, 1 }
  0x3a   : > { %p434_p4 = scmp.eq.s32.totalorder %s8590_s4, 7  ;;  %p7323_p8 = por %p428_p1, %p427_p0 }
  0x3b   : > { %p441_p10 = scmp.lt.s32.totalorder %s7070_s20, 9  ;;  %s7072_s9 = smov [#allocation10]  }
  0x3c   : > { %s8591_s10 = scalar_select %p7323_p8, 1, 0 }
  0x3d   : > { %p7328_p9 = por %p434_p4, %p433_p3  ;;  %p7333_p12 = pnand %p6311_p2, %p441_p10 }
  0x3e   : > { %8592 = sst [smem:[#allocation28_spill]] %s8591_s10  ;;  %s454_s11 = sshll.u32 %s7072_s9, 4  ;;  %s455_s11 = int_to_ptr.vmem [resolvable:$true] %s454_s11 }
  0x3f   : > { %s8593_s3 = scalar_select %p7328_p9, 1, 0 }
  0x40   : > { %s8595_s6 = scalar_select %p7333_p12, 1, 0 }
  0x41   : > { %8594 = sst [smem:[#allocation29_spill]] %s8593_s3  ;;  %p6651_p13 = pneg %p7333_p12 }
  0x42   : > { %s7073_s17 = smov [#allocation12]   ;;  %s6847_s14 = scalar_lea.vmem %s455_s11, 16 }
  0x43   : > { %s465_s16 = sshll.u32 %s7073_s17, 4  ;;  %p7341_p0 = pnand %p6651_p13, %p7269_p5  ;;  %s466_s16 = int_to_ptr.vmem [resolvable:$true] %s465_s16 }
  0x44   : > { %p6848_p3 = scmp.ne.s32.totalorder %s455_s11, %s6847_s14  ;;  %s6854_s9 = scalar_lea.vmem %s455_s11, 32 }
  0x45   : > { %p6838_p1 = pneg %p7341_p0  ;;  %p6855_p10 = scmp.lt.s32.totalorder %s455_s11, %s455_s11 }
  0x46   : > { %p6856_p9 = scmp.lt.s32.totalorder %s6854_s9, %s6847_s14 }
  0x47   : > { %p6850_p4 = pnand %p6848_p3, %p6838_p1 }
  0x48   : > { %p6857_p8 = por %p6856_p9, %p6855_p10 }
  0x49   : > { %p6851_p2 = pneg %p6850_p4 }
  0x4b   : > { %p6858_p7 = pnand %p6857_p8, %p6851_p2 }
  0x4d   : > { %6861 = shalt.err (!%p6858_p7)
}
  0x4e   : > { %s8597_s1 = sld [smem:[#allocation31_spill]]  ;;  %s6873_s15 = scalar_lea.vmem %s466_s16, 16 }
  0x4f   : > { %p6874_p13 = scmp.ne.s32.totalorder %s466_s16, %s6873_s15  ;;  %s6880_s23 = scalar_lea.vmem %s466_s16, 32 }
  0x50   : > { %p6881_p4 = scmp.lt.s32.totalorder %s466_s16, %s466_s16  ;;  %p6882_p12 = scmp.lt.s32.totalorder %s6880_s23, %s6873_s15 }
  0x51   : > { %p6876_p5 = pnand %p6874_p13, %p6838_p1 }
  0x52   : > { %p6883_p11 = por %p6882_p12, %p6881_p4 }
  0x53   : > { %p6877_p3 = pneg %p6876_p5 }
  0x54   : > { %6654 = dma.hbm_to_vmem [thread:$0]  (!%p7341_p0), %s8597_s1, 16, %s455_s11, [#allocation11]  }
  0x55   : > { %p6884_p9 = pnand %p6883_p11, %p6877_p3 }
  0x57   : > { %6887 = shalt.err (!%p6884_p9)
}
  0x58   : > { %s8598_s2 = sld [smem:[#allocation32_spill]]  ;;  %p6314_p7 = scmp.ge.s32.totalorder %s7070_s20, 8 }
  0x59   : > { %s506_s7 = sand.u32 (!%p6314_p7), 1, %s7042_s28   ;;  %s6372_s11 = sshll.u32 (!%p6314_p7), %s7066_s19, 8 }
  0x5a   : > { %502 = sbr.rel (%p6314_p7) target bundleno = 117 (0x75), region = 64  ;;  %s6315_s17 = sshll.u32 (!%p6314_p7), %s506_s7, 4 }
  0x5b   : > { %s8599_s23 = sld [smem:[#allocation30_spill]] (!%p6314_p7)  ;;  %s510_s21 = scalar_lea.vmem (!%p6314_p7), [#allocation7], %s6315_s17 }
  0x5c   : > { %s517_s10 = sshll.u32 (!%p6314_p7), %s510_s21, 4  ;;  %s507_s4 = scalar_lea.sflag (!%p6314_p7), [#allocation8], %s506_s7  ;;  %s518_s10 = int_to_ptr.vmem [resolvable:$true] %s517_s10 }
  0x5d   : > { %s6900_s13 = scalar_lea.vmem (!%p6314_p7), %s518_s10, 256 }
  0x5e   : > { %6657 = dma.hbm_to_vmem [thread:$0]  (!%p7341_p0), %s8598_s2, 16, %s466_s16, [#allocation11]  }
  0x5f   : > { %p6901_p5 = scmp.ne.s32.totalorder %s518_s10, %s6900_s13  ;;  %s7074_s16 = smov [#allocation7]  }
  0x60   : > { %s6904_s14 = sshll.u32 %s7074_s16, 4  ;;  %s6905_s14 = int_to_ptr.vmem [resolvable:$false] %s6904_s14 }
  0x61   : > { %s516_s3 = scalar_lea.hbm %s8599_s23, %s6372_s11  ;;  %p6902_p11 = pnand %p6901_p5, %p7275_p6 }
  0x62   : > { %s6906_s9 = scalar_lea.vmem %s6905_s14, 512  ;;  %p6907_p12 = scmp.lt.s32.totalorder %s518_s10, %s6905_s14 }
  0x63   : > { %p6903_p8 = pneg %p6902_p11  ;;  %p6908_p0 = scmp.lt.s32.totalorder %s6906_s9, %s6900_s13 }
  0x65   : > { %p6909_p1 = por %p6908_p0, %p6907_p12 }
  0x67   : > { %p6910_p2 = pnand %p6909_p1, %p6903_p8 }
  0x69   : > { %6913 = shalt.err (!%p6910_p2)
}
  0x6a   : > { %s7075_s1 = smov 128   ;;  %s7076_s11 = smov 8  }
  0x6b   : > { %6643 = dma.hbm_to_vmem [thread:$0]  (%p7275_p6), %s516_s3, 256, %s518_s10, %s507_s4, %s7075_s1, %s7075_s1, %s7076_s11  }
  0x6c   : > { %p8600_p10 = scmp.ne.s32.totalorder %s8586_s5, 0 }
  0x6d   : > { %s528_s21 = sand.u32 (%p8600_p10), 1, %s7030_s25   ;;  %s6319_s7 = sshll.u32 (%p8600_p10), %s7062_s18, 3 }
  0x6e   : > { %526 = sbr.rel (!%p8600_p10) target bundleno = 117 (0x75), region = 72  ;;  %s6318_s17 = sshll.u32 (%p8600_p10), %s528_s21, 6 }
  0x6f   : > { %s532_s13 = scalar_lea.vmem (%p8600_p10), %s8531_s12, %s6319_s7  ;;  %s530_s16 = scalar_lea.vmem (%p8600_p10), [#allocation13], %s6318_s17 }
  0x70   : > { %v575_v0 = vld [vmem:[%s532_s13] sm:$0xff] (%p8600_p10)  ;;  %v577_v1 = vld [vmem:[%s532_s13 + $0x10] sm:$0xff] (%p8600_p10) }
  0x71   : > { %v579_v2 = vld [vmem:[%s532_s13 + $0x20] sm:$0xff] (%p8600_p10)  ;;  %576 = vst [vmem:[%s530_s16] sm:$0xff] (%p8600_p10), %v575_v0  ;;  %578 = vst [vmem:[%s530_s16 + $0x8] sm:$0xff] (%p8600_p10), %v577_v1  ;;  %v581_v3 = vld [vmem:[%s532_s13 + $0x30] sm:$0xff] (%p8600_p10) }
  0x72   : > { %580 = vst [vmem:[%s530_s16 + $0x10] sm:$0xff] (%p8600_p10), %v579_v2  ;;  %v583_v4 = vld [vmem:[%s532_s13 + $0x40] sm:$0xff] (%p8600_p10)  ;;  %v585_v5 = vld [vmem:[%s532_s13 + $0x50] sm:$0xff] (%p8600_p10)  ;;  %582 = vst [vmem:[%s530_s16 + $0x18] sm:$0xff] (%p8600_p10), %v581_v3 }
  0x73   : > { %584 = vst [vmem:[%s530_s16 + $0x20] sm:$0xff] %v583_v4  ;;  %586 = vst [vmem:[%s530_s16 + $0x28] sm:$0xff] %v585_v5  ;;  %v587_v6 = vld [vmem:[%s532_s13 + $0x60] sm:$0xff]  ;;  %v589_v7 = vld [vmem:[%s532_s13 + $0x70] sm:$0xff] }
  0x74   : > { %588 = vst [vmem:[%s530_s16 + $0x30] sm:$0xff] %v587_v6  ;;  %590 = vst [vmem:[%s530_s16 + $0x38] sm:$0xff] %v589_v7 }
  0x75 PF: > { %p8601_p6 = scmp.ne.s32.totalorder %s8595_s6, 0 }
  0x76   : > { %s616_s5 = sand.u32 (!%p8601_p6), 1, %s7038_s27   ;;  %p8602_p13 = scmp.ne.s32.totalorder (!%p8601_p6), %s8583_s26, 0 }
  0x77   : > { %614 = sbr.rel (%p8601_p6) target bundleno = 3490 (0xda2), region = 118  ;;  %s6321_s8 = sshll.u32 (!%p8601_p6), %s616_s5, 4 }
  0x78   : > { %s617_s10 = scalar_lea.sflag (!%p8601_p6), [#allocation8], %s616_s5  ;;  %s7383_s3 = scalar_lea.vmem (!%p8601_p6), [#allocation7], %s6321_s8 }
  0x7c   : > { %7001 = dma.done.wait (%p8602_p13), %s617_s10, 256  }
  0x7d   : > { %7003 = vsyncadd (%p8602_p13), %s617_s10, 4294967040  ;;  %p8603_p3 = scmp.ne.s32.totalorder %s8580_s0, 0 }
  0x7f   : > { %7005 = dma.done.wait (%p8603_p3), [#allocation11], 32  }
  0x80   : > { %7007 = vsyncadd (%p8603_p3), [#allocation11], 4294967264  ;;  %s634_s6 = sand.u32 1, %s7026_s24   ;;  %s8556_s4 = sand.u32 1, %s7018_s22  }
  0x81   : > { %s6324_s14 = sshll.u32 %s634_s6, 6  ;;  %s7397_s26 = sshll.u32 %s8556_s4, 3 }
  0x82   : > { %p696_p4 = scmp.lt.s32.totalorder %s7050_s30, 1  ;;  %s6326_s9 = sshll.u32 %s7050_s30, 4 }
  0x83   : > { %p700_p9 = scmp.lt.s32.totalorder %s6326_s9, 31  ;;  %s7402_s0 = sshll.u32 %s7046_s29, 3 }
  0x84   : > { %s7405_s1 = scalar_select %p696_p4, %s7050_s30, 1 }
  0x85   : > { %s8666_s9 = smov (!%p700_p9, %s6326_s9), 31  ;;  %s8604_s7 = sld [smem:[#allocation42_spill]] }
  0x86   : > { %p706_p7 = scmp.eq.s32.totalorder %s7050_s30, 0  ;;  %s6327_s24 = sshll.u32 %s8666_s9, 3 }
  0x87   : > { %p707_p5 = scmp.eq.s32.totalorder %s7046_s29, 0  ;;  %s8605_s13 = sld [smem:[#allocation43_spill]] }
  0x88   : > { %s7418_s5 = scalar_lea.vmem [#allocation13], %s6324_s14 }
  0x89   : > { %p708_p11 = pnand %p707_p5, %p706_p7 }
  0x8a   : > { %s8606_s14 = sld [smem:[#allocation35_spill]] (!%p708_p11)  ;;  %s7077_s10 = smov (!%p708_p11), 112  }
  0x8b   : > { %s698_s17 = scalar_lea.vmem %s8604_s7, %s7405_s1  ;;  %711 = sbr.rel (%p708_p11) target bundleno = 804 (0x324), region = 138 }
  0x8c   : > { %s8607_s21 = sld [smem:[#allocation36_spill]] (!%p708_p11)  ;;  %s7078_s6 = smov (!%p708_p11), 96  }
  0x8d   : > { %s7416_s16 = scalar_lea.vmem %s8605_s13, %s6327_s24  ;;  %s7079_s9 = smov (!%p708_p11), 80  }
  0x8e   : > { %s8609_s24 = sld [smem:[#allocation37_spill]] (!%p708_p11) }
  0x90   : > { %v712_v8 = vld [vmem:[%s7383_s3] sm:$0xff]  ;;  %vm716_vm0 = vcmask 523264   ;;  %v713_v9 = vld [vmem:[%s7383_s3 + $0x8] sm:$0xff]  ;;  %v7080_v61 = vmov 1983009808   ;;  %v964_v63 = vlaneseq  ;;  %vm1095_vm1 = vcmask 125952  }
  0x91   : > { %v717_v10 = vsel %vm716_vm0, %v712_v8, 0.0  ;;  %v720_v11 = vsel %vm716_vm0, %v713_v9, 0.0  ;;  %v767_v22 = vld [vmem:[%s8606_s14 + $0x38] sm:$0xff]  ;;  %v766_v24 = vld [vmem:[%s8606_s14 + $0x30] sm:$0xff]  ;;  %v765_v26 = vld [vmem:[%s8606_s14 + $0x28] sm:$0xff]  ;;  %v962_v62 = vunpack.c.l.s4 %v7080_v61 }
  0x92   : > { %718 = vadd.xlane.f32.xlu0 %v717_v10  ;;  %s8608_s7 = smov %s8607_s21  ;;  %v856_v23 = vld [vmem:[%s8607_s21 + $0x38] sm:$0xff]  ;;  %6461 = vmatprep.subr.mxu0 %v767_v22  ;;  %v764_v28 = vld [vmem:[%s8606_s14 + $0x20] sm:$0xff]  ;;  %v762_v32 = vld [vmem:[%s8606_s14 + $0x10] sm:$0xff]  ;;  %v7081_v2 = vmov 1934713408   ;;  %v965_v5 = vshrl.u32 %v964_v63, 7 }
  0x93   : > { %6480 = vmatprep.subr.mxu1 %v856_v23  ;;  %v855_v25 = vld [vmem:[%s8608_s7 + $0x30] sm:$0xff]  ;;  %6462 = vmatpush3.msra.mxu0 %v767_v22  ;;  %v854_v27 = vld [vmem:[%s8608_s7 + $0x28] sm:$0xff]  ;;  %v853_v29 = vld [vmem:[%s8608_s7 + $0x20] sm:$0xff]  ;;  %v994_v3 = vunpack.c.l.s4 %v7081_v2  ;;  %v963_v4 = vunpack.c.0.s8 %v962_v62 }
  0x94   : > { %6481 = vmatpush3.msra.mxu1 %v856_v23  ;;  %6463 = vmatprep.subr.mxu0 %v766_v24  ;;  %v763_v30 = vld [vmem:[%s8606_s14 + $0x18] sm:$0xff]  ;;  %v851_v33 = vld [vmem:[%s8608_s7 + $0x10] sm:$0xff]  ;;  %v761_v34 = vld [vmem:[%s8606_s14 + $0x8] sm:$0xff] }
  0x95   : > { %6482 = vmatprep.subr.mxu1 %v855_v25  ;;  %6464 = vmatpush3.msra.mxu0 %v766_v24  ;;  %v852_v31 = vld [vmem:[%s8608_s7 + $0x18] sm:$0xff]  ;;  %v850_v35 = vld [vmem:[%s8608_s7 + $0x8] sm:$0xff]  ;;  %v760_v36 = vld [vmem:[%s8606_s14] sm:$0xff] }
  0x96   : > { %721 = vadd.xlane.f32.xlu0 %v720_v11  ;;  %6483 = vmatpush3.msra.mxu1 %v855_v25  ;;  %v849_v37 = vld [vmem:[%s8608_s7] sm:$0xff]  ;;  %v6329_v45 = vld [vmem:[#allocation10] ss:$0 sm:$0xff]  ;;  %v6330_v47 = vld [vmem:[#allocation12] ss:$0 sm:$0xff] }
  0x97   : > { %6465 = vmatprep.subr.mxu0 %v765_v26  ;;  %6484 = vmatprep.subr.mxu1 %v854_v27  ;;  %v6333_v58 = vld [vmem:[%s8609_s24] ss:$0 sm:$0xff] }
  0x98   : > { %6466 = vmatpush3.msra.mxu0 %v765_v26  ;;  %6485 = vmatpush3.msra.mxu1 %v854_v27 }
  0x99   : > { %6467 = vmatprep.subr.mxu0 %v764_v28  ;;  %6486 = vmatprep.subr.mxu1 %v853_v29 }
  0x9a   : > { %6468 = vmatpush3.msra.mxu0 %v764_v28  ;;  %6487 = vmatpush3.msra.mxu1 %v853_v29 }
  0x9b   : > { %6469 = vmatprep.subr.mxu0 %v763_v30  ;;  %6488 = vmatprep.subr.mxu1 %v852_v31 }
  0x9c   : > { %6470 = vmatpush3.msra.mxu0 %v763_v30  ;;  %6489 = vmatpush3.msra.mxu1 %v852_v31 }
  0x9d   : > { %6471 = vmatprep.subr.mxu0 %v762_v32  ;;  %6490 = vmatprep.subr.mxu1 %v851_v33 }
  0x9e   : > { %6472 = vmatpush3.msra.mxu0 %v762_v32  ;;  %6491 = vmatpush3.msra.mxu1 %v851_v33 }
  0x9f   : > { %6473 = vmatprep.subr.mxu0 %v761_v34  ;;  %6492 = vmatprep.subr.mxu1 %v850_v35 }
  0xa0   : > { %6474 = vmatpush3.msra.mxu0 %v761_v34  ;;  %6493 = vmatpush3.msra.mxu1 %v850_v35 }
  0xa1   : > { %6475 = vmatprep.subr.mxu0 %v760_v36  ;;  %6494 = vmatprep.subr.mxu1 %v849_v37 }
  0xa2   : > { %6476 = vmatpush3.msra.mxu0 %v760_v36  ;;  %6495 = vmatpush3.msra.mxu1 %v849_v37 }
 0x11b   : > { %v719_v12 = vpop.xlane.xlu0 %718 }
 0x11c   : > { %v724_v13 = vmul.f32 0.015625, %v719_v12 }
 0x11e   : > { %v7425_v14 = vsub.f32 %v712_v8, %v724_v13  ;;  %v995_v8 = vunpack.c.0.s8 %v994_v3 }
 0x11f   : > { %v722_v15 = vpop.xlane.xlu0 %721 }
 0x120   : > { %v725_v16 = vmul.f32 0.015625, %v722_v15  ;;  %v728_v17 = vmul.f32 %v7425_v14, %v7425_v14 }
 0x122   : > { %v7429_v18 = vsub.f32 %v713_v9, %v725_v16  ;;  %v730_v19 = vsel %vm716_vm0, %v728_v17, 0.0  ;;  %v7502_v9 = vsub.s32 %v963_v4, %v965_v5  ;;  %v7504_v17 = vsub.s32 %v995_v8, %v965_v5 }
 0x123   : > { %731 = vadd.xlane.f32.xlu1 %v730_v19 }
 0x124   : > { %v729_v20 = vmul.f32 %v7429_v18, %v7429_v18 }
 0x126   : > { %v733_v21 = vsel %vm716_vm0, %v729_v20, 0.0 }
 0x127   : > { %734 = vadd.xlane.f32.xlu1 %v733_v21 }
 0x1ac   : > { %v732_v38 = vpop.xlane.xlu1 %731 }
 0x1ad   : > { %v736_v39 = vmul.f32 0.015625, %v732_v38 }
 0x1af   : > { %v738_v40 = vadd.f32 1e-05, %v736_v39 }
 0x1b0   : > { %v735_v41 = vpop.xlane.xlu1 %734 }
 0x1b1   : > { %6809 = vrsqrt.f32 %v738_v40  ;;  %v737_v42 = vmul.f32 0.015625, %v735_v41 }
 0x1b3   : > { %v739_v43 = vadd.f32 1e-05, %v737_v42  ;;  %v7082_v42 = vmov 0.0  }
 0x1b5   : > { %6811 = vrsqrt.f32 %v739_v43 }
 0x1be   : > { %v6810_v44 = vpop.eup %6809 }
 0x1bf   : > { %v742_v46 = vmul.f32 %v6810_v44, %v7425_v14 }
 0x1c1   : > { %v750_v48 = vmul.f32 %v6329_v45, %v742_v46 }
 0x1c2   : > { %v6812_v49 = vpop.eup %6811 }
 0x1c3   : > { %v743_v50 = vmul.f32 %v6812_v49, %v7429_v18  ;;  %v758_v51 = vadd.f32 %v6330_v47, %v750_v48 }
 0x1c5   : > { %v751_v52 = vmul.f32 %v6329_v45, %v743_v50  ;;  %6477 = vmatprep.mubr.msk.f32.mxu0 %vm716_vm0, %v758_v51  ;;  %6496 = vmatprep.mubr.msk.f32.mxu1 %vm716_vm0, %v758_v51 }
 0x1c7   : > { %v759_v53 = vadd.f32 %v6330_v47, %v751_v52 }
 0x1c9   : > { %6478 = vmatmul.mubr.msk.f32.vlgmr.msra.gmra.mxu0 %vm716_vm0, %v759_v53  ;;  %6497 = vmatmul.mubr.msk.f32.vlgmr.msra.gmra.mxu1 %vm716_vm0, %v759_v53 }
 0x289   : > { %v6479_v54 = vpop.f32.mrf.mxu0  ;;  %v6498_v55 = vpop.f32.mrf.mxu1 }
 0x28a   : > { %943 = vrot.lane.b32.xlu1 %v6479_v54, %s7077_s10  ;;  %v7495_v60 = vadd.f32 %v6498_v55, %v6333_v58 }
 0x28b   : > { %v840_v56 = vpop.f32.mrf.mxu0  ;;  %v930_v57 = vpop.f32.mrf.mxu1 }
 0x28c   : > { %941 = vrot.lane.b32.xlu0 %v840_v56, %s7077_s10  ;;  %v7492_v59 = vadd.f32 %v6333_v58, %v930_v57 }
 0x28e   : > { %949 = vrot.lane.b32.xlu1 %v6479_v54, %s7078_s6 }
 0x290   : > { %953 = vrot.lane.b32.xlu0 %v840_v56, %s7079_s9 }
 0x292   : > { %955 = vrot.lane.b32.xlu1 %v6479_v54, %s7079_s9 }
 0x294   : > { %1114 = vrot.lane.b32.xlu0 %v7492_v59, %s7077_s10 }
 0x296   : > { %947 = vrot.lane.b32.xlu1 %v840_v56, %s7078_s6 }
 0x298   : > { %1120 = vrot.lane.b32.xlu0 %v7492_v59, %s7078_s6 }
 0x29a   : > { %1116 = vrot.lane.b32.xlu1 %v7495_v60, %s7077_s10 }
 0x29c   : > { %1126 = vrot.lane.b32.xlu0 %v7492_v59, %s7079_s9 }
 0x29e   : > { %1122 = vrot.lane.b32.xlu1 %v7495_v60, %s7078_s6 }
 0x2a2   : > { %1128 = vrot.lane.b32.xlu1 %v7495_v60, %s7079_s9 }
 0x2fc   : > { %v944_v0 = vpop.permute.xlu1 %943 }
 0x2fe   : > { %v942_v1 = vpop.permute.xlu0 %941 }
 0x300   : > { %v950_v6 = vpop.permute.xlu1 %949 }
 0x301   : > { %v1027_v10 = vcombine.low %v6479_v54, %v950_v6  ;;  %v1028_v11 = vcombine.high %v6479_v54, %v950_v6 }
 0x302   : > { %v954_v7 = vpop.permute.xlu0 %953 }
 0x303   : > { %v975_v15 = vcombine.low %v942_v1, %v954_v7  ;;  %v976_v16 = vcombine.high %v942_v1, %v954_v7  ;;  %v1035_v19 = vrot.slane %v1027_v10, %v7502_v9  ;;  %v1042_v20 = vrot.slane %v1028_v11, %v7502_v9 }
 0x304   : > { %v956_v12 = vpop.permute.xlu1 %955 }
 0x305   : > { %v1043_v13 = vcombine.low %v944_v0, %v956_v12  ;;  %v1044_v14 = vcombine.high %v944_v0, %v956_v12  ;;  %v983_v28 = vrot.slane %v975_v15, %v7502_v9  ;;  %v990_v29 = vrot.slane %v976_v16, %v7502_v9 }
 0x306   : > { %v1115_v18 = vpop.permute.xlu0 %1114 }
 0x307   : > { %v1051_v21 = vrot.slane %v1043_v13, %v7502_v9  ;;  %v1058_v22 = vrot.slane %v1044_v14, %v7502_v9 }
 0x308   : > { %v948_v23 = vpop.permute.xlu1 %947 }
 0x309   : > { %v1059_v24 = vcombine.low %v1035_v19, %v1051_v21  ;;  %v1060_v25 = vcombine.high %v1035_v19, %v1051_v21  ;;  %v1075_v26 = vcombine.low %v1042_v20, %v1058_v22  ;;  %v1076_v27 = vcombine.high %v1042_v20, %v1058_v22 }
 0x30a   : > { %v959_v30 = vcombine.low %v840_v56, %v948_v23  ;;  %v960_v31 = vcombine.high %v840_v56, %v948_v23  ;;  %v1121_v32 = vpop.permute.xlu0 %1120 }
 0x30b   : > { %v1067_v33 = vrot.slane %v1059_v24, %v7504_v17  ;;  %v1074_v34 = vrot.slane %v1060_v25, %v7504_v17  ;;  %v1083_v35 = vrot.slane %v1075_v26, %v7504_v17  ;;  %v1090_v36 = vrot.slane %v1076_v27, %v7504_v17 }
 0x30c   : > { %v967_v37 = vrot.slane %v959_v30, %v7502_v9  ;;  %v974_v38 = vrot.slane %v960_v31, %v7502_v9  ;;  %v1132_v39 = vcombine.low %v7492_v59, %v1121_v32  ;;  %v1133_v40 = vcombine.high %v7492_v59, %v1121_v32  ;;  %v7520_v41 = vpop.permute.xlu1 %1116 }
 0x30d   : > { %v1091_v43 = vcombine.high %v1067_v33, %v7082_v42  ;;  %v1092_v44 = vcombine.high %v1074_v34, %v7082_v42  ;;  %v1093_v45 = vcombine.high %v1083_v35, %v7082_v42  ;;  %v1094_v46 = vcombine.high %v1090_v36, %v7082_v42  ;;  %1104 = vst.msk [vmem:[#allocation2 + $0x20] sm:$0xf] %vm1095_vm1, %v1067_v33 }
 0x30e   : > { %1106 = vst.msk [vmem:[#allocation2 + $0x28] sm:$0xf] %vm1095_vm1, %v1074_v34  ;;  %1108 = vst.msk [vmem:[#allocation2 + $0x30] sm:$0xf] %vm1095_vm1, %v1083_v35  ;;  %v991_v47 = vcombine.low %v967_v37, %v983_v28  ;;  %v992_v48 = vcombine.high %v967_v37, %v983_v28  ;;  %v1007_v49 = vcombine.low %v974_v38, %v990_v29  ;;  %v1127_v51 = vpop.permute.xlu0 %1126 }
 0x30f   : > { %1110 = vst.msk [vmem:[#allocation2 + $0x38] sm:$0xf] %vm1095_vm1, %v1090_v36  ;;  %v1008_v50 = vcombine.high %v974_v38, %v990_v29  ;;  %1105 = vst.msk [vmem:[#allocation2 + $0x24] sm:$0xf] %vm1095_vm1, %v1091_v43  ;;  %v1148_v52 = vcombine.low %v1115_v18, %v1127_v51  ;;  %v1149_v53 = vcombine.high %v1115_v18, %v1127_v51 }
 0x310   : > { %1107 = vst.msk [vmem:[#allocation2 + $0x2c] sm:$0xf] %vm1095_vm1, %v1092_v44  ;;  %1109 = vst.msk [vmem:[#allocation2 + $0x34] sm:$0xf] %vm1095_vm1, %v1093_v45  ;;  %v999_v54 = vrot.slane %v991_v47, %v7504_v17  ;;  %v1006_v55 = vrot.slane %v992_v48, %v7504_v17  ;;  %v1015_v56 = vrot.slane %v1007_v49, %v7504_v17  ;;  %v1123_v58 = vpop.permute.xlu1 %1122 }
 0x311   : > { %1111 = vst.msk [vmem:[#allocation2 + $0x3c] sm:$0xf] %vm1095_vm1, %v1094_v46  ;;  %v1022_v57 = vrot.slane %v1008_v50, %v7504_v17  ;;  %v1140_v59 = vrot.slane %v1132_v39, %v7502_v9  ;;  %v1147_v61 = vrot.slane %v1133_v40, %v7502_v9  ;;  %v1156_v62 = vrot.slane %v1148_v52, %v7502_v9 }
 0x312   : > { %v1163_v63 = vrot.slane %v1149_v53, %v7502_v9  ;;  %v1023_v0 = vcombine.high %v999_v54, %v7082_v42  ;;  %v1024_v1 = vcombine.high %v1006_v55, %v7082_v42  ;;  %v1025_v2 = vcombine.high %v1015_v56, %v7082_v42  ;;  %1096 = vst.msk [vmem:[#allocation2] sm:$0xf] %vm1095_vm1, %v999_v54 }
 0x313   : > { %v1026_v3 = vcombine.high %v1022_v57, %v7082_v42  ;;  %1098 = vst.msk [vmem:[#allocation2 + $0x8] sm:$0xf] %vm1095_vm1, %v1006_v55  ;;  %1100 = vst.msk [vmem:[#allocation2 + $0x10] sm:$0xf] %vm1095_vm1, %v1015_v56  ;;  %v1164_v4 = vcombine.low %v1140_v59, %v1156_v62  ;;  %v1165_v5 = vcombine.high %v1140_v59, %v1156_v62 }
 0x314   : > { %1102 = vst.msk [vmem:[#allocation2 + $0x18] sm:$0xf] %vm1095_vm1, %v1022_v57  ;;  %v1180_v6 = vcombine.low %v1147_v61, %v1163_v63  ;;  %v1181_v7 = vcombine.high %v1147_v61, %v1163_v63  ;;  %1097 = vst.msk [vmem:[#allocation2 + $0x4] sm:$0xf] %vm1095_vm1, %v1023_v0  ;;  %v1200_v8 = vcombine.low %v7495_v60, %v1123_v58  ;;  %v1129_v11 = vpop.permute.xlu1 %1128 }
 0x315   : > { %1099 = vst.msk [vmem:[#allocation2 + $0xc] sm:$0xf] %vm1095_vm1, %v1024_v1  ;;  %1101 = vst.msk [vmem:[#allocation2 + $0x14] sm:$0xf] %vm1095_vm1, %v1025_v2  ;;  %v1201_v10 = vcombine.high %v7495_v60, %v1123_v58  ;;  %v1172_v12 = vrot.slane %v1164_v4, %v7504_v17  ;;  %v1179_v13 = vrot.slane %v1165_v5, %v7504_v17 }
 0x316   : > { %1103 = vst.msk [vmem:[#allocation2 + $0x1c] sm:$0xf] %vm1095_vm1, %v1026_v3  ;;  %v1188_v14 = vrot.slane %v1180_v6, %v7504_v17  ;;  %v1195_v15 = vrot.slane %v1181_v7, %v7504_v17  ;;  %v1216_v16 = vcombine.low %v7520_v41, %v1129_v11  ;;  %v1217_v18 = vcombine.high %v7520_v41, %v1129_v11 }
 0x317   : > { %v1196_v19 = vcombine.high %v1172_v12, %v7082_v42  ;;  %v1197_v20 = vcombine.high %v1179_v13, %v7082_v42  ;;  %1268 = vst.msk [vmem:[#allocation3] sm:$0xf] %vm1095_vm1, %v1172_v12  ;;  %1270 = vst.msk [vmem:[#allocation3 + $0x8] sm:$0xf] %vm1095_vm1, %v1179_v13  ;;  %v1208_v22 = vrot.slane %v1200_v8, %v7502_v9 }
 0x318   : > { %v1198_v21 = vcombine.high %v1188_v14, %v7082_v42  ;;  %v1199_v60 = vcombine.high %v1195_v15, %v7082_v42  ;;  %1272 = vst.msk [vmem:[#allocation3 + $0x10] sm:$0xf] %vm1095_vm1, %v1188_v14  ;;  %1274 = vst.msk [vmem:[#allocation3 + $0x18] sm:$0xf] %vm1095_vm1, %v1195_v15  ;;  %v1215_v23 = vrot.slane %v1201_v10, %v7502_v9 }
 0x319   : > { %v1224_v24 = vrot.slane %v1216_v16, %v7502_v9  ;;  %v1231_v25 = vrot.slane %v1217_v18, %v7502_v9  ;;  %1269 = vst.msk [vmem:[#allocation3 + $0x4] sm:$0xf] %vm1095_vm1, %v1196_v19  ;;  %1271 = vst.msk [vmem:[#allocation3 + $0xc] sm:$0xf] %vm1095_vm1, %v1197_v20 }
 0x31a   : > { %1273 = vst.msk [vmem:[#allocation3 + $0x14] sm:$0xf] %vm1095_vm1, %v1198_v21  ;;  %1275 = vst.msk [vmem:[#allocation3 + $0x1c] sm:$0xf] %vm1095_vm1, %v1199_v60 }
 0x31b   : > { %v1232_v26 = vcombine.low %v1208_v22, %v1224_v24  ;;  %v1233_v27 = vcombine.high %v1208_v22, %v1224_v24  ;;  %v1248_v28 = vcombine.low %v1215_v23, %v1231_v25  ;;  %v1249_v29 = vcombine.high %v1215_v23, %v1231_v25 }
 0x31d   : > { %v1240_v30 = vrot.slane %v1232_v26, %v7504_v17  ;;  %v1247_v31 = vrot.slane %v1233_v27, %v7504_v17  ;;  %v1256_v32 = vrot.slane %v1248_v28, %v7504_v17  ;;  %v1263_v9 = vrot.slane %v1249_v29, %v7504_v17 }
 0x31f   : > { %v1264_v33 = vcombine.high %v1240_v30, %v7082_v42  ;;  %v1265_v34 = vcombine.high %v1247_v31, %v7082_v42  ;;  %v1266_v35 = vcombine.high %v1256_v32, %v7082_v42  ;;  %v1267_v36 = vcombine.high %v1263_v9, %v7082_v42  ;;  %1276 = vst.msk [vmem:[#allocation3 + $0x20] sm:$0xf] %vm1095_vm1, %v1240_v30 }
 0x320   : > { %1278 = vst.msk [vmem:[#allocation3 + $0x28] sm:$0xf] %vm1095_vm1, %v1247_v31  ;;  %1280 = vst.msk [vmem:[#allocation3 + $0x30] sm:$0xf] %vm1095_vm1, %v1256_v32 }
 0x321   : > { %1282 = vst.msk [vmem:[#allocation3 + $0x38] sm:$0xf] %vm1095_vm1, %v1263_v9  ;;  %1277 = vst.msk [vmem:[#allocation3 + $0x24] sm:$0xf] %vm1095_vm1, %v1264_v33 }
 0x322   : > { %1279 = vst.msk [vmem:[#allocation3 + $0x2c] sm:$0xf] %vm1095_vm1, %v1265_v34  ;;  %1281 = vst.msk [vmem:[#allocation3 + $0x34] sm:$0xf] %vm1095_vm1, %v1266_v35 }
 0x323   : > { %1283 = vst.msk [vmem:[#allocation3 + $0x3c] sm:$0xf] %vm1095_vm1, %v1267_v36 }
 0x324 PF: > { %p6336_p8 = scmp.ne.s32.totalorder %s7050_s30, 0 }
 0x325   : > { %s7597_s4 = scalar_lea.vmem (!%p6336_p8), %s7383_s3, %s7402_s0 [#allocation7]  ;;  %s5927_s8 = scalar_lea.vmem (!%p6336_p8), [#allocation6], %s7402_s0 }
 0x326   : > { %1286 = sbr.rel (%p6336_p8) target bundleno = 3022 (0xbce), region = 142  ;;  %s8610_s23 = sld [smem:[#allocation33_spill]] (!%p6336_p8) }
 0x327   : > { %s7087_s3 = smov (!%p6336_p8), 112   ;;  %s7088_s15 = smov (!%p6336_p8), 96  }
 0x328   : > { %s8616_s9 = sld [smem:[#allocation38_spill]] (!%p6336_p8)  ;;  %s7092_s10 = smov (!%p6336_p8), 48  }
 0x329   : > { %s8617_s21 = sld [smem:[#allocation39_spill]] (!%p6336_p8)  ;;  %s5894_s24 = scalar_lea.vmem (!%p6336_p8), [#allocation4], %s7402_s0 }
 0x32a   : > { %s5925_s6 = scalar_lea.vmem (!%p6336_p8), [#allocation5], %s7402_s0 }
 0x32b   : > { %vm1291_vm2 = vcmask 523264   ;;  %v1415_v17 = vld [vmem:[#allocation2] sm:$0xf]  ;;  %v8557_v38 = vmov 0.0   ;;  %v1416_v40 = vld [vmem:[#allocation2 + $0x4] sm:$0xf]  ;;  %v1948_v6 = vlaneseq }
 0x32c   : > { %v1288_v37 = vld [vmem:[%s7597_s4] sm:$0xff]  ;;  %5928 = vst.msk [vmem:[%s5927_s8] sm:$0xff] %vm1291_vm2, %v8557_v38  ;;  %1431 = vxpose.xlu1.b32.start.end [1/1] (short) (narrow) %v1415_v17, 16  ;;  %6499 = vmatprep.subr.mxu0 %v8557_v38  ;;  %v1418_v41 = vld [vmem:[#allocation2 + $0xc] sm:$0xf]  ;;  %s8611_s13 = smov %s8610_s23  ;;  %v1327_v7 = vld [vmem:[%s8610_s23 + $0x38] sm:$0xff] }
 0x32d   : > { %v1292_v39 = vsel %vm1291_vm2, %v1288_v37, 0.0  ;;  %6518 = vmatprep.subr.mxu1 %v8557_v38  ;;  %v1419_v42 = vld [vmem:[#allocation2 + $0x10] sm:$0xf]  ;;  %v1420_v43 = vld [vmem:[#allocation2 + $0x14] sm:$0xf]  ;;  %6500 = vmatpush3.msra.mxu0 %v1327_v7  ;;  %vm7085_vm3 = vmmov 0  }
 0x32e   : > { %1293 = vadd.xlane.f32.xlu0 %v1292_v39  ;;  %v1421_v44 = vld [vmem:[#allocation2 + $0x18] sm:$0xf]  ;;  %v1422_v45 = vld [vmem:[#allocation2 + $0x1c] sm:$0xf]  ;;  %v1423_v46 = vld [vmem:[#allocation2 + $0x20] sm:$0xf]  ;;  %6515 = vmatprep.mubr.msk.f32.mxu0 %vm7085_vm3, %v8557_v38 }
 0x32f   : > { %v1424_v47 = vld [vmem:[#allocation2 + $0x24] sm:$0xf]  ;;  %v1425_v48 = vld [vmem:[#allocation2 + $0x28] sm:$0xf]  ;;  %v1426_v49 = vld [vmem:[#allocation2 + $0x2c] sm:$0xf]  ;;  %6501 = vmatprep.subr.mxu0 %v8557_v38  ;;  %6522 = vmatprep.mubr.msk.f32.mxu1 %vm7085_vm3, %v8557_v38 }
 0x330   : > { %v1428_v50 = vld [vmem:[#allocation2 + $0x34] sm:$0xf]  ;;  %v1430_v51 = vld [vmem:[#allocation2 + $0x3c] sm:$0xf]  ;;  %v7084_v4 = vmov 1983009808  }
 0x331   : > { %1463 = vxpose.xlu1.b32.start.end [1/1] (short) (narrow) %v1416_v40, 16  ;;  %v1946_v5 = vunpack.c.l.s4 %v7084_v4  ;;  %v1326_v8 = vld [vmem:[%s8611_s13 + $0x30] sm:$0xff]  ;;  %v1325_v10 = vld [vmem:[%s8611_s13 + $0x28] sm:$0xff]  ;;  %v7647_v13 = vshrl.u32 %v1948_v6, 7  ;;  %v1324_v14 = vld [vmem:[%s8611_s13 + $0x20] sm:$0xff]  ;;  %s8612_s8 = sld [smem:[#allocation34_spill]] }
 0x332   : > { %6502 = vmatpush3.msra.mxu0 %v1326_v8  ;;  %v1323_v15 = vld [vmem:[%s8611_s13 + $0x18] sm:$0xff]  ;;  %v1322_v20 = vld [vmem:[%s8611_s13 + $0x10] sm:$0xff]  ;;  %v1321_v21 = vld [vmem:[%s8611_s13 + $0x8] sm:$0xff]  ;;  %s7089_s23 = smov 80   ;;  %vm3135_vm4 = vcmask 130048   ;;  %vm5801_vm5 = vcmask 261120  }
 0x333   : > { %v1947_v12 = vunpack.c.0.s8 %v1946_v5  ;;  %6503 = vmatprep.subr.mxu0 %v8557_v38  ;;  %v1320_v24 = vld [vmem:[%s8611_s13] sm:$0xff]  ;;  %v1417_v31 = vld [vmem:[#allocation2 + $0x8] sm:$0xf]  ;;  %v1427_v9 = vld [vmem:[#allocation2 + $0x30] sm:$0xf]  ;;  %vm5803_vm6 = vcmask 392192  }
 0x334   : > { %6504 = vmatpush3.msra.mxu0 %v1325_v10  ;;  %v1429_v34 = vld [vmem:[#allocation2 + $0x38] sm:$0xf] }
 0x335   : > { %6505 = vmatprep.subr.mxu0 %v8557_v38  ;;  %v7660_v18 = vsub.s32 %v1947_v12, %v7647_v13 }
 0x336   : > { %1527 = vxpose.xlu1.b32.start.end [1/1] (short) (narrow) %v1418_v41, 16  ;;  %6506 = vmatpush3.msra.mxu0 %v1324_v14 }
 0x337   : > { %6507 = vmatprep.subr.mxu0 %v8557_v38 }
 0x338   : > { %6508 = vmatpush3.msra.mxu0 %v1323_v15 }
 0x339   : > { %6509 = vmatprep.subr.mxu0 %v8557_v38 }
 0x33a   : > { %6510 = vmatpush3.msra.mxu0 %v1322_v20 }
 0x33b   : > { %1559 = vxpose.xlu1.b32.start.end [1/1] (short) (narrow) %v1419_v42, 16  ;;  %6511 = vmatprep.subr.mxu0 %v8557_v38 }
 0x33c   : > { %6512 = vmatpush3.msra.mxu0 %v1321_v21 }
 0x33d   : > { %6513 = vmatprep.subr.mxu0 %v8557_v38 }
 0x33e   : > { %6514 = vmatpush3.msra.mxu0 %v1320_v24 }
 0x33f   : > { %6566 = vmatprep.subr.mxu0 %v8557_v38 }
 0x340   : > { %1591 = vxpose.xlu1.b32.start.end [1/1] (short) (narrow) %v1420_v43, 16 }
 0x345   : > { %1623 = vxpose.xlu1.b32.start.end [1/1] (short) (narrow) %v1421_v44, 16 }
 0x34a   : > { %1655 = vxpose.xlu1.b32.start.end [1/1] (short) (narrow) %v1422_v45, 16 }
 0x34f   : > { %1687 = vxpose.xlu1.b32.start.end [1/1] (short) (narrow) %v1423_v46, 16  ;;  %v6337_v46 = vld [vmem:[#allocation10] ss:$0 sm:$0xff] }
 0x354   : > { %1719 = vxpose.xlu1.b32.start.end [1/1] (short) (narrow) %v1424_v47, 16 }
 0x359   : > { %1751 = vxpose.xlu1.b32.start.end [1/1] (short) (narrow) %v1425_v48, 16  ;;  %v6338_v48 = vld [vmem:[#allocation12] ss:$0 sm:$0xff] }
 0x35e   : > { %1783 = vxpose.xlu1.b32.start.end [1/1] (short) (narrow) %v1426_v49, 16 }
 0x363   : > { %1847 = vxpose.xlu1.b32.start.end [1/1] (short) (narrow) %v1428_v50, 16 }
 0x368   : > { %1911 = vxpose.xlu1.b32.start.end [1/1] (short) (narrow) %v1430_v51, 16 }
 0x3a8   : > { %v7606_v52 = vpop.trf.xlu1 }
 0x3ac   : > { %v7608_v53 = vpop.trf.xlu1 }
 0x3b0   : > { %v7610_v54 = vpop.trf.xlu1 }
 0x3b4   : > { %v7612_v55 = vpop.trf.xlu1 }
 0x3b7   : > { %v1294_v56 = vpop.xlane.xlu0 %1293 }
 0x3b8   : > { %v1296_v57 = vmul.f32 0.015625, %v1294_v56  ;;  %v7614_v58 = vpop.trf.xlu1 }
 0x3b9   : > { %v1960_v56 = vcombine.high %v7610_v54, %v7614_v58 }
 0x3ba   : > { %v7616_v59 = vsub.f32 %v1288_v37, %v1296_v57  ;;  %v7086_v57 = vmov 1934713408  }
 0x3bb   : > { %v7733_v5 = vrot.slane %v1960_v56, %v7660_v18 }
 0x3bc   : > { %v1298_v61 = vmul.f32 %v7616_v59, %v7616_v59  ;;  %v7620_v62 = vpop.trf.xlu1 }
 0x3bd   : > { %v2231_v8 = vcombine.low %v7612_v55, %v7620_v62 }
 0x3be   : > { %v1299_v63 = vsel %vm1291_vm2, %v1298_v61, 0.0  ;;  %v2010_v61 = vunpack.c.l.s4 %v7086_v57 }
 0x3bf   : > { %1300 = vadd.xlane.f32.xlu0 %v1299_v63 }
 0x3c0   : > { %v7623_v0 = vpop.trf.xlu1  ;;  %v2011_v6 = vunpack.c.0.s8 %v2010_v61 }
 0x3c2   : > { %v7753_v20 = vsub.s32 %v2011_v6, %v7647_v13 }
 0x3c4   : > { %v7625_v1 = vpop.trf.xlu1 }
 0x3c8   : > { %v7627_v2 = vpop.trf.xlu1 }
 0x3cc   : > { %v7629_v3 = vpop.trf.xlu1 }
 0x3d0   : > { %v7645_v11 = vpop.trf.xlu1 }
 0x3d1   : > { %v1976_v19 = vcombine.high %v7623_v0, %v7645_v11 }
 0x3d3   : > { %v7675_v22 = vrot.slane %v1976_v19, %v7660_v18 }
 0x3d4   : > { %v7657_v16 = vpop.trf.xlu1 }
 0x3d5   : > { %v2247_v63 = vcombine.low %v7625_v1, %v7657_v16 }
 0x3d7   : > { %v7740_v10 = vrot.slane %v2247_v63, %v7660_v18 }
 0x3d8   : > { %v7672_v60 = vpop.trf.xlu1 }
 0x3d9   : > { %v1992_v23 = vcombine.high %v7627_v2, %v7672_v60 }
 0x3db   : > { %v7684_v25 = vrot.slane %v1992_v23, %v7660_v18  ;;  %v7756_v23 = vrot.slane %v2231_v8, %v7660_v18 }
 0x3dc   : > { %v7687_v26 = vpop.trf.xlu1 }
 0x3dd   : > { %v2056_v27 = vcombine.high %v7675_v22, %v7684_v25 }
 0x3df   : > { %v7770_v13 = vrot.slane %v2056_v27, %v7753_v20 }
 0x3e0   : > { %v7692_v28 = vpop.trf.xlu1 }
 0x3e4   : > { %v7694_v29 = vpop.trf.xlu1 }
 0x3e8   : > { %v7696_v30 = vpop.trf.xlu1 }
 0x3ec   : > { %1495 = vxpose.xlu0.b32.start.end [1/1] (short) (narrow) %v1417_v31, 16  ;;  %v7698_v32 = vpop.trf.xlu1 }
 0x3f0   : > { %v7700_v33 = vpop.trf.xlu1 }
 0x3f1   : > { %1815 = vxpose.xlu0.b32.start.end [1/1] (short) (narrow) %v1427_v9, 16  ;;  %v2080_v36 = vcombine.high %v7692_v28, %v7700_v33 }
 0x3f3   : > { %v7709_v37 = vrot.slane %v2080_v36, %v7660_v18 }
 0x3f4   : > { %v7702_v35 = vpop.trf.xlu1 }
 0x3f5   : > { %v2351_v56 = vcombine.low %v7694_v29, %v7702_v35 }
 0x3f6   : > { %1879 = vxpose.xlu0.b32.start.end [1/1] (short) (narrow) %v1429_v34, 16 }
 0x3f7   : > { %v2359_v8 = vrot.slane %v2351_v56, %v7660_v18  ;;  %v2232_v56 = vcombine.high %v7612_v55, %v7620_v62 }
 0x3f8   : > { %v7706_v17 = vpop.trf.xlu1 }
 0x3f9   : > { %v2096_v39 = vcombine.high %v7696_v30, %v7706_v17 }
 0x3fb   : > { %v7714_v40 = vrot.slane %v2096_v39, %v7660_v18 }
 0x3fc   : > { %v7719_v51 = vpop.trf.xlu1 }
 0x3fd   : > { %v2160_v41 = vcombine.high %v7709_v37, %v7714_v40  ;;  %v2367_v57 = vcombine.low %v7698_v32, %v7719_v51  ;;  %v2368_v62 = vcombine.high %v7698_v32, %v7719_v51 }
 0x400   : > { %v7730_v4 = vpop.trf.xlu1 }
 0x404   : > { %v7750_v19 = vpop.trf.xlu1 }
 0x448   : > { %v1301_v42 = vpop.xlane.xlu0 %1300 }
 0x449   : > { %v1302_v43 = vmul.f32 0.015625, %v1301_v42 }
 0x44b   : > { %v1303_v44 = vadd.f32 1e-05, %v1302_v43 }
 0x44d   : > { %6813 = vrsqrt.f32 %v1303_v44  ;;  %v7774_v44 = vpop.trf.xlu1 }
 0x44e   : > { %v2128_v27 = vcombine.high %v7730_v4, %v7774_v44 }
 0x451   : > { %v1928_v61 = vpop.trf.xlu1 }
 0x45a   : > { %v6814_v45 = vpop.eup %6813 }
 0x45b   : > { %v1305_v47 = vmul.f32 %v6814_v45, %v7616_v59  ;;  %v2263_v59 = vcombine.low %v7629_v3, %v7687_v26 }
 0x45d   : > { %v1312_v49 = vmul.f32 %v6337_v46, %v1305_v47  ;;  %v7743_v12 = vrot.slane %v2263_v59, %v7660_v18  ;;  %v7790_v59 = vrot.slane %v2128_v27, %v7660_v18 }
 0x45f   : > { %v1319_v50 = vadd.f32 %v6338_v48, %v1312_v49  ;;  %v2311_v9 = vcombine.low %v7740_v10, %v7743_v12  ;;  %v2352_v48 = vcombine.high %v7694_v29, %v7702_v35 }
 0x461   : > { %6516 = vmatmul.mubr.msk.f32.vlgmr.msra.gmra.mxu0 %vm1291_vm2, %v1319_v50  ;;  %v2319_v43 = vrot.slane %v2311_v9, %v7753_v20 }
 0x462   : > { %6582 = vmatprep.mubr.msk.f32.mxu0 %vm7085_vm3, %v8557_v38 }
 0x468   : > { %v7735_v7 = vpop.trf.xlu0 }
 0x469   : > { %v1944_v14 = vcombine.high %v7606_v52, %v7735_v7 }
 0x46b   : > { %v7748_v15 = vrot.slane %v1944_v14, %v7660_v18  ;;  %v2375_v14 = vrot.slane %v2367_v57, %v7660_v18 }
 0x46c   : > { %v1512_v21 = vpop.trf.xlu0 }
 0x46d   : > { %v2024_v24 = vcombine.high %v7748_v15, %v7733_v5  ;;  %v2215_v31 = vcombine.low %v7608_v53, %v1512_v21 }
 0x46f   : > { %v2223_v34 = vrot.slane %v2215_v31, %v7660_v18  ;;  %v7767_v39 = vrot.slane %v2024_v24, %v7753_v20  ;;  %v2399_v24 = vcombine.low %v7750_v19, %v1928_v61 }
 0x470   : > { %v7764_v36 = vpop.trf.xlu0 }
 0x471   : > { %v2279_v42 = vcombine.low %v2223_v34, %v7756_v23  ;;  %v2280_v55 = vcombine.high %v2223_v34, %v7756_v23 }
 0x473   : > { %v2287_v45 = vrot.slane %v2279_v42, %v7753_v20 }
 0x474   : > { %v1832_v46 = vpop.trf.xlu0 }
 0x475   : > { %v2344_v49 = vcombine.high %v2287_v45, %v2319_v43  ;;  %v2343_v50 = vcombine.low %v2287_v45, %v2319_v43  ;;  %v2415_v43 = vcombine.low %v2359_v8, %v2375_v14  ;;  %v2407_v45 = vrot.slane %v2399_v24, %v7660_v18 }
 0x476   : > { %v2264_v24 = vcombine.high %v7629_v3, %v7687_v26  ;;  %v2400_v26 = vcombine.high %v7750_v19, %v1928_v61  ;;  %v2366_v19 = vrot.slane %v2352_v48, %v7660_v18 }
 0x477   : > { %2775 = vxpose.xlu0.b32.start [1/2] (short) (narrow) %v2344_v49, 8  ;;  %2743 = vxpose.xlu1.b32.start [1/2] (short) (narrow) %v2343_v50, 8  ;;  %v7807_v50 = vrot.slane %v2160_v41, %v7753_v20  ;;  %v2312_v41 = vcombine.high %v7740_v10, %v7743_v12  ;;  %v2423_v38 = vrot.slane %v2415_v43, %v7753_v20 }
 0x478   : > { %v7787_v63 = vpop.trf.xlu0  ;;  %v2246_v10 = vrot.slane %v2232_v56, %v7660_v18  ;;  %v2414_v61 = vrot.slane %v2400_v26, %v7660_v18  ;;  %v1991_v26 = vcombine.low %v7627_v2, %v7672_v60 }
 0x479   : > { %v2112_v6 = vcombine.high %v7764_v36, %v7787_v63  ;;  %v2326_v32 = vrot.slane %v2312_v41, %v7753_v20  ;;  %v2111_v2 = vcombine.low %v7764_v36, %v7787_v63 }
 0x47b   : > { %v7798_v31 = vrot.slane %v2112_v6, %v7660_v18  ;;  %v2248_v6 = vcombine.high %v7625_v1, %v7657_v16  ;;  %v2416_v1 = vcombine.high %v2359_v8, %v2375_v14  ;;  %v2294_v8 = vrot.slane %v2280_v55, %v7753_v20 }
 0x47c   : > { %v1896_v9 = vpop.trf.xlu0 }
 0x47d   : > { %v2192_v42 = vcombine.high %v7798_v31, %v7790_v59  ;;  %v2383_v49 = vcombine.low %v1832_v46, %v1896_v9  ;;  %v2384_v29 = vcombine.high %v1832_v46, %v1896_v9  ;;  %v2262_v12 = vrot.slane %v2248_v6, %v7660_v18 }
 0x47e   : > { %v2382_v46 = vrot.slane %v2368_v62, %v7660_v18  ;;  %v2345_v43 = vcombine.low %v2294_v8, %v2326_v32 }
 0x47f   : > { %v7810_v27 = vrot.slane %v2192_v42, %v7753_v20  ;;  %v2391_v57 = vrot.slane %v2383_v49, %v7660_v18  ;;  %v2216_v42 = vcombine.high %v7608_v53, %v1512_v21  ;;  %v2278_v21 = vrot.slane %v2264_v24, %v7660_v18 }
 0x480   : > { %v2398_v14 = vrot.slane %v2384_v29, %v7660_v18  ;;  %v2431_v56 = vcombine.low %v2366_v19, %v2382_v46  ;;  %v2079_v29 = vcombine.low %v7692_v28, %v7700_v33 }
 0x481   : > { %v2447_v47 = vcombine.low %v2391_v57, %v2407_v45  ;;  %v2213_v3 = vcombine.low %v7807_v50, %v7810_v27  ;;  %v2214_v16 = vcombine.high %v7807_v50, %v7810_v27  ;;  %v2448_v35 = vcombine.high %v2391_v57, %v2407_v45  ;;  %v3480_v50 = vld [vmem:[#allocation3 + $0x30] sm:$0xf]  ;;  %v3483_v27 = vld [vmem:[#allocation3 + $0x3c] sm:$0xf] }
 0x482   : > { %v2230_v51 = vrot.slane %v2216_v42, %v7660_v18  ;;  %v2346_v45 = vcombine.high %v2294_v8, %v2326_v32  ;;  %v2463_v57 = vcombine.low %v2398_v14, %v2414_v61  ;;  %v1959_v42 = vcombine.low %v7610_v54, %v7614_v58 }
 0x483   : > { %v2455_v53 = vrot.slane %v2447_v47, %v7753_v20  ;;  %v2430_v47 = vrot.slane %v2416_v1, %v7753_v20  ;;  %v2462_v9 = vrot.slane %v2448_v35, %v7753_v20  ;;  %v2439_v55 = vrot.slane %v2431_v56, %v7753_v20 }
 0x484   : > { %v2295_v49 = vcombine.low %v2230_v51, %v2246_v10  ;;  %v2471_v62 = vrot.slane %v2463_v57, %v7753_v20  ;;  %v1975_v1 = vcombine.low %v7623_v0, %v7645_v11  ;;  %v2328_v35 = vcombine.high %v2262_v12, %v2278_v21 }
 0x485   : > { %v2480_v23 = vcombine.high %v2423_v38, %v2455_v53  ;;  %v2479_v34 = vcombine.low %v2423_v38, %v2455_v53  ;;  %v2327_v38 = vcombine.low %v2262_v12, %v2278_v21  ;;  %v2481_v48 = vcombine.low %v2430_v47, %v2462_v9 }
 0x486   : > { %v2482_v6 = vcombine.high %v2430_v47, %v2462_v9  ;;  %v2303_v24 = vrot.slane %v2295_v49, %v7753_v20  ;;  %v1943_v53 = vcombine.low %v7606_v52, %v7735_v7  ;;  %v2296_v32 = vcombine.high %v2230_v51, %v2246_v10 }
 0x487   : > { %2776 = vxpose.xlu0.b32.end [2/2] (short) (narrow) %v2480_v23, 8  ;;  %2744 = vxpose.xlu1.b32.end [2/2] (short) (narrow) %v2479_v34, 8  ;;  %v2335_v41 = vrot.slane %v2327_v38, %v7753_v20  ;;  %v2095_v23 = vcombine.low %v7696_v30, %v7706_v17  ;;  %v2432_v34 = vcombine.high %v2366_v19, %v2382_v46 }
 0x488   : > { %v2127_v0 = vcombine.low %v7730_v4, %v7774_v44  ;;  %v2464_v11 = vcombine.high %v2398_v14, %v2414_v61  ;;  %v2483_v60 = vcombine.low %v2439_v55, %v2471_v62  ;;  %v2484_v28 = vcombine.high %v2439_v55, %v2471_v62 }
 0x489   : > { %v2347_v54 = vcombine.low %v2303_v24, %v2335_v41  ;;  %v2348_v58 = vcombine.high %v2303_v24, %v2335_v41  ;;  %v1967_v52 = vrot.slane %v1959_v42, %v7660_v18  ;;  %v1983_v33 = vrot.slane %v1975_v1, %v7660_v18 }
 0x48a   : > { %v1999_v7 = vrot.slane %v1991_v26, %v7660_v18  ;;  %v1951_v30 = vrot.slane %v1943_v53, %v7660_v18  ;;  %v2310_v17 = vrot.slane %v2296_v32, %v7753_v20  ;;  %v2342_v4 = vrot.slane %v2328_v35, %v7753_v20 }
 0x48b   : > { %2807 = vxpose.xlu0.b32.start [1/2] (short) (narrow) %v2345_v43, 8  ;;  %2839 = vxpose.xlu1.b32.start [1/2] (short) (narrow) %v2346_v45, 8  ;;  %v2087_v44 = vrot.slane %v2079_v29, %v7660_v18  ;;  %v2103_v36 = vrot.slane %v2095_v23, %v7660_v18  ;;  %v2135_v63 = vrot.slane %v2127_v0, %v7660_v18 }
 0x48c   : > { %v2119_v10 = vrot.slane %v2111_v2, %v7660_v18  ;;  %v2446_v12 = vrot.slane %v2432_v34, %v7753_v20  ;;  %v2478_v21 = vrot.slane %v2464_v11, %v7753_v20  ;;  %v2349_v51 = vcombine.low %v2310_v17, %v2342_v4 }
 0x48d   : > { %v2350_v8 = vcombine.high %v2310_v17, %v2342_v4  ;;  %v2007_v19 = vcombine.low %v1951_v30, %v1967_v52  ;;  %v2039_v46 = vcombine.low %v1983_v33, %v1999_v7  ;;  %v2143_v47 = vcombine.low %v2087_v44, %v2103_v36 }
 0x48e   : > { %v2175_v61 = vcombine.low %v2119_v10, %v2135_v63  ;;  %v2485_v14 = vcombine.low %v2446_v12, %v2478_v21  ;;  %v2486_v9 = vcombine.high %v2446_v12, %v2478_v21  ;;  %v2144_v42 = vcombine.high %v2087_v44, %v2103_v36 }
 0x48f   : > { %2808 = vxpose.xlu0.b32.end [2/2] (short) (narrow) %v2481_v48, 8  ;;  %2840 = vxpose.xlu1.b32.end [2/2] (short) (narrow) %v2482_v6, 8  ;;  %v2015_v43 = vrot.slane %v2007_v19, %v7753_v20  ;;  %v2047_v45 = vrot.slane %v2039_v46, %v7753_v20  ;;  %v2151_v49 = vrot.slane %v2143_v47, %v7753_v20 }
 0x490   : > { %v2183_v38 = vrot.slane %v2175_v61, %v7753_v20  ;;  %v2008_v48 = vcombine.high %v1951_v30, %v1967_v52  ;;  %v2040_v6 = vcombine.high %v1983_v33, %v1999_v7  ;;  %v2176_v55 = vcombine.high %v2119_v10, %v2135_v63  ;;  %v6339_v61 = vld [vmem:[%s8612_s8] ss:$0 sm:$0xff] }
 0x491   : > { %v2071_v56 = vcombine.low %v2015_v43, %v2047_v45  ;;  %v2072_v57 = vcombine.high %v2015_v43, %v2047_v45  ;;  %v2158_v26 = vrot.slane %v2144_v42, %v7753_v20  ;;  %v2055_v29 = vcombine.low %v7675_v22, %v7684_v25  ;;  %v3468_v42 = vld [vmem:[#allocation3] sm:$0xf] }
 0x492   : > { %v2207_v24 = vcombine.low %v2151_v49, %v2183_v38  ;;  %v2208_v41 = vcombine.high %v2151_v49, %v2183_v38  ;;  %v2022_v62 = vrot.slane %v2008_v48, %v7753_v20  ;;  %v2054_v1 = vrot.slane %v2040_v6, %v7753_v20 }
 0x493   : > { %2871 = vxpose.xlu0.b32.start [1/2] (short) (narrow) %v2347_v54, 8  ;;  %2903 = vxpose.xlu1.b32.start [1/2] (short) (narrow) %v2348_v58, 8  ;;  %v2190_v54 = vrot.slane %v2176_v55, %v7753_v20  ;;  %v2023_v58 = vcombine.low %v7748_v15, %v7733_v5  ;;  %v2159_v32 = vcombine.low %v7709_v37, %v7714_v40  ;;  %v3470_v55 = vld [vmem:[#allocation3 + $0x8] sm:$0xf] }
 0x494   : > { %v2073_v35 = vcombine.low %v2022_v62, %v2054_v1  ;;  %v2074_v53 = vcombine.high %v2022_v62, %v2054_v1  ;;  %v2063_v23 = vrot.slane %v2055_v29, %v7753_v20  ;;  %v2191_v34 = vcombine.low %v7798_v31, %v7790_v59  ;;  %v3471_v1 = vld [vmem:[#allocation3 + $0xc] sm:$0xf]  ;;  %v3473_v29 = vld [vmem:[#allocation3 + $0x14] sm:$0xf] }
 0x495   : > { %v2209_v0 = vcombine.low %v2158_v26, %v2190_v54  ;;  %v2210_v2 = vcombine.high %v2158_v26, %v2190_v54  ;;  %v2031_v22 = vrot.slane %v2023_v58, %v7753_v20  ;;  %v2167_v5 = vrot.slane %v2159_v32, %v7753_v20  ;;  %v3469_v26 = vld [vmem:[#allocation3 + $0x4] sm:$0xf]  ;;  %v3478_v58 = vld [vmem:[#allocation3 + $0x28] sm:$0xf]  ;;  %v3481_v32 = vld [vmem:[#allocation3 + $0x34] sm:$0xf] }
 0x496   : > { %v2199_v15 = vrot.slane %v2191_v34, %v7753_v20  ;;  %v8615_v62 = vcombine.high %v7767_v39, %v7770_v13  ;;  %v3477_v54 = vld [vmem:[#allocation3 + $0x24] sm:$0xf] }
 0x497   : > { %2872 = vxpose.xlu0.b32.end [2/2] (short) (narrow) %v2483_v60, 8  ;;  %2904 = vxpose.xlu1.b32.end [2/2] (short) (narrow) %v2484_v28, 8  ;;  %v2075_v25 = vcombine.low %v2031_v22, %v2063_v23  ;;  %v2076_v11 = vcombine.high %v2031_v22, %v2063_v23 }
 0x498   : > { %v2211_v37 = vcombine.low %v2167_v5, %v2199_v15  ;;  %v2212_v40 = vcombine.high %v2167_v5, %v2199_v15 }
 0x49b   : > { %2935 = vxpose.xlu0.b32.start [1/2] (short) (narrow) %v2349_v51, 8  ;;  %2967 = vxpose.xlu1.b32.start [1/2] (short) (narrow) %v2350_v8, 8 }
 0x49f   : > { %2936 = vxpose.xlu0.b32.end [2/2] (short) (narrow) %v2485_v14, 8  ;;  %2968 = vxpose.xlu1.b32.end [2/2] (short) (narrow) %v2486_v9, 8 }
 0x4a3   : > { %2487 = vxpose.xlu0.b32.start [1/2] (short) (narrow) %v2071_v56, 8  ;;  %2519 = vxpose.xlu1.b32.start [1/2] (short) (narrow) %v2072_v57, 8  ;;  %v8613_v56 = vmov 0.0  }
 0x4a7   : > { %2488 = vxpose.xlu0.b32.end [2/2] (short) (narrow) %v2207_v24, 8  ;;  %2520 = vxpose.xlu1.b32.end [2/2] (short) (narrow) %v2208_v41, 8  ;;  %v8614_v41 = vcombine.low %v7767_v39, %v7770_v13  ;;  %v3476_v39 = vld [vmem:[#allocation3 + $0x20] sm:$0xf]  ;;  %v3479_v13 = vld [vmem:[#allocation3 + $0x2c] sm:$0xf] }
 0x4ab   : > { %2551 = vxpose.xlu0.b32.start [1/2] (short) (narrow) %v2073_v35, 8  ;;  %2583 = vxpose.xlu1.b32.start [1/2] (short) (narrow) %v2074_v53, 8  ;;  %v3472_v35 = vld [vmem:[#allocation3 + $0x10] sm:$0xf]  ;;  %v3474_v53 = vld [vmem:[#allocation3 + $0x18] sm:$0xf] }
 0x4af   : > { %2552 = vxpose.xlu0.b32.end [2/2] (short) (narrow) %v2209_v0, 8  ;;  %2584 = vxpose.xlu1.b32.end [2/2] (short) (narrow) %v2210_v2, 8 }
 0x4b3   : > { %2615 = vxpose.xlu0.b32.start [1/2] (short) (narrow) %v2075_v25, 8  ;;  %2647 = vxpose.xlu1.b32.start [1/2] (short) (narrow) %v2076_v11, 8 }
 0x4b7   : > { %2616 = vxpose.xlu0.b32.end [2/2] (short) (narrow) %v2211_v37, 8  ;;  %2648 = vxpose.xlu1.b32.end [2/2] (short) (narrow) %v2212_v40, 8 }
 0x4ff   : > { %v2791_v60 = vpop.trf.xlu0  ;;  %v2759_v59 = vpop.trf.xlu1 }
 0x507   : > { %v2823_v31 = vpop.trf.xlu0  ;;  %v2855_v28 = vpop.trf.xlu1 }
 0x508   : > { %v3067_v52 = vcombine.low %v2759_v59, %v2823_v31  ;;  %v3075_v33 = vcombine.low %v2791_v60, %v2855_v28 }
 0x50a   : > { %v3074_v7 = vrot.slane %v3067_v52, %v7660_v18  ;;  %v3082_v30 = vrot.slane %v3075_v33, %v7660_v18 }
 0x50c   : > { %v3100_v17 = vcombine.high %v3074_v7, %v3082_v30  ;;  %v3099_v10 = vcombine.low %v3074_v7, %v3082_v30 }
 0x50e   : > { %v7903_v47 = vrot.slane %v3099_v10, %v7753_v20  ;;  %v7922_v57 = vrot.slane %v3100_v17, %v7753_v20 }
 0x50f   : > { %v2887_v4 = vpop.trf.xlu0  ;;  %v2919_v44 = vpop.trf.xlu1 }
 0x517   : > { %v2951_v36 = vpop.trf.xlu0  ;;  %v2983_v63 = vpop.trf.xlu1 }
 0x518   : > { %v3083_v12 = vcombine.low %v2887_v4, %v2951_v36  ;;  %v3091_v21 = vcombine.low %v2919_v44, %v2983_v63 }
 0x51a   : > { %v3090_v51 = vrot.slane %v3083_v12, %v7660_v18  ;;  %v3098_v8 = vrot.slane %v3091_v21, %v7660_v18 }
 0x51c   : > { %v3115_v19 = vcombine.low %v3090_v51, %v3098_v8  ;;  %v3116_v46 = vcombine.high %v3090_v51, %v3098_v8 }
 0x51e   : > { %v7909_v14 = vrot.slane %v3115_v19, %v7753_v20  ;;  %v7925_v48 = vrot.slane %v3116_v46, %v7753_v20 }
 0x51f   : > { %v2503_v23 = vpop.trf.xlu0  ;;  %v2535_v0 = vpop.trf.xlu1 }
 0x520   : > { %v3131_v43 = vcombine.low %v7903_v47, %v7909_v14  ;;  %v3132_v45 = vcombine.high %v7903_v47, %v7909_v14  ;;  %v3133_v6 = vcombine.low %v7922_v57, %v7925_v48  ;;  %v3134_v24 = vcombine.high %v7922_v57, %v7925_v48 }
 0x521   : > { %v1404_v9 = vpop.f32.mrf.mxu0 }
 0x522   : > { %v7915_v49 = vadd.f32 %v6339_v61, %v1404_v9  ;;  %6519 = vmatpush3.msra.mxu1 %v3131_v43 }
 0x523   : > { %v6517_v38 = vpop.f32.mrf.mxu0  ;;  %6520 = vmatprep.subr.mxu1 %v8613_v56 }
 0x524   : > { %1409 = vrot.lane.b32.xlu0 %v7915_v49, %s7087_s3  ;;  %1411 = vrot.lane.b32.xlu1 %v7915_v49, %s7088_s15  ;;  %s7090_s15 = smov 32   ;;  %s8618_s3 = sld [smem:[#allocation40_spill]] }
 0x527   : > { %v2567_v34 = vpop.trf.xlu0  ;;  %v2599_v22 = vpop.trf.xlu1 }
 0x528   : > { %1413 = vrot.lane.b32.xlu1 %v7915_v49, %s7089_s23  ;;  %v2999_v40 = vcombine.low %v2503_v23, %v2567_v34  ;;  %v3007_v60 = vcombine.low %v2535_v0, %v2599_v22  ;;  %s7091_s23 = smov 16  }
 0x52a   : > { %v3006_v28 = vrot.slane %v2999_v40, %v7660_v18  ;;  %v3014_v52 = vrot.slane %v3007_v60, %v7660_v18 }
 0x52c   : > { %v3031_v44 = vcombine.low %v3006_v28, %v3014_v52  ;;  %v3032_v38 = vcombine.high %v3006_v28, %v3014_v52 }
 0x52e   : > { %v3039_v8 = vrot.slane %v3031_v44, %v7753_v20 }
 0x52f   : > { %v2631_v2 = vpop.trf.xlu0  ;;  %v2663_v11 = vpop.trf.xlu1 }
 0x542   : > { %2679 = vxpose.xlu0.b32.start [1/2] (short) (narrow) %v8614_v41, 8 }
 0x546   : > { %2680 = vxpose.xlu0.b32.end [2/2] (short) (narrow) %v2213_v3, 8  ;;  %v3475_v3 = vld [vmem:[#allocation3 + $0x1c] sm:$0xf] }
 0x54a   : > { %3484 = vxpose.xlu0.b32.start.end [1/1] (short) (narrow) %v3468_v42, 16 }
 0x54f   : > { %3548 = vxpose.xlu0.b32.start.end [1/1] (short) (narrow) %v3470_v55, 16 }
 0x551   : > { %2711 = vxpose.xlu1.b32.start [1/2] (short) (narrow) %v8615_v62, 8 }
 0x554   : > { %3580 = vxpose.xlu0.b32.start.end [1/1] (short) (narrow) %v3471_v1, 16 }
 0x555   : > { %2712 = vxpose.xlu1.b32.end [2/2] (short) (narrow) %v2214_v16, 8  ;;  %v3482_v16 = vld [vmem:[#allocation3 + $0x38] sm:$0xf] }
 0x559   : > { %3516 = vxpose.xlu1.b32.start.end [1/1] (short) (narrow) %v3469_v26, 16  ;;  %3644 = vxpose.xlu0.b32.start.end [1/1] (short) (narrow) %v3473_v29, 16 }
 0x55e   : > { %3612 = vxpose.xlu1.b32.start.end [1/1] (short) (narrow) %v3472_v35, 16  ;;  %3708 = vxpose.xlu0.b32.start.end [1/1] (short) (narrow) %v3475_v3, 16  ;;  %v3046_v35 = vrot.slane %v3032_v38, %v7753_v20 }
 0x563   : > { %3676 = vxpose.xlu1.b32.start.end [1/1] (short) (narrow) %v3474_v53, 16  ;;  %3772 = vxpose.xlu0.b32.start.end [1/1] (short) (narrow) %v3477_v54, 16 }
 0x568   : > { %3740 = vxpose.xlu1.b32.start.end [1/1] (short) (narrow) %v3476_v39, 16  ;;  %3836 = vxpose.xlu0.b32.start.end [1/1] (short) (narrow) %v3479_v13, 16 }
 0x56d   : > { %3804 = vxpose.xlu1.b32.start.end [1/1] (short) (narrow) %v3478_v58, 16  ;;  %3900 = vxpose.xlu0.b32.start.end [1/1] (short) (narrow) %v3481_v32, 16 }
 0x572   : > { %3868 = vxpose.xlu1.b32.start.end [1/1] (short) (narrow) %v3480_v50, 16  ;;  %3964 = vxpose.xlu0.b32.start.end [1/1] (short) (narrow) %v3483_v27, 16 }
 0x577   : > { %3932 = vxpose.xlu1.b32.start.end [1/1] (short) (narrow) %v3482_v16, 16 }
 0x596   : > { %v1410_v25 = vpop.permute.xlu0 %1409  ;;  %v1412_v15 = vpop.permute.xlu1 %1411 }
 0x59a   : > { %v7945_v59 = vpop.permute.xlu1 %1413 }
 0x5be   : > { %v2695_v5 = vpop.trf.xlu0 }
 0x5bf   : > { %v3015_v33 = vcombine.low %v2631_v2, %v2695_v5 }
 0x5c1   : > { %v3022_v36 = vrot.slane %v3015_v33, %v7660_v18 }
 0x5c6   : > { %v7943_v37 = vpop.trf.xlu0 }
 0x5ca   : > { %v3501_v31 = vpop.trf.xlu0 }
 0x5cd   : > { %v2727_v7 = vpop.trf.xlu1 }
 0x5ce   : > { %v3023_v30 = vcombine.low %v2663_v11, %v2727_v7  ;;  %v7949_v17 = vpop.trf.xlu0 }
 0x5cf   : > { %v3997_v4 = vcombine.high %v7943_v37, %v7949_v17  ;;  %v3996_v3 = vcombine.low %v7943_v37, %v7949_v17 }
 0x5d0   : > { %v3030_v63 = vrot.slane %v3023_v30, %v7660_v18 }
 0x5d1   : > { %v8008_v23 = vrot.slane %v3996_v3, %v7660_v18 }
 0x5d2   : > { %v3047_v10 = vcombine.low %v3022_v36, %v3030_v63  ;;  %v3565_v12 = vpop.trf.xlu0  ;;  %v3048_v61 = vcombine.high %v3022_v36, %v3030_v63 }
 0x5d3   : > { %v4268_v21 = vcombine.low %v3501_v31, %v3565_v12  ;;  %v4269_v51 = vcombine.high %v3501_v31, %v3565_v12 }
 0x5d4   : > { %v3055_v19 = vrot.slane %v3047_v10, %v7753_v20  ;;  %v3062_v42 = vrot.slane %v3048_v61, %v7753_v20 }
 0x5d5   : > { %v7957_v46 = vpop.trf.xlu1  ;;  %v7971_v1 = vrot.slane %v4268_v21, %v7660_v18  ;;  %v7974_v26 = vrot.slane %v4269_v51, %v7660_v18 }
 0x5d6   : > { %v7959_v9 = vpop.trf.xlu0  ;;  %v3063_v43 = vcombine.low %v3039_v8, %v3055_v19  ;;  %v3064_v62 = vcombine.high %v3039_v8, %v3055_v19  ;;  %v3065_v39 = vcombine.low %v3046_v35, %v3062_v42  ;;  %v3066_v16 = vcombine.high %v3046_v35, %v3062_v42 }
 0x5d7   : > { %v4012_v53 = vcombine.low %v7957_v46, %v7959_v9 }
 0x5d8   : > { %6521 = vmatpush3.msra.mxu1 %v3063_v43 }
 0x5d9   : > { %6523 = vmatmul.mubr.msk.f32.vlgmr.msra.gmra.mxu1 %vm3135_vm4, %v7915_v49  ;;  %6525 = vmatprep.subr.mxu1 %v8613_v56  ;;  %v3533_v41 = vpop.trf.xlu1  ;;  %v8011_v34 = vrot.slane %v4012_v53, %v7660_v18 }
 0x5da   : > { %v3597_v55 = vpop.trf.xlu0  ;;  %6526 = vmatpush3.msra.mxu1 %v3132_v45  ;;  %6529 = vmatprep.mubr.msk.f32.mxu1 %vm7085_vm3, %v8613_v56 }
 0x5db   : > { %v4284_v49 = vcombine.low %v3533_v41, %v3597_v55  ;;  %v4285_v29 = vcombine.high %v3533_v41, %v3597_v55  ;;  %6527 = vmatprep.subr.mxu1 %v8613_v56  ;;  %v4060_v2 = vcombine.low %v8008_v23, %v8011_v34 }
 0x5dc   : > { %6528 = vmatpush3.msra.mxu1 %v3064_v62 }
 0x5dd   : > { %v4292_v47 = vrot.slane %v4284_v49, %v7660_v18  ;;  %v4299_v14 = vrot.slane %v4285_v29, %v7660_v18  ;;  %6530 = vmatmul.mubr.msk.f32.vlgmr.msra.gmra.mxu1 %vm3135_vm4, %v1410_v25  ;;  %6532 = vmatprep.subr.mxu1 %v8613_v56  ;;  %v7982_v45 = vpop.trf.xlu1  ;;  %v4068_v31 = vrot.slane %v4060_v2, %v7753_v20 }
 0x5de   : > { %v7988_v54 = vpop.trf.xlu0  ;;  %6533 = vmatpush3.msra.mxu1 %v3133_v6  ;;  %6536 = vmatprep.mubr.msk.f32.mxu1 %vm7085_vm3, %v8613_v56 }
 0x5df   : > { %v4333_v13 = vcombine.high %v7971_v1, %v4292_v47  ;;  %v4348_v58 = vcombine.low %v7974_v26, %v4299_v14  ;;  %v4349_v32 = vcombine.high %v7974_v26, %v4299_v14  ;;  %6534 = vmatprep.subr.mxu1 %v8613_v56  ;;  %v4332_v50 = vcombine.low %v7971_v1, %v4292_v47 }
 0x5e0   : > { %6535 = vmatpush3.msra.mxu1 %v3065_v39 }
 0x5e1   : > { %6537 = vmatmul.mubr.msk.f32.vlgmr.msra.gmra.mxu1 %vm3135_vm4, %v1412_v15  ;;  %6539 = vmatprep.subr.mxu1 %v8613_v56  ;;  %v3629_v6 = vpop.trf.xlu1  ;;  %v8045_v19 = vrot.slane %v4333_v13, %v7753_v20  ;;  %v8048_v61 = vrot.slane %v4348_v58, %v7753_v20  ;;  %v8053_v38 = vrot.slane %v4332_v50, %v7753_v20 }
 0x5e2   : > { %v3661_v27 = vpop.trf.xlu0  ;;  %6540 = vmatpush3.msra.mxu1 %v3134_v24  ;;  %6543 = vmatprep.mubr.msk.f32.mxu1 %vm7085_vm3, %v8613_v56  ;;  %v8056_v42 = vrot.slane %v4349_v32, %v7753_v20 }
 0x5e3   : > { %6541 = vmatprep.subr.mxu1 %v8613_v56 }
 0x5e4   : > { %6542 = vmatpush3.msra.mxu1 %v3066_v16 }
 0x5e5   : > { %6544 = vmatmul.mubr.msk.f32.vlgmr.msra.gmra.mxu1 %vm3135_vm4, %v7945_v59  ;;  %v8016_v0 = vpop.trf.xlu1 }
 0x5e6   : > { %v8018_v57 = vpop.trf.xlu0  ;;  %v4028_v48 = vcombine.low %v7982_v45, %v8016_v0 }
 0x5e7   : > { %v4044_v24 = vcombine.low %v7988_v54, %v8018_v57  ;;  %v4045_v37 = vcombine.high %v7988_v54, %v8018_v57 }
 0x5e8   : > { %v8027_v22 = vrot.slane %v4028_v48, %v7660_v18 }
 0x5e9   : > { %v8030_v25 = vrot.slane %v4044_v24, %v7660_v18  ;;  %v3693_v11 = vpop.trf.xlu1 }
 0x5ea   : > { %v3725_v5 = vpop.trf.xlu0  ;;  %v4300_v15 = vcombine.low %v3629_v6, %v3693_v11  ;;  %v4301_v40 = vcombine.high %v3629_v6, %v3693_v11 }
 0x5eb   : > { %v4316_v60 = vcombine.low %v3661_v27, %v3725_v5  ;;  %v4317_v59 = vcombine.high %v3661_v27, %v3725_v5  ;;  %v4092_v28 = vcombine.low %v8027_v22, %v8030_v25 }
 0x5ec   : > { %v4308_v52 = vrot.slane %v4300_v15, %v7660_v18  ;;  %v4315_v33 = vrot.slane %v4301_v40, %v7660_v18 }
 0x5ed   : > { %v4324_v7 = vrot.slane %v4316_v60, %v7660_v18  ;;  %v4331_v30 = vrot.slane %v4317_v59, %v7660_v18  ;;  %v8039_v44 = vpop.trf.xlu1  ;;  %v4100_v36 = vrot.slane %v4092_v28, %v7753_v20 }
 0x5ee   : > { %v8042_v63 = vpop.trf.xlu0 }
 0x5ef   : > { %v4365_v10 = vcombine.high %v4308_v52, %v4324_v7  ;;  %v4380_v12 = vcombine.low %v4315_v33, %v4331_v30  ;;  %v4381_v21 = vcombine.high %v4315_v33, %v4331_v30  ;;  %v4125_v51 = vcombine.high %v4068_v31, %v4100_v36 }
 0x5f0   : > { %v4124_v8 = vcombine.low %v4068_v31, %v4100_v36  ;;  %v4364_v41 = vcombine.low %v4308_v52, %v4324_v7  ;;  %v4013_v33 = vcombine.high %v7957_v46, %v7959_v9  ;;  %v4061_v9 = vcombine.high %v8008_v23, %v8011_v34 }
 0x5f1   : > { %v8050_v43 = vpop.trf.xlu1  ;;  %4572 = vxpose.xlu0.b32.start [1/2] (short) (narrow) %v4125_v51, 8  ;;  %v8061_v62 = vrot.slane %v4365_v10, %v7753_v20  ;;  %v8064_v1 = vrot.slane %v4380_v12, %v7753_v20  ;;  %v8067_v26 = vrot.slane %v4381_v21, %v7753_v20  ;;  %v8112_v21 = vrot.slane %v3997_v4, %v7660_v18 }
 0x5f2   : > { %v8058_v55 = vpop.trf.xlu0  ;;  %4540 = vxpose.xlu1.b32.start [1/2] (short) (narrow) %v4124_v8, 8  ;;  %v8070_v49 = vrot.slane %v4364_v41, %v7753_v20  ;;  %v8116_v8 = vrot.slane %v4013_v33, %v7660_v18  ;;  %v4029_v41 = vcombine.high %v7982_v45, %v8016_v0  ;;  %v4093_v4 = vcombine.high %v8027_v22, %v8030_v25 }
 0x5f3   : > { %v4399_v29 = vcombine.high %v8045_v19, %v8061_v62  ;;  %v4398_v35 = vcombine.low %v8045_v19, %v8061_v62  ;;  %v4400_v47 = vcombine.low %v8048_v61, %v8064_v1  ;;  %v4401_v14 = vcombine.high %v8048_v61, %v8064_v1 }
 0x5f4   : > { %v4396_v53 = vcombine.low %v8053_v38, %v8070_v49  ;;  %v4397_v39 = vcombine.high %v8053_v38, %v8070_v49  ;;  %v4402_v13 = vcombine.low %v8056_v42, %v8067_v26  ;;  %v4403_v58 = vcombine.high %v8056_v42, %v8067_v26 }
 0x5f5   : > { %v3820_v3 = vpop.trf.xlu1  ;;  %v4043_v57 = vrot.slane %v4029_v41, %v7660_v18  ;;  %v4075_v25 = vrot.slane %v4061_v9, %v7753_v20 }
 0x5f6   : > { %v3852_v32 = vpop.trf.xlu0  ;;  %v4132_v15 = vcombine.low %v8039_v44, %v3820_v3  ;;  %v4133_v17 = vcombine.high %v8039_v44, %v3820_v3 }
 0x5f7   : > { %v4148_v5 = vcombine.low %v8042_v63, %v3852_v32  ;;  %v4149_v45 = vcombine.high %v8042_v63, %v3852_v32  ;;  %v4059_v63 = vrot.slane %v4045_v37, %v7660_v18  ;;  %v4107_v32 = vrot.slane %v4093_v4, %v7753_v20 }
 0x5f8   : > { %v4140_v52 = vrot.slane %v4132_v15, %v7660_v18  ;;  %v4147_v3 = vrot.slane %v4133_v17, %v7660_v18 }
 0x5f9   : > { %v8088_v50 = vpop.trf.xlu1  ;;  %v4156_v28 = vrot.slane %v4148_v5, %v7660_v18  ;;  %v4108_v9 = vcombine.low %v4043_v57, %v4059_v63  ;;  %v4126_v37 = vcombine.low %v4075_v25, %v4107_v32 }
 0x5fa   : > { %v8090_v6 = vpop.trf.xlu0  ;;  %v4405_v27 = vcombine.high %v8050_v43, %v8088_v50 }
 0x5fb   : > { %v4421_v16 = vcombine.high %v8058_v55, %v8090_v6  ;;  %v4196_v10 = vcombine.low %v4140_v52, %v4156_v28  ;;  %v4197_v0 = vcombine.high %v4140_v52, %v4156_v28 }
 0x5fc   : > { %v4419_v48 = vrot.slane %v4405_v27, %v7660_v18 }
 0x5fd   : > { %v3884_v24 = vpop.trf.xlu1  ;;  %v4435_v2 = vrot.slane %v4421_v16, %v7660_v18  ;;  %v4211_v33 = vrot.slane %v4197_v0, %v7753_v20 }
 0x5fe   : > { %v3916_v11 = vpop.trf.xlu0 }
 0x5ff   : > { %v4484_v40 = vcombine.low %v4419_v48, %v4435_v2  ;;  %v4485_v60 = vcombine.high %v4419_v48, %v4435_v2  ;;  %v4204_v2 = vrot.slane %v4196_v10, %v7753_v20 }
 0x601   : > { %v8100_v59 = vpop.trf.xlu1 }
 0x602   : > { %v8102_v31 = vpop.trf.xlu0 }
 0x605   : > { %v3948_v7 = vpop.trf.xlu1 }
 0x606   : > { %v3980_v30 = vpop.trf.xlu0  ;;  %v4164_v36 = vcombine.low %v3884_v24, %v3948_v7  ;;  %v4165_v5 = vcombine.high %v3884_v24, %v3948_v7  ;;  %v8149_v7 = vrot.slane %v4484_v40, %v7753_v20  ;;  %v4127_v40 = vcombine.high %v4075_v25, %v4107_v32 }
 0x607   : > { %v4180_v12 = vcombine.low %v3916_v11, %v3980_v30  ;;  %v4181_v34 = vcombine.high %v3916_v11, %v3980_v30  ;;  %v4163_v11 = vrot.slane %v4149_v45, %v7660_v18  ;;  %v4404_v32 = vcombine.low %v8050_v43, %v8088_v50 }
 0x608   : > { %v4172_v51 = vrot.slane %v4164_v36, %v7660_v18  ;;  %v4179_v36 = vrot.slane %v4165_v5, %v7660_v18 }
 0x609   : > { %v4188_v46 = vrot.slane %v4180_v12, %v7660_v18  ;;  %v8123_v27 = vpop.trf.xlu1  ;;  %v4195_v30 = vrot.slane %v4181_v34, %v7660_v18  ;;  %v8155_v12 = vrot.slane %v4485_v60, %v7753_v20 }
 0x60a   : > { %v4437_v16 = vcombine.high %v8100_v59, %v8123_v27  ;;  %v8134_v23 = vpop.trf.xlu0 }
 0x60b   : > { %v4228_v48 = vcombine.low %v4172_v51, %v4188_v46  ;;  %v4229_v15 = vcombine.high %v4172_v51, %v4188_v46  ;;  %v4453_v54 = vcombine.high %v8102_v31, %v8134_v23  ;;  %v4076_v46 = vcombine.low %v8112_v21, %v8116_v8 }
 0x60c   : > { %v4451_v44 = vrot.slane %v4437_v16, %v7660_v18  ;;  %v4212_v16 = vcombine.low %v4147_v3, %v4163_v11  ;;  %v4244_v45 = vcombine.low %v4179_v36, %v4195_v30 }
 0x60d   : > { %v4236_v22 = vrot.slane %v4228_v48, %v7753_v20  ;;  %v4467_v24 = vrot.slane %v4453_v54, %v7660_v18  ;;  %v4243_v10 = vrot.slane %v4229_v15, %v7753_v20  ;;  %v4084_v15 = vrot.slane %v4076_v46, %v7753_v20 }
 0x60e   : > { %v4116_v54 = vrot.slane %v4108_v9, %v7753_v20  ;;  %v4252_v25 = vrot.slane %v4244_v45, %v7753_v20 }
 0x60f   : > { %v4261_v28 = vcombine.high %v4204_v2, %v4236_v22  ;;  %v4260_v52 = vcombine.low %v4204_v2, %v4236_v22  ;;  %v4516_v51 = vcombine.low %v4451_v44, %v4467_v24  ;;  %v4517_v41 = vcombine.high %v4451_v44, %v4467_v24 }
 0x610   : > { %v4262_v60 = vcombine.low %v4211_v33, %v4243_v10  ;;  %v4263_v0 = vcombine.high %v4211_v33, %v4243_v10  ;;  %v4220_v22 = vrot.slane %v4212_v16, %v7753_v20  ;;  %v4077_v44 = vcombine.high %v8112_v21, %v8116_v8 }
 0x611   : > { %4573 = vxpose.xlu0.b32.end [2/2] (short) (narrow) %v4261_v28, 8  ;;  %4541 = vxpose.xlu1.b32.end [2/2] (short) (narrow) %v4260_v52, 8  ;;  %v8160_v17 = vrot.slane %v4516_v51, %v7753_v20  ;;  %v8163_v4 = vrot.slane %v4517_v41, %v7753_v20  ;;  %v4128_v24 = vcombine.low %v4084_v15, %v4116_v54 }
 0x612   : > { %v4129_v28 = vcombine.high %v4084_v15, %v4116_v54  ;;  %v4109_v52 = vcombine.high %v4043_v57, %v4059_v63  ;;  %v4213_v33 = vcombine.high %v4147_v3, %v4163_v11  ;;  %v4420_v10 = vcombine.low %v8058_v55, %v8090_v6 }
 0x613   : > { %v4536_v48 = vcombine.low %v8149_v7, %v8160_v17  ;;  %v4537_v2 = vcombine.high %v8149_v7, %v8160_v17  ;;  %v4538_v34 = vcombine.low %v8155_v12, %v8163_v4  ;;  %v4539_v5 = vcombine.high %v8155_v12, %v8163_v4 }
 0x614   : > { %v4245_v51 = vcombine.high %v4179_v36, %v4195_v30  ;;  %v4436_v41 = vcombine.low %v8100_v59, %v8123_v27  ;;  %v4264_v46 = vcombine.low %v4220_v22, %v4252_v25  ;;  %v4265_v9 = vcombine.high %v4220_v22, %v4252_v25 }
 0x615   : > { %4604 = vxpose.xlu0.b32.start [1/2] (short) (narrow) %v4126_v37, 8  ;;  %4636 = vxpose.xlu1.b32.start [1/2] (short) (narrow) %v4127_v40, 8  ;;  %v4452_v21 = vcombine.low %v8102_v31, %v8134_v23  ;;  %v4091_v43 = vrot.slane %v4077_v44, %v7753_v20  ;;  %v4123_v50 = vrot.slane %v4109_v52, %v7753_v20 }
 0x616   : > { %v4428_v8 = vrot.slane %v4420_v10, %v7660_v18  ;;  %v4412_v57 = vrot.slane %v4404_v32, %v7660_v18  ;;  %v4227_v55 = vrot.slane %v4213_v33, %v7753_v20  ;;  %v4444_v59 = vrot.slane %v4436_v41, %v7660_v18 }
 0x617   : > { %v4460_v6 = vrot.slane %v4452_v21, %v7660_v18  ;;  %v4259_v27 = vrot.slane %v4245_v51, %v7753_v20  ;;  %v4130_v63 = vcombine.low %v4091_v43, %v4123_v50  ;;  %v4131_v31 = vcombine.high %v4091_v43, %v4123_v50 }
 0x618   : > { %v4468_v23 = vcombine.low %v4412_v57, %v4428_v8  ;;  %v4469_v45 = vcombine.high %v4412_v57, %v4428_v8 }
 0x619   : > { %4605 = vxpose.xlu0.b32.end [2/2] (short) (narrow) %v4262_v60, 8  ;;  %4637 = vxpose.xlu1.b32.end [2/2] (short) (narrow) %v4263_v0, 8  ;;  %v4500_v3 = vcombine.low %v4444_v59, %v4460_v6  ;;  %v4266_v11 = vcombine.low %v4227_v55, %v4259_v27  ;;  %v4267_v30 = vcombine.high %v4227_v55, %v4259_v27 }
 0x61a   : > { %v4476_v36 = vrot.slane %v4468_v23, %v7753_v20  ;;  %v4501_v60 = vcombine.high %v4444_v59, %v4460_v6  ;;  %v4483_v0 = vrot.slane %v4469_v45, %v7753_v20 }
 0x61b   : > { %v4508_v37 = vrot.slane %v4500_v3, %v7753_v20 }
 0x61c   : > { %v4515_v15 = vrot.slane %v4501_v60, %v7753_v20 }
 0x61d   : > { %4668 = vxpose.xlu0.b32.start [1/2] (short) (narrow) %v4128_v24, 8  ;;  %4700 = vxpose.xlu1.b32.start [1/2] (short) (narrow) %v4129_v28, 8  ;;  %v4533_v40 = vcombine.high %v4476_v36, %v4508_v37  ;;  %v4532_v16 = vcombine.low %v4476_v36, %v4508_v37 }
 0x61e   : > { %v4535_v38 = vcombine.high %v4483_v0, %v4515_v15  ;;  %v4534_v49 = vcombine.low %v4483_v0, %v4515_v15 }
 0x621   : > { %4669 = vxpose.xlu0.b32.end [2/2] (short) (narrow) %v4264_v46, 8  ;;  %4701 = vxpose.xlu1.b32.end [2/2] (short) (narrow) %v4265_v9, 8 }
 0x625   : > { %4732 = vxpose.xlu0.b32.start [1/2] (short) (narrow) %v4130_v63, 8  ;;  %4764 = vxpose.xlu1.b32.start [1/2] (short) (narrow) %v4131_v31, 8 }
 0x629   : > { %4733 = vxpose.xlu0.b32.end [2/2] (short) (narrow) %v4266_v11, 8  ;;  %4765 = vxpose.xlu1.b32.end [2/2] (short) (narrow) %v4267_v30, 8 }
 0x62d   : > { %4796 = vxpose.xlu0.b32.start [1/2] (short) (narrow) %v4396_v53, 8  ;;  %4828 = vxpose.xlu1.b32.start [1/2] (short) (narrow) %v4397_v39, 8 }
 0x631   : > { %4829 = vxpose.xlu1.b32.end [2/2] (short) (narrow) %v4533_v40, 8  ;;  %4797 = vxpose.xlu0.b32.end [2/2] (short) (narrow) %v4532_v16, 8 }
 0x635   : > { %4892 = vxpose.xlu1.b32.start [1/2] (short) (narrow) %v4399_v29, 8  ;;  %4860 = vxpose.xlu0.b32.start [1/2] (short) (narrow) %v4398_v35, 8 }
 0x639   : > { %4893 = vxpose.xlu1.b32.end [2/2] (short) (narrow) %v4535_v38, 8  ;;  %4861 = vxpose.xlu0.b32.end [2/2] (short) (narrow) %v4534_v49, 8 }
 0x689   : > { %v4588_v53 = vpop.trf.xlu0  ;;  %v4556_v39 = vpop.trf.xlu1 }
 0x691   : > { %v4620_v54 = vpop.trf.xlu0  ;;  %v4652_v22 = vpop.trf.xlu1 }
 0x692   : > { %v5052_v25 = vcombine.low %v4556_v39, %v4620_v54  ;;  %v5060_v44 = vcombine.low %v4588_v53, %v4652_v22 }
 0x694   : > { %v5059_v32 = vrot.slane %v5052_v25, %v7660_v18  ;;  %v5067_v24 = vrot.slane %v5060_v44, %v7660_v18 }
 0x696   : > { %v5085_v28 = vcombine.high %v5059_v32, %v5067_v24  ;;  %v5084_v8 = vcombine.low %v5059_v32, %v5067_v24 }
 0x698   : > { %v8220_v31 = vrot.slane %v5084_v8, %v7753_v20  ;;  %v8223_v23 = vrot.slane %v5085_v28, %v7753_v20 }
 0x699   : > { %v3204_v29 = vpop.f32.mrf.mxu1  ;;  %v4684_v62 = vpop.trf.xlu0 }
 0x69a   : > { %v3424_v52 = vsel %vm3135_vm4, %v3204_v29, -inf  ;;  %v4716_v35 = vpop.trf.xlu1 }
 0x69b   : > { %v6524_v19 = vpop.f32.mrf.mxu1  ;;  %3425 = vmax.xlane.f32.xlu0 %v3424_v52 }
 0x69d   : > { %v3276_v33 = vpop.f32.mrf.mxu1 }
 0x69e   : > { %v3427_v10 = vsel %vm3135_vm4, %v3276_v33, -inf }
 0x69f   : > { %v6531_v51 = vpop.f32.mrf.mxu1  ;;  %3428 = vmax.xlane.f32.xlu1 %v3427_v10 }
 0x6a1   : > { %v3348_v41 = vpop.f32.mrf.mxu1  ;;  %v4748_v46 = vpop.trf.xlu0 }
 0x6a2   : > { %v3430_v9 = vsel %vm3135_vm4, %v3348_v41, -inf  ;;  %v5068_v21 = vcombine.low %v4684_v62, %v4748_v46  ;;  %v4780_v43 = vpop.trf.xlu1 }
 0x6a3   : > { %v6538_v50 = vpop.f32.mrf.mxu1  ;;  %3431 = vmax.xlane.f32.xlu1 %v3430_v9  ;;  %v5076_v57 = vcombine.low %v4716_v35, %v4780_v43 }
 0x6a4   : > { %v5075_v55 = vrot.slane %v5068_v21, %v7660_v18 }
 0x6a5   : > { %v3420_v6 = vpop.f32.mrf.mxu1  ;;  %v5083_v59 = vrot.slane %v5076_v57, %v7660_v18 }
 0x6a6   : > { %v3433_v27 = vsel %vm3135_vm4, %v3420_v6, -inf }
 0x6a7   : > { %v6545_v63 = vpop.f32.mrf.mxu1  ;;  %3434 = vmax.xlane.f32.xlu0 %v3433_v27  ;;  %v5100_v3 = vcombine.low %v5075_v55, %v5083_v59  ;;  %v5101_v11 = vcombine.high %v5075_v55, %v5083_v59 }
 0x6a9   : > { %v8226_v30 = vrot.slane %v5100_v3, %v7753_v20  ;;  %v8229_v36 = vrot.slane %v5101_v11, %v7753_v20  ;;  %v4812_v37 = vpop.trf.xlu0  ;;  %v4844_v16 = vpop.trf.xlu1 }
 0x6ab   : > { %v5116_v40 = vcombine.low %v8220_v31, %v8226_v30  ;;  %v5117_v45 = vcombine.high %v8220_v31, %v8226_v30  ;;  %v5118_v60 = vcombine.low %v8223_v23, %v8229_v36  ;;  %v5119_v0 = vcombine.high %v8223_v23, %v8229_v36  ;;  %v5812_v23 = vld [vmem:[%s8616_s9 + $0x38] sm:$0xff]  ;;  %v5811_v36 = vld [vmem:[%s8616_s9 + $0x30] sm:$0xff] }
 0x6ac   : > { %6567 = vmatpush3.msra.mxu0 %v5812_v23 }
 0x6ad   : > { %6548 = vmatprep.mubr.msk.f32.mxu1 %vm3135_vm4, %v5116_v40  ;;  %6568 = vmatprep.subr.mxu0 %v8613_v56 }
 0x6ae   : > { %6569 = vmatpush3.msra.mxu0 %v5811_v36 }
 0x6af   : > { %6570 = vmatprep.subr.mxu0 %v8613_v56 }
 0x6b1   : > { %v4876_v15 = vpop.trf.xlu0  ;;  %v4908_v38 = vpop.trf.xlu1 }
 0x6b2   : > { %v5120_v49 = vcombine.low %v4812_v37, %v4876_v15  ;;  %v5128_v53 = vcombine.low %v4844_v16, %v4908_v38 }
 0x6b4   : > { %v8241_v39 = vrot.slane %v5120_v49, %v7660_v18  ;;  %v8244_v54 = vrot.slane %v5128_v53, %v7660_v18 }
 0x6b6   : > { %v5152_v22 = vcombine.low %v8241_v39, %v8244_v54  ;;  %v5153_v25 = vcombine.high %v8241_v39, %v8244_v54 }
 0x6b8   : > { %v5167_v15 = vrot.slane %v5153_v25, %v7753_v20 }
 0x6d4   : > { %4924 = vxpose.xlu0.b32.start [1/2] (short) (narrow) %v4400_v47, 8 }
 0x6d6   : > { %4956 = vxpose.xlu1.b32.start [1/2] (short) (narrow) %v4401_v14, 8 }
 0x6d8   : > { %4925 = vxpose.xlu0.b32.end [2/2] (short) (narrow) %v4536_v48, 8 }
 0x6da   : > { %4957 = vxpose.xlu1.b32.end [2/2] (short) (narrow) %v4537_v2, 8 }
 0x724   : > { %v3426_v44 = vpop.xlane.xlu0 %3425 }
 0x725   : > { %v3436_v32 = vsub.f32 %v3204_v29, %v3426_v44  ;;  %v5809_v44 = vld [vmem:[%s8616_s9 + $0x20] sm:$0xff] }
 0x727   : > { %v3440_v24 = vmul.f32 1.442695, %v3436_v32  ;;  %v5808_v32 = vld [vmem:[%s8616_s9 + $0x18] sm:$0xff] }
 0x728   : > { %v3429_v28 = vpop.xlane.xlu1 %3428 }
 0x729   : > { %6815 = vpow2.f32 %v3440_v24  ;;  %v3437_v52 = vsub.f32 %v3276_v33, %v3429_v28 }
 0x72b   : > { %v3442_v19 = vmul.f32 1.442695, %v3437_v52 }
 0x72c   : > { %v3432_v47 = vpop.xlane.xlu1 %3431 }
 0x72d   : > { %6817 = vpow2.f32 %v3442_v19  ;;  %v3438_v62 = vsub.f32 %v3348_v41, %v3432_v47 }
 0x72f   : > { %v3444_v61 = vmul.f32 1.442695, %v3438_v62 }
 0x730   : > { %v3435_v1 = vpop.xlane.xlu0 %3434 }
 0x731   : > { %6819 = vpow2.f32 %v3444_v61  ;;  %v3439_v14 = vsub.f32 %v3420_v6, %v3435_v1  ;;  %v5160_v6 = vrot.slane %v5152_v22, %v7753_v20 }
 0x733   : > { %v3446_v35 = vmul.f32 1.442695, %v3439_v14 }
 0x735   : > { %6821 = vpow2.f32 %v3446_v35 }
 0x736   : > { %v6816_v48 = vpop.eup %6815 }
 0x737   : > { %v3448_v7 = vsel %vm3135_vm4, %v6816_v48, 0.0 }
 0x738   : > { %3449 = vadd.xlane.f32.xlu1 %v3448_v7 }
 0x73a   : > { %v6818_v17 = vpop.eup %6817 }
 0x73b   : > { %v3451_v2 = vsel %vm3135_vm4, %v6818_v17, 0.0 }
 0x73c   : > { %3452 = vadd.xlane.f32.xlu1 %v3451_v2 }
 0x73e   : > { %v6820_v29 = vpop.eup %6819 }
 0x73f   : > { %v3454_v33 = vsel %vm3135_vm4, %v6820_v29, 0.0 }
 0x740   : > { %3455 = vadd.xlane.f32.xlu0 %v3454_v33 }
 0x742   : > { %v6822_v10 = vpop.eup %6821 }
 0x743   : > { %v3457_v51 = vsel %vm3135_vm4, %v6822_v10, 0.0 }
 0x744   : > { %3458 = vadd.xlane.f32.xlu1 %v3457_v51  ;;  %v5806_v51 = vld [vmem:[%s8616_s9 + $0x8] sm:$0xff] }
 0x750   : > { %v4940_v42 = vpop.trf.xlu0 }
 0x752   : > { %v4972_v41 = vpop.trf.xlu1 }
 0x76d   : > { %4988 = vxpose.xlu0.b32.start [1/2] (short) (narrow) %v4402_v13, 8 }
 0x771   : > { %4989 = vxpose.xlu0.b32.end [2/2] (short) (narrow) %v4538_v34, 8 }
 0x777   : > { %5020 = vxpose.xlu1.b32.start [1/2] (short) (narrow) %v4403_v58, 8 }
 0x77b   : > { %5021 = vxpose.xlu1.b32.end [2/2] (short) (narrow) %v4539_v5, 8 }
 0x7c1   : > { %v3450_v46 = vpop.xlane.xlu1 %3449 }
 0x7c2   : > { %6823 = vrcp.f32 %v3450_v46 }
 0x7c5   : > { %v3453_v9 = vpop.xlane.xlu1 %3452 }
 0x7c6   : > { %6825 = vrcp.f32 %v3453_v9 }
 0x7c9   : > { %v3456_v26 = vpop.xlane.xlu0 %3455 }
 0x7ca   : > { %6827 = vrcp.f32 %v3456_v26  ;;  %v5805_v26 = vld [vmem:[%s8616_s9] sm:$0xff] }
 0x7cd   : > { %v3459_v58 = vpop.xlane.xlu1 %3458 }
 0x7ce   : > { %6829 = vrcp.f32 %v3459_v58 }
 0x7cf   : > { %v6824_v21 = vpop.eup %6823 }
 0x7d0   : > { %v3464_v43 = vmul.f32 %v6824_v21, %v6816_v48 }
 0x7d2   : > { %6546 = vmatprep.subr.msk.mxu1 %vm3135_vm4, %v3464_v43 }
 0x7d3   : > { %v6826_v13 = vpop.eup %6825  ;;  %6547 = vmatpush3.xpose.msk.msra.mxu1 %vm3135_vm4, %v3464_v43 }
 0x7d4   : > { %v3465_v34 = vmul.f32 %v6826_v13, %v6818_v17 }
 0x7d6   : > { %6551 = vmatprep.subr.msk.mxu1 %vm3135_vm4, %v3465_v34 }
 0x7d7   : > { %v6828_v27 = vpop.eup %6827 }
 0x7d8   : > { %v3466_v11 = vmul.f32 %v6828_v27, %v6820_v29 }
 0x7db   : > { %v6830_v37 = vpop.eup %6829 }
 0x7dc   : > { %v3467_v38 = vmul.f32 %v6830_v37, %v6822_v10  ;;  %v5807_v10 = vld [vmem:[%s8616_s9 + $0x10] sm:$0xff] }
 0x7e9   : > { %v5004_v12 = vpop.trf.xlu0 }
 0x7ea   : > { %v5136_v4 = vcombine.low %v4940_v42, %v5004_v12 }
 0x7ec   : > { %v5143_v8 = vrot.slane %v5136_v4, %v7660_v18 }
 0x7f3   : > { %v5036_v5 = vpop.trf.xlu1 }
 0x7f4   : > { %v5144_v50 = vcombine.low %v4972_v41, %v5036_v5 }
 0x7f6   : > { %v5151_v57 = vrot.slane %v5144_v50, %v7660_v18 }
 0x7f8   : > { %v5168_v55 = vcombine.low %v5143_v8, %v5151_v57  ;;  %v5169_v63 = vcombine.high %v5143_v8, %v5151_v57 }
 0x7fa   : > { %v5176_v59 = vrot.slane %v5168_v55, %v7753_v20  ;;  %v5183_v40 = vrot.slane %v5169_v63, %v7753_v20 }
 0x7fc   : > { %v5184_v3 = vcombine.low %v5160_v6, %v5176_v59  ;;  %v5185_v16 = vcombine.high %v5160_v6, %v5176_v59  ;;  %v5186_v31 = vcombine.low %v5167_v15, %v5183_v40  ;;  %v5187_v30 = vcombine.high %v5167_v15, %v5183_v40 }
 0x7fe   : > { %6549 = vmatmul.mubr.msk.f32.vlgmr.msra.gmra.mxu1 %vm3135_vm4, %v5184_v3 }
 0x7ff   : > { %6552 = vmatpush3.xpose.msk.msra.mxu1 %vm3135_vm4, %v3465_v34  ;;  %6553 = vmatprep.mubr.msk.f32.mxu1 %vm3135_vm4, %v5117_v45 }
 0x800   : > { %6556 = vmatprep.subr.msk.mxu1 %vm3135_vm4, %v3466_v11 }
 0x802   : > { %6554 = vmatmul.mubr.msk.f32.vlgmr.msra.gmra.mxu1 %vm3135_vm4, %v5185_v16 }
 0x803   : > { %6557 = vmatpush3.xpose.msk.msra.mxu1 %vm3135_vm4, %v3466_v11  ;;  %6558 = vmatprep.mubr.msk.f32.mxu1 %vm3135_vm4, %v5118_v60 }
 0x804   : > { %6561 = vmatprep.subr.msk.mxu1 %vm3135_vm4, %v3467_v38 }
 0x806   : > { %6559 = vmatmul.mubr.msk.f32.vlgmr.msra.gmra.mxu1 %vm3135_vm4, %v5186_v31  ;;  %v6359_v31 = vld [vmem:[%s8617_s21] ss:$0 sm:$0xff] }
 0x807   : > { %6562 = vmatpush3.xpose.msk.msra.mxu1 %vm3135_vm4, %v3467_v38  ;;  %6563 = vmatprep.mubr.msk.f32.mxu1 %vm3135_vm4, %v5119_v0  ;;  %v5810_v0 = vld [vmem:[%s8616_s9 + $0x28] sm:$0xff] }
 0x808   : > { %6571 = vmatpush3.msra.mxu0 %v5810_v0 }
 0x809   : > { %6572 = vmatprep.subr.mxu0 %v8613_v56 }
 0x80a   : > { %6564 = vmatmul.mubr.msk.f32.vlgmr.msra.gmra.mxu1 %vm3135_vm4, %v5187_v30  ;;  %6573 = vmatpush3.msra.mxu0 %v5809_v44 }
 0x80b   : > { %6574 = vmatprep.subr.mxu0 %v8613_v56 }
 0x80c   : > { %6575 = vmatpush3.msra.mxu0 %v5808_v32 }
 0x80d   : > { %6576 = vmatprep.subr.mxu0 %v8613_v56 }
 0x80e   : > { %6577 = vmatpush3.msra.mxu0 %v5807_v10 }
 0x80f   : > { %6578 = vmatprep.subr.mxu0 %v8613_v56 }
 0x810   : > { %6579 = vmatpush3.msra.mxu0 %v5806_v51 }
 0x811   : > { %6580 = vmatprep.subr.mxu0 %v8613_v56 }
 0x812   : > { %6581 = vmatpush3.msra.mxu0 %v5805_v26 }
 0x8be   : > { %v6550_v45 = vpop.f32.mrf.mxu1 }
 0x8c0   : > { %v5263_v49 = vpop.f32.mrf.mxu1 }
 0x8c1   : > { %5524 = vxpose.xlu0.b32.start [1/2] (short) (narrow) %v5263_v49, 8 }
 0x8c2   : > { %v6555_v53 = vpop.f32.mrf.mxu1 }
 0x8c4   : > { %v5347_v60 = vpop.f32.mrf.mxu1 }
 0x8c5   : > { %5525 = vxpose.xlu0.b32.end [2/2] (short) (narrow) %v6550_v45, 8  ;;  %5556 = vxpose.xlu1.b32.start [1/2] (short) (narrow) %v5347_v60, 8 }
 0x8c6   : > { %v6560_v39 = vpop.f32.mrf.mxu1 }
 0x8c8   : > { %v5431_v54 = vpop.f32.mrf.mxu1 }
 0x8c9   : > { %5557 = vxpose.xlu1.b32.end [2/2] (short) (narrow) %v6555_v53, 8  ;;  %5588 = vxpose.xlu0.b32.start [1/2] (short) (narrow) %v5431_v54, 8  ;;  %v6833_v53 = vld [vmem:[%s7597_s4] sm:$0xff] }
 0x8ca   : > { %v6565_v22 = vpop.f32.mrf.mxu1 }
 0x8cc   : > { %v5515_v25 = vpop.f32.mrf.mxu1 }
 0x8cd   : > { %5589 = vxpose.xlu0.b32.end [2/2] (short) (narrow) %v6560_v39, 8  ;;  %5620 = vxpose.xlu1.b32.start [1/2] (short) (narrow) %v5515_v25, 8 }
 0x8d1   : > { %5621 = vxpose.xlu1.b32.end [2/2] (short) (narrow) %v6565_v22, 8 }
 0x93d   : > { %v5540_v24 = vpop.trf.xlu0 }
 0x941   : > { %v5572_v28 = vpop.trf.xlu1 }
 0x945   : > { %v5604_v52 = vpop.trf.xlu0 }
 0x946   : > { %v5652_v19 = vcombine.low %v5540_v24, %v5604_v52  ;;  %v5653_v47 = vcombine.high %v5540_v24, %v5604_v52 }
 0x948   : > { %v5660_v14 = vrot.slane %v5652_v19, %v7660_v18  ;;  %v5667_v35 = vrot.slane %v5653_v47, %v7660_v18 }
 0x949   : > { %v5636_v62 = vpop.trf.xlu1 }
 0x94a   : > { %v5668_v61 = vcombine.low %v5572_v28, %v5636_v62  ;;  %v5669_v1 = vcombine.high %v5572_v28, %v5636_v62  ;;  %v6361_v28 = vld [vmem:[%s8618_s3] ss:$0 sm:$0xff] }
 0x94c   : > { %v5676_v48 = vrot.slane %v5668_v61, %v7660_v18  ;;  %v5683_v7 = vrot.slane %v5669_v1, %v7660_v18 }
 0x94e   : > { %v5684_v17 = vcombine.low %v5660_v14, %v5676_v48  ;;  %v5685_v2 = vcombine.high %v5660_v14, %v5676_v48  ;;  %v5700_v29 = vcombine.low %v5667_v35, %v5683_v7  ;;  %v5701_v33 = vcombine.high %v5667_v35, %v5683_v7 }
 0x950   : > { %v5692_v41 = vrot.slane %v5684_v17, %v7753_v20  ;;  %v5699_v46 = vrot.slane %v5685_v2, %v7753_v20  ;;  %v5708_v9 = vrot.slane %v5700_v29, %v7753_v20  ;;  %v5715_v21 = vrot.slane %v5701_v33, %v7753_v20 }
 0x952   : > { %v5720_v43 = vcombine.low %v5692_v41, %v5699_v46  ;;  %v6357_v13 = vcombine.high %v5692_v41, %v5699_v46  ;;  %v5736_v34 = vcombine.low %v5708_v9, %v5715_v21  ;;  %v6358_v42 = vcombine.high %v5708_v9, %v5715_v21 }
 0x954   : > { %v5727_v58 = vrot.slane %v5720_v43, %v7660_v18  ;;  %v5735_v12 = vrot.slane %v6357_v13, %v7660_v18  ;;  %v5743_v4 = vrot.slane %v5736_v34, %v7660_v18  ;;  %v5751_v5 = vrot.slane %v6358_v42, %v7660_v18 }
 0x956   : > { %v5753_v50 = vcombine.high %v5727_v58, %v5735_v12  ;;  %v5769_v8 = vcombine.high %v5743_v4, %v5751_v5  ;;  %v5752_v57 = vcombine.low %v5727_v58, %v5735_v12  ;;  %v5768_v55 = vcombine.low %v5743_v4, %v5751_v5 }
 0x958   : > { %v5767_v6 = vrot.slane %v5753_v50, %v7753_v20  ;;  %v5783_v56 = vrot.slane %v5769_v8, %v7753_v20  ;;  %v5760_v59 = vrot.slane %v5752_v57, %v7753_v20  ;;  %v5776_v27 = vrot.slane %v5768_v55, %v7753_v20 }
 0x95a   : > { %v5786_v63 = vcombine.low %v5767_v6, %v5783_v56  ;;  %v5785_v3 = vcombine.high %v5760_v59, %v5776_v27  ;;  %v5784_v11 = vcombine.low %v5760_v59, %v5776_v27  ;;  %v5787_v18 = vcombine.high %v5767_v6, %v5783_v56 }
 0x95c   : > { %5793 = vrot.lane.b32.xlu1 %v5786_v63, %s7090_s15  ;;  %5789 = vrot.lane.b32.xlu0 %v5785_v3, %s7091_s23 }
 0x960   : > { %5797 = vrot.lane.b32.xlu1 %v5787_v18, %s7092_s10  ;;  %s8619_s10 = sld [smem:[#allocation41_spill]] }
 0x966   : > { %v6362_v19 = vld [vmem:[%s8619_s10] ss:$0 sm:$0xff] }
 0x9ce   : > { %v5794_v37 = vpop.permute.xlu1 %5793  ;;  %v5790_v40 = vpop.permute.xlu0 %5789 }
 0x9cf   : > { %v5800_v16 = vsel %vm3135_vm4, %v5784_v11, %v5790_v40 }
 0x9d0   : > { %v5802_v20 = vsel %vm5801_vm5, %v5800_v16, %v5794_v37 }
 0x9d2   : > { %v5798_v15 = vpop.permute.xlu1 %5797 }
 0x9d3   : > { %v5804_v38 = vsel %vm5803_vm6, %v5802_v20, %v5798_v15 }
 0x9d4   : > { %6583 = vmatmul.mubr.msk.f32.vlgmr.msra.gmra.mxu0 %vm1291_vm2, %v5804_v38 }
 0xa94   : > { %v5889_v30 = vpop.f32.mrf.mxu0 }
 0xa95   : > { %v5890_v45 = vadd.f32 %v6359_v31, %v5889_v30 }
 0xa96   : > { %v6584_v49 = vpop.f32.mrf.mxu0 }
 0xa97   : > { %v5893_v60 = vadd.f32 %v6833_v53, %v5890_v45 }
 0xa99   : > { %5895 = vst.msk [vmem:[%s5894_s24] sm:$0xff] %vm1291_vm2, %v5893_v60  ;;  %v5898_v39 = vsel %vm1291_vm2, %v5893_v60, 0.0 }
 0xa9a   : > { %5899 = vadd.xlane.f32.xlu1 %v5898_v39 }
 0xb23   : > { %v5900_v54 = vpop.xlane.xlu1 %5899 }
 0xb24   : > { %v5901_v22 = vmul.f32 0.015625, %v5900_v54 }
 0xb26   : > { %v5902_v25 = vsub.f32 %v5893_v60, %v5901_v22 }
 0xb28   : > { %v5903_v23 = vmul.f32 %v5902_v25, %v5902_v25 }
 0xb2a   : > { %v5904_v36 = vsel %vm1291_vm2, %v5903_v23, 0.0 }
 0xb2b   : > { %5905 = vadd.xlane.f32.xlu0 %v5904_v36 }
 0xbb4   : > { %v5906_v0 = vpop.xlane.xlu0 %5905 }
 0xbb5   : > { %v5907_v44 = vmul.f32 0.015625, %v5906_v0 }
 0xbb7   : > { %v5908_v32 = vadd.f32 1e-05, %v5907_v44 }
 0xbb9   : > { %6831 = vrsqrt.f32 %v5908_v32 }
 0xbc6   : > { %v6832_v24 = vpop.eup %6831 }
 0xbc7   : > { %v5910_v52 = vmul.f32 %v6832_v24, %v5902_v25 }
 0xbc9   : > { %v5917_v47 = vmul.f32 %v6361_v28, %v5910_v52 }
 0xbcb   : > { %v5924_v62 = vadd.f32 %v6362_v19, %v5917_v47 }
 0xbcd   : > { %5926 = vst.msk [vmem:[%s5925_s6] sm:$0xff] %vm1291_vm2, %v5924_v62 }
 0xbce PF: > { %v5938_v61 = vld [vmem:[%s7418_s5 + $0x38] sm:$0xff]  ;;  %v7093_v1 = vmov 0.0   ;;  %v5937_v14 = vld [vmem:[%s7418_s5 + $0x30] sm:$0xff]  ;;  %vm7094_vm7 = vmmov 0   ;;  %v5936_v35 = vld [vmem:[%s7418_s5 + $0x28] sm:$0xff]  ;;  %s5929_s11 = scalar_lea.vmem [#allocation5], %s7402_s0 }
 0xbcf   : > { %6585 = vmatprep.subr.mxu0 %v7093_v1  ;;  %6601 = vmatprep.mubr.msk.f32.mxu0 %vm7094_vm7, %v7093_v1  ;;  %v6042_v48 = vld [vmem:[%s7416_s16 + $0x78] sm:$0xff]  ;;  %v6041_v7 = vld [vmem:[%s7416_s16 + $0x70] sm:$0xff]  ;;  %v6040_v2 = vld [vmem:[%s7416_s16 + $0x68] sm:$0xff]  ;;  %vm5946_vm8 = vcmask 523264   ;;  %p6365_p12 = scmp.ne.s32.totalorder %s7050_s30, 1 }
 0xbd0   : > { %6586 = vmatpush3.msra.mxu0 %v5938_v61  ;;  %6604 = vmatprep.subr.mxu1 %v7093_v1  ;;  %v5935_v17 = vld [vmem:[%s7418_s5 + $0x20] sm:$0xff]  ;;  %v5934_v29 = vld [vmem:[%s7418_s5 + $0x18] sm:$0xff]  ;;  %v6039_v33 = vld [vmem:[%s7416_s16 + $0x60] sm:$0xff]  ;;  %s6119_s1 = scalar_lea.vmem (!%p6365_p12), [#allocation4], %s7402_s0  ;;  %s8621_s8 = sld [smem:[#allocation44_spill]] (!%p6365_p12) }
 0xbd1   : > { %6587 = vmatprep.subr.mxu0 %v7093_v1  ;;  %6636 = vmatprep.mubr.msk.f32.mxu1 %vm7094_vm7, %v7093_v1  ;;  %v5933_v10 = vld [vmem:[%s7418_s5 + $0x10] sm:$0xff]  ;;  %v5932_v51 = vld [vmem:[%s7418_s5 + $0x8] sm:$0xff]  ;;  %v5931_v41 = vld [vmem:[%s7418_s5] sm:$0xff]  ;;  %s8622_s3 = scalar_lea.vmem (!%p6365_p12), [#allocation14], %s7397_s26 }
 0xbd2   : > { %6588 = vmatpush3.msra.mxu0 %v5937_v14  ;;  %6605 = vmatpush3.msra.mxu1 %v6042_v48  ;;  %v6038_v9 = vld [vmem:[%s7416_s16 + $0x58] sm:$0xff]  ;;  %v6037_v21 = vld [vmem:[%s7416_s16 + $0x50] sm:$0xff]  ;;  %v6036_v43 = vld [vmem:[%s7416_s16 + $0x48] sm:$0xff] }
 0xbd3   : > { %6589 = vmatprep.subr.mxu0 %v7093_v1  ;;  %6606 = vmatprep.subr.mxu1 %v7093_v1  ;;  %v6035_v13 = vld [vmem:[%s7416_s16 + $0x40] sm:$0xff]  ;;  %v6034_v34 = vld [vmem:[%s7416_s16 + $0x38] sm:$0xff]  ;;  %v6033_v42 = vld [vmem:[%s7416_s16 + $0x30] sm:$0xff] }
 0xbd4   : > { %6590 = vmatpush3.msra.mxu0 %v5936_v35  ;;  %6607 = vmatpush3.msra.mxu1 %v6041_v7  ;;  %v5930_v46 = vld [vmem:[%s5929_s11] sm:$0xff]  ;;  %v6032_v26 = vld [vmem:[%s7416_s16 + $0x28] sm:$0xff]  ;;  %v6030_v12 = vld [vmem:[%s7416_s16 + $0x18] sm:$0xff] }
 0xbd5   : > { %6591 = vmatprep.subr.mxu0 %v7093_v1  ;;  %6608 = vmatprep.subr.mxu1 %v7093_v1  ;;  %v6031_v58 = vld [vmem:[%s7416_s16 + $0x20] sm:$0xff]  ;;  %v6029_v4 = vld [vmem:[%s7416_s16 + $0x10] sm:$0xff]  ;;  %v6028_v5 = vld [vmem:[%s7416_s16 + $0x8] sm:$0xff] }
 0xbd6   : > { %6592 = vmatpush3.msra.mxu0 %v5935_v17  ;;  %6609 = vmatpush3.msra.mxu1 %v6040_v2  ;;  %v6027_v50 = vld [vmem:[%s7416_s16] sm:$0xff]  ;;  %s6025_s16 = scalar_lea.vmem [#allocation6], %s7402_s0 }
 0xbd7   : > { %6593 = vmatprep.subr.mxu0 %v7093_v1  ;;  %6610 = vmatprep.subr.mxu1 %v7093_v1  ;;  %v6363_v8 = vld [vmem:[%s698_s17] ss:$0 sm:$0xff] }
 0xbd8   : > { %6594 = vmatpush3.msra.mxu0 %v5934_v29  ;;  %6611 = vmatpush3.msra.mxu1 %v6039_v33  ;;  %v6026_v11 = vld [vmem:[%s6025_s16] sm:$0xff] }
 0xbd9   : > { %6595 = vmatprep.subr.mxu0 %v7093_v1  ;;  %6612 = vmatprep.subr.mxu1 %v7093_v1 }
 0xbda   : > { %6596 = vmatpush3.msra.mxu0 %v5933_v10  ;;  %6613 = vmatpush3.msra.mxu1 %v6038_v9 }
 0xbdb   : > { %6597 = vmatprep.subr.mxu0 %v7093_v1  ;;  %6614 = vmatprep.subr.mxu1 %v7093_v1 }
 0xbdc   : > { %6598 = vmatpush3.msra.mxu0 %v5932_v51  ;;  %6615 = vmatpush3.msra.mxu1 %v6037_v21 }
 0xbdd   : > { %6599 = vmatprep.subr.mxu0 %v7093_v1  ;;  %6616 = vmatprep.subr.mxu1 %v7093_v1 }
 0xbde   : > { %6600 = vmatpush3.msra.mxu0 %v5931_v41  ;;  %6617 = vmatpush3.msra.mxu1 %v6036_v43 }
 0xbdf   : > { %6602 = vmatmul.mubr.msk.f32.vlgmr.msra.gmra.mxu0 %vm5946_vm8, %v5930_v46  ;;  %6618 = vmatprep.subr.mxu1 %v7093_v1 }
 0xbe0   : > { %6619 = vmatpush3.msra.mxu1 %v6035_v13 }
 0xbe1   : > { %6620 = vmatprep.subr.mxu1 %v7093_v1 }
 0xbe2   : > { %6621 = vmatpush3.msra.mxu1 %v6034_v34 }
 0xbe3   : > { %6622 = vmatprep.subr.mxu1 %v7093_v1 }
 0xbe4   : > { %6623 = vmatpush3.msra.mxu1 %v6033_v42 }
 0xbe5   : > { %6624 = vmatprep.subr.mxu1 %v7093_v1 }
 0xbe6   : > { %6625 = vmatpush3.msra.mxu1 %v6032_v26 }
 0xbe7   : > { %6626 = vmatprep.subr.mxu1 %v7093_v1 }
 0xbe8   : > { %6627 = vmatpush3.msra.mxu1 %v6031_v58 }
 0xbe9   : > { %6628 = vmatprep.subr.mxu1 %v7093_v1 }
 0xbea   : > { %6629 = vmatpush3.msra.mxu1 %v6030_v12 }
 0xbeb   : > { %6630 = vmatprep.subr.mxu1 %v7093_v1 }
 0xbec   : > { %6631 = vmatpush3.msra.mxu1 %v6029_v4 }
 0xbed   : > { %6632 = vmatprep.subr.mxu1 %v7093_v1 }
 0xbee   : > { %6633 = vmatpush3.msra.mxu1 %v6028_v5 }
 0xbef   : > { %6634 = vmatprep.subr.mxu1 %v7093_v1 }
 0xbf0   : > { %6635 = vmatpush3.msra.mxu1 %v6027_v50 }
 0xc9f   : > { %v6016_v57 = vpop.f32.mrf.mxu0 }
 0xca0   : > { %v6017_v55 = vadd.f32 %v6363_v8, %v6016_v57 }
 0xca1   : > { %v6603_v6 = vpop.f32.mrf.mxu0 }
 0xca2   : > { %v6021_v56 = vmul.f32 0.70710677, %v6017_v55  ;;  %v6020_v27 = vmul.f32 0.5, %v6017_v55 }
 0xca4   : > { %6834 = verf.f32 %v6021_v56 }
 0xcb1   : > { %v6835_v59 = vpop.eup %6834 }
 0xcb2   : > { %v6023_v63 = vadd.f32 1.0, %v6835_v59 }
 0xcb4   : > { %v6024_v3 = vmul.f32 %v6023_v63, %v6020_v27 }
 0xcb6   : > { %6637 = vmatmul.mubr.f32.vlgmr.msra.gmra.mxu1 %v6024_v3 }
 0xd75   : > { %6118 = sbr.rel (%p6365_p12) target bundleno = 3462 (0xd86), region = 146 }
 0xd76   : > { %v6109_v18 = vpop.f32.mrf.mxu1 }
 0xd77   : > { %v6113_v37 = vadd.f32 %v6109_v18, %v6026_v11 }
 0xd78   : > { %v6638_v40 = vpop.f32.mrf.mxu1 }
 0xd79   : > { %6114 = vst.msk [vmem:[%s6025_s16] sm:$0xff] %vm5946_vm8, %v6113_v37 }
 0xd7a   : > { %v6120_v15 = vld [vmem:[%s6119_s1] sm:$0xff] }
 0xd7b   : > { %v6366_v20 = vld [vmem:[%s8621_s8] ss:$0 sm:$0xff] }
 0xd80   : > { %v6121_v16 = vld [vmem:[%s6025_s16] sm:$0xff] }
 0xd81   : > { %v6122_v38 = vadd.f32 %v6121_v16, %v6120_v15 }
 0xd83   : > { %v6130_v31 = vadd.f32 %v6366_v20, %v6122_v38 }
 0xd85   : > { %6131 = vst.msk [vmem:[%s8622_s3] sm:$0xff] %vm5946_vm8, %v6130_v31 }
 0xd86 PF: > { %s8623_s15 = sld [smem:[#allocation20_spill]]  ;;  %s8625_s6 = scalar_lea.vmem [#allocation14], %s7397_s26 }
 0xd87   : > { %s8624_s30 = sld [smem:[#allocation28_spill]]  ;;  %s6148_s0 = sshll.u32 %s8625_s6, 4  ;;  %s6149_s0 = int_to_ptr.vmem [resolvable:$true] %s6148_s0 }
 0xd88   : > { %s8626_s24 = sld [smem:[#allocation45_spill]]  ;;  %s8628_s17 = sand.u32 1, %s7018_s22  }
 0xd89   : > { %s6133_s4 = scalar_lea.sflag [#allocation9], %s8628_s17  ;;  %s6914_s8 = scalar_lea.vmem %s6149_s0, 128 }
 0xd8a   : > { %p6915_p0 = scmp.ne.s32.totalorder %s6149_s0, %s6914_s8  ;;  %s7095_s3 = smov [#allocation14]  }
 0xd8b   : > { %s6918_s2 = sshll.u32 %s7095_s3, 4  ;;  %s6919_s2 = int_to_ptr.vmem [resolvable:$false] %s6918_s2 }
 0xd8c   : > { %s6368_s23 = sshll.u32 %s8623_s15, 1  ;;  %s6920_s15 = scalar_lea.vmem %s6919_s2, 256 }
 0xd8d   : > { %s6144_s10 = sadd.s32 %s7046_s29, %s6368_s23  ;;  %p8629_p1 = scmp.ne.s32.totalorder %s8624_s30, 0 }
 0xd8e   : > { %s6369_s11 = sshll.u32 %s6144_s10, 7  ;;  %s8627_s16 = smov %s8626_s24 }
 0xd8f   : > { %s6146_s1 = scalar_lea.hbm %s8626_s24, %s6369_s11  ;;  %p6916_p2 = pnand %p6915_p0, %p8629_p1 }
 0xd90   : > { %p6921_p6 = scmp.lt.s32.totalorder %s6149_s0, %s6919_s2  ;;  %p6922_p13 = scmp.lt.s32.totalorder %s6920_s15, %s6914_s8 }
 0xd91   : > { %p6917_p10 = pneg %p6916_p2 }
 0xd92   : > { %p6923_p3 = por %p6922_p13, %p6921_p6 }
 0xd94   : > { %p6924_p4 = pnand %p6923_p3, %p6917_p10 }
 0xd96   : > { %6927 = shalt.err (!%p6924_p4)
}
 0xd97   : > { %s6928_s29 = scalar_lea.hbm %s6146_s1, 128  ;;  %s6932_s10 = scalar_lea.hbm %s8627_s16, 512 }
 0xd98   : > { %p6929_p9 = scmp.ne.s32.totalorder %s6146_s1, %s6928_s29  ;;  %p6933_p11 = scmp.lt.s32.totalorder %s6146_s1, %s8627_s16 }
 0xd99   : > { %p6934_p8 = scmp.lt.s32.totalorder %s6932_s10, %s6928_s29 }
 0xd9a   : > { %p6930_p7 = pnand %p6929_p9, %p8629_p1 }
 0xd9b   : > { %p6935_p12 = por %p6934_p8, %p6933_p11 }
 0xd9c   : > { %p6931_p5 = pneg %p6930_p7 }
 0xd9e   : > { %p6936_p0 = pnand %p6935_p12, %p6931_p5 }
 0xda0   : > { %6939 = shalt.err (!%p6936_p0)
}
 0xda1   : > { %6649 = dma.vmem_to_hbm [thread:$0]  (%p8629_p1), %s6149_s0, 128, %s6146_s1, %s6133_s4  }
 0xda2 PF: > { %s8630_s2 = sld [smem:[#allocation18_spill]]  ;;  %p6666_p2 = scmp.ge.s32.totalorder %s7070_s20, 2 }
 0xda3   : > { %s8631_s5 = sld [smem:[#allocation29_spill]] }
 0xda8   : > { %s6160_s21 = sand.u32 1, %s8630_s2  }
 0xda9   : > { %p8632_p10 = scmp.ne.s32.totalorder %s8631_s5, 0  ;;  %s6161_s24 = scalar_lea.sflag [#allocation9], %s6160_s21 }
 0xdab   : > { %p6659_p6 = pnand %p6666_p2, %p8632_p10 }
 0xdad   : > { %p6660_p13 = pneg %p6659_p6 }
 0xdaf   : > { %7009 = dma.done.wait (%p6660_p13), %s6161_s24, 128  }
 0xdb0   : > { %7011 = vsyncadd (%p6660_p13), %s6161_s24, 4294967168  ;;  %s33_s20 = sadd.s32 1, %s7070_s20   ;;  %s8634_s30 = sld [smem:[#allocation19_spill]] }
 0xdb1   : > { %p8469_p3 = scmp.ge.s32.totalorder %s33_s20, 10   ;;  %s8635_s23 = sld [smem:[#allocation27_spill]] }
 0xdb2   : > { %s8636_s0 = sld [smem:[#allocation25_spill]]  ;;  %s8643_s21 = smov %s7018_s22 }
 0xdb3   : > { %s8637_s1 = sld [smem:[#allocation26_spill]]  ;;  %s8645_s24 = smov %s7030_s25 }
 0xdb4   : > { %s8638_s29 = sld [smem:[#allocation21_spill]]  ;;  %s8647_s26 = smov %s7038_s27 }
 0xdb5   : > { %s8639_s4 = sld [smem:[#allocation22_spill]]  ;;  %s8648_s27 = smov %s7042_s28 }
 0xdb6   : > { %s8640_s8 = sld [smem:[#allocation23_spill]]  ;;  %s8644_s22 = smov %s8634_s30 }
 0xdb7   : > { %s8641_s3 = sld [smem:[#allocation24_spill]]  ;;  %s8650_s30 = smov %s7062_s18 }
 0xdb8   : > { %s8646_s25 = smov %s8636_s0  ;;  %s8651_s0 = smov %s7066_s19 }
 0xdb9   : > { %s8649_s28 = smov %s8637_s1  ;;  %32 = sbr.rel (!%p8469_p3) target bundleno = 29 (0x1d), region = 208 }
 0xdbb   : > { %s8652_s17 = smov %s8639_s4 }
 0xdbc   : > { %s8653_s18 = smov %s8640_s8 }
 0xdbd   : > { %s8654_s19 = smov %s8641_s3 }
 0xdbe   :  { %6166 = vsyncpa [#allocation8], 1 }
 0xdbf   :  { %6168 = vsyncpa [#allocation8 + $0x1], 1 }
 0xdc0   :  { %6169 = vsyncpa [#allocation11], 1 }
 0xdc1   :  { %6170 = vsyncpa [#allocation9], 1 }
 0xdc2   :  { %6172 = vsyncpa [#allocation9 + $0x1], 1 }

</bundles_post_ra>
